<compile_context>
chip_gen: v7x
topology: tpu7x:2x2x1
jax: 0.10.0
libtpu: 0.0.40
codegen_flags: <defaults>
</compile_context>

<pallas_src>
import functools
import numpy as np
import jax
import jax.numpy as jnp
from jax.experimental import pallas as pl
from jax.experimental.pallas import tpu as pltpu


# ---------------------------------------------------------------------------
# Fused decoder kernel (one batch element per grid step)
# ---------------------------------------------------------------------------

def _full_spec(shape):
    """BlockSpec covering the whole (untiled) array, replicated across the grid."""
    n = len(shape)
    return pl.BlockSpec(shape, lambda b, _n=n: (0,) * _n)


def decoder_kernel(x_ref, enc_ref, trg_mask_ref, src_mask_ref,
                   wq_ref, bq_ref, wk_ref, bk_ref, wv_ref, bv_ref,
                   wo_ref, bo_ref, ga_ref, ba_ref,
                   w1_ref, b1_ref, w2_ref, b2_ref, gf_ref, bf_ref,
                   out_ref, *, n_layer, n_head, d_k, d_v):
    x = x_ref[0]          # (S_trg, D)  decoder activation, stays resident
    enc = enc_ref[0]      # (S_src, D)

    # Mask -> additive bias, computed once (hoisted out of head/layer loops).
    trg_bias = jnp.where(trg_mask_ref[0] == 0, -1e9, 0.0).astype(jnp.float32)  # (1, S_trg)
    src_bias = jnp.where(src_mask_ref[0] == 0, -1e9, 0.0).astype(jnp.float32)  # (1, S_src)

    def layernorm(y, gamma, beta):
        mean = jnp.mean(y, axis=-1, keepdims=True)
        var = jnp.mean((y - mean) ** 2, axis=-1, keepdims=True)
        return (y - mean) * jax.lax.rsqrt(var + 1e-6) * gamma + beta

    def attn_block(x_q, x_kv, bias, idx):
        # Fused projections over all heads (scale already folded into wq/bq).
        q = jnp.dot(x_q, wq_ref[idx], preferred_element_type=jnp.float32) + bq_ref[idx]
        k = jnp.dot(x_kv, wk_ref[idx], preferred_element_type=jnp.float32) + bk_ref[idx]
        v = jnp.dot(x_kv, wv_ref[idx], preferred_element_type=jnp.float32) + bv_ref[idx]
        ctx = []
        for h in range(n_head):                       # tiny static unroll (scores only)
            qh = q[:, h * d_k:(h + 1) * d_k]
            kh = k[:, h * d_k:(h + 1) * d_k]
            vh = v[:, h * d_v:(h + 1) * d_v]
            s = jax.lax.dot_general(qh, kh, (((1,), (1,)), ((), ())),
                                    preferred_element_type=jnp.float32) + bias
            p = jnp.exp(s - jnp.max(s, axis=-1, keepdims=True))
            p = p * pl.reciprocal(jnp.sum(p, axis=-1, keepdims=True), approx=True)
            ctx.append(jnp.dot(p, vh, preferred_element_type=jnp.float32))
        ctx = jnp.concatenate(ctx, axis=-1)           # (Sq, n_head*d_v)
        y = (jnp.dot(ctx, wo_ref[idx], preferred_element_type=jnp.float32)
             + bo_ref[idx] + x_q)                     # output proj + residual
        return layernorm(y, ga_ref[idx], ba_ref[idx])

    def ffn_block(xf, li):
        h = jnp.maximum(
            jnp.dot(xf, w1_ref[li], preferred_element_type=jnp.float32) + b1_ref[li], 0.0)
        y = jnp.dot(h, w2_ref[li], preferred_element_type=jnp.float32) + b2_ref[li] + xf
        return layernorm(y, gf_ref[li], bf_ref[li])

    for li in range(n_layer):                         # static unroll over layers
        x = attn_block(x, x, trg_bias, 2 * li)        # self-attention
        x = attn_block(x, enc, src_bias, 2 * li + 1)  # enc-dec attention
        x = ffn_block(x, li)                          # position-wise FFN

    out_ref[0] = x


# ---------------------------------------------------------------------------
# Parameter init (concatenated-head layout, like nn.Linear) + packing
# ---------------------------------------------------------------------------

def sinusoid_table(n_position, d_model):
    pos = np.arange(n_position)[:, None].astype(np.float64)
    idx = np.arange(d_model)[None, :]
    angle = pos / np.power(10000.0, (idx // 2 * 2) / d_model)
    table = np.zeros((n_position, d_model), dtype=np.float64)
    table[:, 0::2] = np.sin(angle[:, 0::2])
    table[:, 1::2] = np.cos(angle[:, 1::2])
    return jnp.asarray(table, dtype=jnp.float32)


def init_params(key, vocab, d_model, d_hidden, n_head, d_k, d_v, n_position, n_layer):
    keys = jax.random.split(key, 1 + n_layer)
    params = {
        'embedding': 0.1 * jax.random.normal(keys[0], (vocab, d_model), jnp.float32),
        'pos_table': sinusoid_table(n_position, d_model),
        'layers': [],
    }

    def mha_params(k):
        ks = jax.random.split(k, 8)
        return dict(
            wq=0.1 * jax.random.normal(ks[0], (d_model, n_head * d_k), jnp.float32),
            bq=0.01 * jax.random.normal(ks[1], (1, n_head * d_k), jnp.float32),
            wk=0.1 * jax.random.normal(ks[2], (d_model, n_head * d_k), jnp.float32),
            bk=0.01 * jax.random.normal(ks[3], (1, n_head * d_k), jnp.float32),
            wv=0.1 * jax.random.normal(ks[4], (d_model, n_head * d_v), jnp.float32),
            bv=0.01 * jax.random.normal(ks[5], (1, n_head * d_v), jnp.float32),
            wo=0.1 * jax.random.normal(ks[6], (n_head * d_v, d_model), jnp.float32),
            bo=0.01 * jax.random.normal(ks[7], (1, d_model), jnp.float32),
            gamma=jnp.ones((1, d_model), jnp.float32),
            beta=jnp.zeros((1, d_model), jnp.float32),
        )

    def ffn_params(k):
        ks = jax.random.split(k, 4)
        return dict(
            w1=0.1 * jax.random.normal(ks[0], (d_model, d_hidden), jnp.float32),
            b1=0.01 * jax.random.normal(ks[1], (1, d_hidden), jnp.float32),
            w2=0.1 * jax.random.normal(ks[2], (d_hidden, d_model), jnp.float32),
            b2=0.01 * jax.random.normal(ks[3], (1, d_model), jnp.float32),
            gamma=jnp.ones((1, d_model), jnp.float32),
            beta=jnp.zeros((1, d_model), jnp.float32),
        )

    for li in range(n_layer):
        lk = jax.random.split(keys[1 + li], 3)
        params['layers'].append(dict(slf=mha_params(lk[0]),
                                     encdec=mha_params(lk[1]),
                                     ffn=ffn_params(lk[2])))
    return params


def pack_decoder_params(params, d_k):
    """Stack per-layer weights; attn index 2*li = self-attn, 2*li+1 = enc-dec."""
    scale = jnp.float32(1.0 / np.sqrt(d_k))
    attn = []
    for layer in params['layers']:
        attn.append(layer['slf'])
        attn.append(layer['encdec'])
    ffn = [layer['ffn'] for layer in params['layers']]

    def stk(blocks, name):
        return jnp.stack([b[name] for b in blocks], axis=0)

    return dict(
        wq=stk(attn, 'wq') * scale, bq=stk(attn, 'bq') * scale,   # fold 1/sqrt(d_k)
        wk=stk(attn, 'wk'), bk=stk(attn, 'bk'),
        wv=stk(attn, 'wv'), bv=stk(attn, 'bv'),
        wo=stk(attn, 'wo'), bo=stk(attn, 'bo'),
        g_attn=stk(attn, 'gamma'), b_attn=stk(attn, 'beta'),
        w1=stk(ffn, 'w1'), b1=stk(ffn, 'b1'),
        w2=stk(ffn, 'w2'), b2=stk(ffn, 'b2'),
        g_ffn=stk(ffn, 'gamma'), b_ffn=stk(ffn, 'beta'),
    )


# ---------------------------------------------------------------------------
# Forward: JAX glue (embedding + pos-enc) + one fused pallas_call
# ---------------------------------------------------------------------------

def decoder_forward(trg_seq, trg_mask, enc_output, src_mask, params,
                    n_layer, n_head, d_k, d_v):
    # Embedding gather + sinusoidal positional encoding are glue (plain JAX).
    emb = jnp.take(params['embedding'], trg_seq, axis=0)              # (B, S_trg, D)
    x0 = emb + params['pos_table'][None, :emb.shape[1], :]
    # nn.Dropout -> identity (eval mode)

    B, S_trg, D = x0.shape
    S_src = enc_output.shape[1]
    trg_m = trg_mask.reshape(B, 1, S_trg).astype(jnp.int32)
    src_m = src_mask.reshape(B, 1, S_src).astype(jnp.int32)

    packed = pack_decoder_params(params, d_k)
    wnames = ['wq', 'bq', 'wk', 'bk', 'wv', 'bv', 'wo', 'bo', 'g_attn', 'b_attn',
              'w1', 'b1', 'w2', 'b2', 'g_ffn', 'b_ffn']
    weights = [packed[n] for n in wnames]

    kernel = functools.partial(decoder_kernel, n_layer=n_layer,
                               n_head=n_head, d_k=d_k, d_v=d_v)
    in_specs = [
        pl.BlockSpec((1, S_trg, D), lambda b: (b, 0, 0)),
        pl.BlockSpec((1, S_src, D), lambda b: (b, 0, 0)),
        pl.BlockSpec((1, 1, S_trg), lambda b: (b, 0, 0)),
        pl.BlockSpec((1, 1, S_src), lambda b: (b, 0, 0)),
    ] + [_full_spec(w.shape) for w in weights]

    dec_out = pl.pallas_call(
        kernel,
        out_shape=jax.ShapeDtypeStruct((B, S_trg, D), jnp.float32),
        grid=(B,),
        in_specs=in_specs,
        out_specs=pl.BlockSpec((1, S_trg, D), lambda b: (b, 0, 0)),
        compiler_params=pltpu.CompilerParams(dimension_semantics=("parallel",)),
    )(x0, enc_output, trg_m, src_m, *weights)

    # TODO(synk): attention maps are computed in-kernel but not materialized
    # (matches PyTorch forward default return_attns=False -> empty lists).
    return dec_out, [], []


# ---------------------------------------------------------------------------
# Pure-JAX reference (correctness check only)
# ---------------------------------------------------------------------------

def _layernorm_ref(x, gamma, beta, eps=1e-6):
    mean = jnp.mean(x, -1, keepdims=True)
    var = jnp.mean((x - mean) ** 2, -1, keepdims=True)
    return (x - mean) * jax.lax.rsqrt(var + eps) * gamma + beta


def _mha_ref(xq, xkv, mask, p, n_head, d_k, d_v):
    B, Sq, _ = xq.shape
    Sk = xkv.shape[1]
    q = (xq @ p['wq'] + p['bq']).reshape(B, Sq, n_head, d_k).transpose(0, 2, 1, 3)
    k = (xkv @ p['wk'] + p['bk']).reshape(B, Sk, n_head, d_k).transpose(0, 2, 1, 3)
    v = (xkv @ p['wv'] + p['bv']).reshape(B, Sk, n_head, d_v).transpose(0, 2, 1, 3)
    scores = jnp.einsum('bhqd,bhkd->bhqk', q, k) / np.sqrt(d_k)
    scores = jnp.where(mask[:, None, None, :] == 0, -1e9, scores)
    attn = jax.nn.softmax(scores, axis=-1)
    ctx = jnp.einsum('bhqk,bhkd->bhqd', attn, v)
    ctx = ctx.transpose(0, 2, 1, 3).reshape(B, Sq, n_head * d_v)
    y = ctx @ p['wo'] + p['bo'] + xq
    return _layernorm_ref(y, p['gamma'], p['beta'])


def _ffn_ref(x, p):
    h = jnp.maximum(x @ p['w1'] + p['b1'], 0.0)
    y = h @ p['w2'] + p['b2'] + x
    return _layernorm_ref(y, p['gamma'], p['beta'])


def decoder_ref(trg_seq, trg_mask, enc_output, src_mask, params, n_head, d_k, d_v):
    emb = jnp.take(params['embedding'], trg_seq, axis=0)
    x = emb + params['pos_table'][None, :emb.shape[1], :]
    for layer in params['layers']:
        x = _mha_ref(x, x, trg_mask, layer['slf'], n_head, d_k, d_v)
        x = _mha_ref(x, enc_output, src_mask, layer['encdec'], n_head, d_k, d_v)
        x = _ffn_ref(x, layer['ffn'])
    return x


# ---------------------------------------------------------------------------
# Main
# ---------------------------------------------------------------------------

if __name__ == "__main__":
    B, S_TRG, S_SRC = 2, 8, 8
    VOCAB, D_MODEL, D_HIDDEN = 50, 32, 64
    N_HEAD, D_K, D_V = 2, 16, 16
    N_POSITION, N_LAYER = 100, 2

    root = jax.random.PRNGKey(0)
    kp, kseq, kenc = jax.random.split(root, 3)

    params = init_params(kp, VOCAB, D_MODEL, D_HIDDEN, N_HEAD, D_K, D_V,
                         N_POSITION, N_LAYER)

    trg_seq = jax.random.randint(kseq, (B, S_TRG), 0, VOCAB)
    enc_output = jax.random.normal(kenc, (B, S_SRC, D_MODEL), jnp.float32)
    trg_mask = (jnp.arange(S_TRG)[None, :] < jnp.array([S_TRG, 5])[:, None]).astype(jnp.int32)
    src_mask = (jnp.arange(S_SRC)[None, :] < jnp.array([S_SRC, 6])[:, None]).astype(jnp.int32)

    dec_out, slf_attns, ed_attns = decoder_forward(
        trg_seq, trg_mask, enc_output, src_mask, params,
        N_LAYER, N_HEAD, D_K, D_V)
    jax.block_until_ready(dec_out)

    ref_out = decoder_ref(trg_seq, trg_mask, enc_output, src_mask, params,
                          N_HEAD, D_K, D_V)

    assert dec_out.shape == (B, S_TRG, D_MODEL)
    assert slf_attns == [] and ed_attns == []          # return_attns=False default
    max_diff = jnp.max(jnp.abs(dec_out - ref_out))
    assert jnp.allclose(dec_out, ref_out, atol=5e-2, rtol=5e-2), \
        f"max abs diff {max_diff}"

    print("KERNEL_OK")
</pallas_src>

<mosaic_0001>
module attributes {stable_mosaic.version = 11 : i64} {
  func.func @decoder_kernel(%arg0: i32, %arg1: memref<1x8x32xf32, #tpu.memory_space<vmem>>, %arg2: memref<1x8x32xf32, #tpu.memory_space<vmem>>, %arg3: memref<1x1x8xi32, #tpu.memory_space<vmem>>, %arg4: memref<1x1x8xi32, #tpu.memory_space<vmem>>, %arg5: memref<4x32x32xf32, #tpu.memory_space<vmem>>, %arg6: memref<4x1x32xf32, #tpu.memory_space<vmem>>, %arg7: memref<4x32x32xf32, #tpu.memory_space<vmem>>, %arg8: memref<4x1x32xf32, #tpu.memory_space<vmem>>, %arg9: memref<4x32x32xf32, #tpu.memory_space<vmem>>, %arg10: memref<4x1x32xf32, #tpu.memory_space<vmem>>, %arg11: memref<4x32x32xf32, #tpu.memory_space<vmem>>, %arg12: memref<4x1x32xf32, #tpu.memory_space<vmem>>, %arg13: memref<4x1x32xf32, #tpu.memory_space<vmem>>, %arg14: memref<4x1x32xf32, #tpu.memory_space<vmem>>, %arg15: memref<2x32x64xf32, #tpu.memory_space<vmem>>, %arg16: memref<2x1x64xf32, #tpu.memory_space<vmem>>, %arg17: memref<2x64x32xf32, #tpu.memory_space<vmem>>, %arg18: memref<2x1x32xf32, #tpu.memory_space<vmem>>, %arg19: memref<2x1x32xf32, #tpu.memory_space<vmem>>, %arg20: memref<2x1x32xf32, #tpu.memory_space<vmem>>, %arg21: memref<1x8x32xf32, #tpu.memory_space<vmem>>) attributes {dimension_semantics = [#tpu.dimension_semantics<parallel>], iteration_bounds = array<i64: 2>, scalar_prefetch = 0 : i64, scratch_operands = 0 : i64, tpu.core_type = #tpu.core_type<tc>, window_params = [{transform_indices = @transform_0, window_bounds = array<i64: 1, 8, 32>}, {transform_indices = @transform_1, window_bounds = array<i64: 1, 8, 32>}, {transform_indices = @transform_2, window_bounds = array<i64: 1, 1, 8>}, {transform_indices = @transform_3, window_bounds = array<i64: 1, 1, 8>}, {pipeline_mode = #tpu.pipeline_mode<synchronous>, transform_indices = @transform_4, window_bounds = array<i64: 4, 32, 32>}, {pipeline_mode = #tpu.pipeline_mode<synchronous>, transform_indices = @transform_5, window_bounds = array<i64: 4, 1, 32>}, {pipeline_mode = #tpu.pipeline_mode<synchronous>, transform_indices = @transform_6, window_bounds = array<i64: 4, 32, 32>}, {pipeline_mode = #tpu.pipeline_mode<synchronous>, transform_indices = @transform_7, window_bounds = array<i64: 4, 1, 32>}, {pipeline_mode = #tpu.pipeline_mode<synchronous>, transform_indices = @transform_8, window_bounds = array<i64: 4, 32, 32>}, {pipeline_mode = #tpu.pipeline_mode<synchronous>, transform_indices = @transform_9, window_bounds = array<i64: 4, 1, 32>}, {pipeline_mode = #tpu.pipeline_mode<synchronous>, transform_indices = @transform_10, window_bounds = array<i64: 4, 32, 32>}, {pipeline_mode = #tpu.pipeline_mode<synchronous>, transform_indices = @transform_11, window_bounds = array<i64: 4, 1, 32>}, {pipeline_mode = #tpu.pipeline_mode<synchronous>, transform_indices = @transform_12, window_bounds = array<i64: 4, 1, 32>}, {pipeline_mode = #tpu.pipeline_mode<synchronous>, transform_indices = @transform_13, window_bounds = array<i64: 4, 1, 32>}, {pipeline_mode = #tpu.pipeline_mode<synchronous>, transform_indices = @transform_14, window_bounds = array<i64: 2, 32, 64>}, {pipeline_mode = #tpu.pipeline_mode<synchronous>, transform_indices = @transform_15, window_bounds = array<i64: 2, 1, 64>}, {pipeline_mode = #tpu.pipeline_mode<synchronous>, transform_indices = @transform_16, window_bounds = array<i64: 2, 64, 32>}, {pipeline_mode = #tpu.pipeline_mode<synchronous>, transform_indices = @transform_17, window_bounds = array<i64: 2, 1, 32>}, {pipeline_mode = #tpu.pipeline_mode<synchronous>, transform_indices = @transform_18, window_bounds = array<i64: 2, 1, 32>}, {pipeline_mode = #tpu.pipeline_mode<synchronous>, transform_indices = @transform_19, window_bounds = array<i64: 2, 1, 32>}, {transform_indices = @transform_20, window_bounds = array<i64: 1, 8, 32>}]} {
    %c0 = arith.constant 0 : index
    %c0_0 = arith.constant 0 : index
    %c0_1 = arith.constant 0 : index
    %0 = vector.load %arg1[%c0, %c0_0, %c0_1] : memref<1x8x32xf32, #tpu.memory_space<vmem>>, vector<1x8x32xf32>
    %1 = vector.shape_cast %0 : vector<1x8x32xf32> to vector<8x32xf32>
    %c0_2 = arith.constant 0 : index
    %c0_3 = arith.constant 0 : index
    %c0_4 = arith.constant 0 : index
    %2 = vector.load %arg2[%c0_2, %c0_3, %c0_4] : memref<1x8x32xf32, #tpu.memory_space<vmem>>, vector<1x8x32xf32>
    %3 = vector.shape_cast %2 : vector<1x8x32xf32> to vector<8x32xf32>
    %c0_5 = arith.constant 0 : index
    %c0_6 = arith.constant 0 : index
    %c0_7 = arith.constant 0 : index
    %4 = vector.load %arg3[%c0_5, %c0_6, %c0_7] : memref<1x1x8xi32, #tpu.memory_space<vmem>>, vector<1x1x8xi32>
    %5 = vector.shape_cast %4 : vector<1x1x8xi32> to vector<1x8xi32>
    %c0_i32 = arith.constant 0 : i32
    %6 = vector.broadcast %c0_i32 : i32 to vector<1x8xi32>
    %7 = arith.cmpi eq, %5, %6 : vector<1x8xi32>
    %cst = arith.constant -1.000000e+09 : f32
    %cst_8 = arith.constant 0.000000e+00 : f32
    %8 = vector.broadcast %cst : f32 to vector<1x8xf32>
    %9 = vector.broadcast %cst_8 : f32 to vector<1x8xf32>
    %10 = arith.select %7, %8, %9 : vector<1x8xi1>, vector<1x8xf32>
    %c0_9 = arith.constant 0 : index
    %c0_10 = arith.constant 0 : index
    %c0_11 = arith.constant 0 : index
    %11 = vector.load %arg4[%c0_9, %c0_10, %c0_11] : memref<1x1x8xi32, #tpu.memory_space<vmem>>, vector<1x1x8xi32>
    %12 = vector.shape_cast %11 : vector<1x1x8xi32> to vector<1x8xi32>
    %c0_i32_12 = arith.constant 0 : i32
    %13 = vector.broadcast %c0_i32_12 : i32 to vector<1x8xi32>
    %14 = arith.cmpi eq, %12, %13 : vector<1x8xi32>
    %cst_13 = arith.constant -1.000000e+09 : f32
    %cst_14 = arith.constant 0.000000e+00 : f32
    %15 = vector.broadcast %cst_13 : f32 to vector<1x8xf32>
    %16 = vector.broadcast %cst_14 : f32 to vector<1x8xf32>
    %17 = arith.select %14, %15, %16 : vector<1x8xi1>, vector<1x8xf32>
    %c0_15 = arith.constant 0 : index
    %c0_16 = arith.constant 0 : index
    %c0_17 = arith.constant 0 : index
    %18 = vector.load %arg5[%c0_15, %c0_16, %c0_17] : memref<4x32x32xf32, #tpu.memory_space<vmem>>, vector<1x32x32xf32>
    %19 = vector.shape_cast %18 : vector<1x32x32xf32> to vector<32x32xf32>
    %cst_18 = arith.constant dense<0.000000e+00> : vector<8x32xf32>
    %20 = tpu.matmul %1, %19, %cst_18 {dimension_numbers = #tpu.dot_dimension_numbers<[1], [0], [0], [1], [0, 0, 1, 1], [], []>} : vector<8x32xf32>, vector<32x32xf32>, vector<8x32xf32> -> vector<8x32xf32>
    %c0_19 = arith.constant 0 : index
    %c0_20 = arith.constant 0 : index
    %c0_21 = arith.constant 0 : index
    %21 = vector.load %arg6[%c0_19, %c0_20, %c0_21] : memref<4x1x32xf32, #tpu.memory_space<vmem>>, vector<1x1x32xf32>
    %22 = vector.shape_cast %21 : vector<1x1x32xf32> to vector<1x32xf32>
    %23 = vector.broadcast %22 : vector<1x32xf32> to vector<8x32xf32>
    %24 = arith.addf %20, %23 : vector<8x32xf32>
    %c0_22 = arith.constant 0 : index
    %c0_23 = arith.constant 0 : index
    %c0_24 = arith.constant 0 : index
    %25 = vector.load %arg7[%c0_22, %c0_23, %c0_24] : memref<4x32x32xf32, #tpu.memory_space<vmem>>, vector<1x32x32xf32>
    %26 = vector.shape_cast %25 : vector<1x32x32xf32> to vector<32x32xf32>
    %cst_25 = arith.constant dense<0.000000e+00> : vector<8x32xf32>
    %27 = tpu.matmul %1, %26, %cst_25 {dimension_numbers = #tpu.dot_dimension_numbers<[1], [0], [0], [1], [0, 0, 1, 1], [], []>} : vector<8x32xf32>, vector<32x32xf32>, vector<8x32xf32> -> vector<8x32xf32>
    %c0_26 = arith.constant 0 : index
    %c0_27 = arith.constant 0 : index
    %c0_28 = arith.constant 0 : index
    %28 = vector.load %arg8[%c0_26, %c0_27, %c0_28] : memref<4x1x32xf32, #tpu.memory_space<vmem>>, vector<1x1x32xf32>
    %29 = vector.shape_cast %28 : vector<1x1x32xf32> to vector<1x32xf32>
    %30 = vector.broadcast %29 : vector<1x32xf32> to vector<8x32xf32>
    %31 = arith.addf %27, %30 : vector<8x32xf32>
    %c0_29 = arith.constant 0 : index
    %c0_30 = arith.constant 0 : index
    %c0_31 = arith.constant 0 : index
    %32 = vector.load %arg9[%c0_29, %c0_30, %c0_31] : memref<4x32x32xf32, #tpu.memory_space<vmem>>, vector<1x32x32xf32>
    %33 = vector.shape_cast %32 : vector<1x32x32xf32> to vector<32x32xf32>
    %cst_32 = arith.constant dense<0.000000e+00> : vector<8x32xf32>
    %34 = tpu.matmul %1, %33, %cst_32 {dimension_numbers = #tpu.dot_dimension_numbers<[1], [0], [0], [1], [0, 0, 1, 1], [], []>} : vector<8x32xf32>, vector<32x32xf32>, vector<8x32xf32> -> vector<8x32xf32>
    %c0_33 = arith.constant 0 : index
    %c0_34 = arith.constant 0 : index
    %c0_35 = arith.constant 0 : index
    %35 = vector.load %arg10[%c0_33, %c0_34, %c0_35] : memref<4x1x32xf32, #tpu.memory_space<vmem>>, vector<1x1x32xf32>
    %36 = vector.shape_cast %35 : vector<1x1x32xf32> to vector<1x32xf32>
    %37 = vector.broadcast %36 : vector<1x32xf32> to vector<8x32xf32>
    %38 = arith.addf %34, %37 : vector<8x32xf32>
    %39 = vector.extract_strided_slice %24 {offsets = [0, 0], sizes = [8, 16], strides = [1, 1]} : vector<8x32xf32> to vector<8x16xf32>
    %40 = vector.extract_strided_slice %31 {offsets = [0, 0], sizes = [8, 16], strides = [1, 1]} : vector<8x32xf32> to vector<8x16xf32>
    %41 = vector.extract_strided_slice %38 {offsets = [0, 0], sizes = [8, 16], strides = [1, 1]} : vector<8x32xf32> to vector<8x16xf32>
    %cst_36 = arith.constant dense<0.000000e+00> : vector<8x8xf32>
    %42 = tpu.matmul %39, %40, %cst_36 {dimension_numbers = #tpu.dot_dimension_numbers<[1], [1], [0], [0], [0, 0, 1, 0], [], []>} : vector<8x16xf32>, vector<8x16xf32>, vector<8x8xf32> -> vector<8x8xf32>
    %43 = vector.broadcast %10 : vector<1x8xf32> to vector<8x8xf32>
    %44 = arith.addf %42, %43 : vector<8x8xf32>
    %cst_37 = arith.constant dense<0xFF800000> : vector<8xf32>
    %45 = vector.multi_reduction <maximumf>, %44, %cst_37 [1] : vector<8x8xf32> to vector<8xf32>
    %46 = vector.shape_cast %45 : vector<8xf32> to vector<8x1xf32>
    %47 = vector.broadcast %46 : vector<8x1xf32> to vector<8x8xf32>
    %48 = arith.subf %44, %47 : vector<8x8xf32>
    %49 = math.exp %48 : vector<8x8xf32>
    %cst_38 = arith.constant dense<0.000000e+00> : vector<8xf32>
    %50 = vector.multi_reduction <add>, %49, %cst_38 [1] : vector<8x8xf32> to vector<8xf32>
    %51 = vector.shape_cast %50 : vector<8xf32> to vector<8x1xf32>
    %52 = tpu.reciprocal %51 {approx = true} : vector<8x1xf32> -> vector<8x1xf32>
    %53 = vector.broadcast %52 : vector<8x1xf32> to vector<8x8xf32>
    %54 = arith.mulf %49, %53 : vector<8x8xf32>
    %cst_39 = arith.constant dense<0.000000e+00> : vector<8x16xf32>
    %55 = tpu.matmul %54, %41, %cst_39 {dimension_numbers = #tpu.dot_dimension_numbers<[1], [0], [0], [1], [0, 0, 1, 1], [], []>} : vector<8x8xf32>, vector<8x16xf32>, vector<8x16xf32> -> vector<8x16xf32>
    %56 = vector.extract_strided_slice %24 {offsets = [0, 16], sizes = [8, 16], strides = [1, 1]} : vector<8x32xf32> to vector<8x16xf32>
    %57 = vector.extract_strided_slice %31 {offsets = [0, 16], sizes = [8, 16], strides = [1, 1]} : vector<8x32xf32> to vector<8x16xf32>
    %58 = vector.extract_strided_slice %38 {offsets = [0, 16], sizes = [8, 16], strides = [1, 1]} : vector<8x32xf32> to vector<8x16xf32>
    %cst_40 = arith.constant dense<0.000000e+00> : vector<8x8xf32>
    %59 = tpu.matmul %56, %57, %cst_40 {dimension_numbers = #tpu.dot_dimension_numbers<[1], [1], [0], [0], [0, 0, 1, 0], [], []>} : vector<8x16xf32>, vector<8x16xf32>, vector<8x8xf32> -> vector<8x8xf32>
    %60 = vector.broadcast %10 : vector<1x8xf32> to vector<8x8xf32>
    %61 = arith.addf %59, %60 : vector<8x8xf32>
    %cst_41 = arith.constant dense<0xFF800000> : vector<8xf32>
    %62 = vector.multi_reduction <maximumf>, %61, %cst_41 [1] : vector<8x8xf32> to vector<8xf32>
    %63 = vector.shape_cast %62 : vector<8xf32> to vector<8x1xf32>
    %64 = vector.broadcast %63 : vector<8x1xf32> to vector<8x8xf32>
    %65 = arith.subf %61, %64 : vector<8x8xf32>
    %66 = math.exp %65 : vector<8x8xf32>
    %cst_42 = arith.constant dense<0.000000e+00> : vector<8xf32>
    %67 = vector.multi_reduction <add>, %66, %cst_42 [1] : vector<8x8xf32> to vector<8xf32>
    %68 = vector.shape_cast %67 : vector<8xf32> to vector<8x1xf32>
    %69 = tpu.reciprocal %68 {approx = true} : vector<8x1xf32> -> vector<8x1xf32>
    %70 = vector.broadcast %69 : vector<8x1xf32> to vector<8x8xf32>
    %71 = arith.mulf %66, %70 : vector<8x8xf32>
    %cst_43 = arith.constant dense<0.000000e+00> : vector<8x16xf32>
    %72 = tpu.matmul %71, %58, %cst_43 {dimension_numbers = #tpu.dot_dimension_numbers<[1], [0], [0], [1], [0, 0, 1, 1], [], []>} : vector<8x8xf32>, vector<8x16xf32>, vector<8x16xf32> -> vector<8x16xf32>
    %73 = tpu.concatenate %55, %72 in 1 : vector<8x16xf32>, vector<8x16xf32> -> vector<8x32xf32>
    %c0_44 = arith.constant 0 : index
    %c0_45 = arith.constant 0 : index
    %c0_46 = arith.constant 0 : index
    %74 = vector.load %arg11[%c0_44, %c0_45, %c0_46] : memref<4x32x32xf32, #tpu.memory_space<vmem>>, vector<1x32x32xf32>
    %75 = vector.shape_cast %74 : vector<1x32x32xf32> to vector<32x32xf32>
    %cst_47 = arith.constant dense<0.000000e+00> : vector<8x32xf32>
    %76 = tpu.matmul %73, %75, %cst_47 {dimension_numbers = #tpu.dot_dimension_numbers<[1], [0], [0], [1], [0, 0, 1, 1], [], []>} : vector<8x32xf32>, vector<32x32xf32>, vector<8x32xf32> -> vector<8x32xf32>
    %c0_48 = arith.constant 0 : index
    %c0_49 = arith.constant 0 : index
    %c0_50 = arith.constant 0 : index
    %77 = vector.load %arg12[%c0_48, %c0_49, %c0_50] : memref<4x1x32xf32, #tpu.memory_space<vmem>>, vector<1x1x32xf32>
    %78 = vector.shape_cast %77 : vector<1x1x32xf32> to vector<1x32xf32>
    %79 = vector.broadcast %78 : vector<1x32xf32> to vector<8x32xf32>
    %80 = arith.addf %76, %79 : vector<8x32xf32>
    %81 = arith.addf %80, %1 : vector<8x32xf32>
    %c0_51 = arith.constant 0 : index
    %c0_52 = arith.constant 0 : index
    %c0_53 = arith.constant 0 : index
    %82 = vector.load %arg13[%c0_51, %c0_52, %c0_53] : memref<4x1x32xf32, #tpu.memory_space<vmem>>, vector<1x1x32xf32>
    %83 = vector.shape_cast %82 : vector<1x1x32xf32> to vector<1x32xf32>
    %c0_54 = arith.constant 0 : index
    %c0_55 = arith.constant 0 : index
    %c0_56 = arith.constant 0 : index
    %84 = vector.load %arg14[%c0_54, %c0_55, %c0_56] : memref<4x1x32xf32, #tpu.memory_space<vmem>>, vector<1x1x32xf32>
    %85 = vector.shape_cast %84 : vector<1x1x32xf32> to vector<1x32xf32>
    %cst_57 = arith.constant dense<0.000000e+00> : vector<8xf32>
    %86 = vector.multi_reduction <add>, %81, %cst_57 [1] : vector<8x32xf32> to vector<8xf32>
    %87 = vector.shape_cast %86 : vector<8xf32> to vector<8x1xf32>
    %cst_58 = arith.constant 3.200000e+01 : f32
    %88 = vector.broadcast %cst_58 : f32 to vector<8x1xf32>
    %89 = arith.divf %87, %88 : vector<8x1xf32>
    %90 = vector.broadcast %89 : vector<8x1xf32> to vector<8x32xf32>
    %91 = arith.subf %81, %90 : vector<8x32xf32>
    %92 = arith.mulf %91, %91 : vector<8x32xf32>
    %cst_59 = arith.constant dense<0.000000e+00> : vector<8xf32>
    %93 = vector.multi_reduction <add>, %92, %cst_59 [1] : vector<8x32xf32> to vector<8xf32>
    %94 = vector.shape_cast %93 : vector<8xf32> to vector<8x1xf32>
    %cst_60 = arith.constant 3.200000e+01 : f32
    %95 = vector.broadcast %cst_60 : f32 to vector<8x1xf32>
    %96 = arith.divf %94, %95 : vector<8x1xf32>
    %97 = vector.broadcast %89 : vector<8x1xf32> to vector<8x32xf32>
    %98 = arith.subf %81, %97 : vector<8x32xf32>
    %cst_61 = arith.constant 9.99999997E-7 : f32
    %99 = vector.broadcast %cst_61 : f32 to vector<8x1xf32>
    %100 = arith.addf %96, %99 : vector<8x1xf32>
    %101 = math.rsqrt %100 : vector<8x1xf32>
    %102 = vector.broadcast %101 : vector<8x1xf32> to vector<8x32xf32>
    %103 = arith.mulf %98, %102 : vector<8x32xf32>
    %104 = vector.broadcast %83 : vector<1x32xf32> to vector<8x32xf32>
    %105 = arith.mulf %103, %104 : vector<8x32xf32>
    %106 = vector.broadcast %85 : vector<1x32xf32> to vector<8x32xf32>
    %107 = arith.addf %105, %106 : vector<8x32xf32>
    %c1 = arith.constant 1 : index
    %c0_62 = arith.constant 0 : index
    %c0_63 = arith.constant 0 : index
    %108 = vector.load %arg5[%c1, %c0_62, %c0_63] : memref<4x32x32xf32, #tpu.memory_space<vmem>>, vector<1x32x32xf32>
    %109 = vector.shape_cast %108 : vector<1x32x32xf32> to vector<32x32xf32>
    %cst_64 = arith.constant dense<0.000000e+00> : vector<8x32xf32>
    %110 = tpu.matmul %107, %109, %cst_64 {dimension_numbers = #tpu.dot_dimension_numbers<[1], [0], [0], [1], [0, 0, 1, 1], [], []>} : vector<8x32xf32>, vector<32x32xf32>, vector<8x32xf32> -> vector<8x32xf32>
    %c1_65 = arith.constant 1 : index
    %c0_66 = arith.constant 0 : index
    %c0_67 = arith.constant 0 : index
    %111 = vector.load %arg6[%c1_65, %c0_66, %c0_67] : memref<4x1x32xf32, #tpu.memory_space<vmem>>, vector<1x1x32xf32>
    %112 = vector.shape_cast %111 : vector<1x1x32xf32> to vector<1x32xf32>
    %113 = vector.broadcast %112 : vector<1x32xf32> to vector<8x32xf32>
    %114 = arith.addf %110, %113 : vector<8x32xf32>
    %c1_68 = arith.constant 1 : index
    %c0_69 = arith.constant 0 : index
    %c0_70 = arith.constant 0 : index
    %115 = vector.load %arg7[%c1_68, %c0_69, %c0_70] : memref<4x32x32xf32, #tpu.memory_space<vmem>>, vector<1x32x32xf32>
    %116 = vector.shape_cast %115 : vector<1x32x32xf32> to vector<32x32xf32>
    %cst_71 = arith.constant dense<0.000000e+00> : vector<8x32xf32>
    %117 = tpu.matmul %3, %116, %cst_71 {dimension_numbers = #tpu.dot_dimension_numbers<[1], [0], [0], [1], [0, 0, 1, 1], [], []>} : vector<8x32xf32>, vector<32x32xf32>, vector<8x32xf32> -> vector<8x32xf32>
    %c1_72 = arith.constant 1 : index
    %c0_73 = arith.constant 0 : index
    %c0_74 = arith.constant 0 : index
    %118 = vector.load %arg8[%c1_72, %c0_73, %c0_74] : memref<4x1x32xf32, #tpu.memory_space<vmem>>, vector<1x1x32xf32>
    %119 = vector.shape_cast %118 : vector<1x1x32xf32> to vector<1x32xf32>
    %120 = vector.broadcast %119 : vector<1x32xf32> to vector<8x32xf32>
    %121 = arith.addf %117, %120 : vector<8x32xf32>
    %c1_75 = arith.constant 1 : index
    %c0_76 = arith.constant 0 : index
    %c0_77 = arith.constant 0 : index
    %122 = vector.load %arg9[%c1_75, %c0_76, %c0_77] : memref<4x32x32xf32, #tpu.memory_space<vmem>>, vector<1x32x32xf32>
    %123 = vector.shape_cast %122 : vector<1x32x32xf32> to vector<32x32xf32>
    %cst_78 = arith.constant dense<0.000000e+00> : vector<8x32xf32>
    %124 = tpu.matmul %3, %123, %cst_78 {dimension_numbers = #tpu.dot_dimension_numbers<[1], [0], [0], [1], [0, 0, 1, 1], [], []>} : vector<8x32xf32>, vector<32x32xf32>, vector<8x32xf32> -> vector<8x32xf32>
    %c1_79 = arith.constant 1 : index
    %c0_80 = arith.constant 0 : index
    %c0_81 = arith.constant 0 : index
    %125 = vector.load %arg10[%c1_79, %c0_80, %c0_81] : memref<4x1x32xf32, #tpu.memory_space<vmem>>, vector<1x1x32xf32>
    %126 = vector.shape_cast %125 : vector<1x1x32xf32> to vector<1x32xf32>
    %127 = vector.broadcast %126 : vector<1x32xf32> to vector<8x32xf32>
    %128 = arith.addf %124, %127 : vector<8x32xf32>
    %129 = vector.extract_strided_slice %114 {offsets = [0, 0], sizes = [8, 16], strides = [1, 1]} : vector<8x32xf32> to vector<8x16xf32>
    %130 = vector.extract_strided_slice %121 {offsets = [0, 0], sizes = [8, 16], strides = [1, 1]} : vector<8x32xf32> to vector<8x16xf32>
    %131 = vector.extract_strided_slice %128 {offsets = [0, 0], sizes = [8, 16], strides = [1, 1]} : vector<8x32xf32> to vector<8x16xf32>
    %cst_82 = arith.constant dense<0.000000e+00> : vector<8x8xf32>
    %132 = tpu.matmul %129, %130, %cst_82 {dimension_numbers = #tpu.dot_dimension_numbers<[1], [1], [0], [0], [0, 0, 1, 0], [], []>} : vector<8x16xf32>, vector<8x16xf32>, vector<8x8xf32> -> vector<8x8xf32>
    %133 = vector.broadcast %17 : vector<1x8xf32> to vector<8x8xf32>
    %134 = arith.addf %132, %133 : vector<8x8xf32>
    %cst_83 = arith.constant dense<0xFF800000> : vector<8xf32>
    %135 = vector.multi_reduction <maximumf>, %134, %cst_83 [1] : vector<8x8xf32> to vector<8xf32>
    %136 = vector.shape_cast %135 : vector<8xf32> to vector<8x1xf32>
    %137 = vector.broadcast %136 : vector<8x1xf32> to vector<8x8xf32>
    %138 = arith.subf %134, %137 : vector<8x8xf32>
    %139 = math.exp %138 : vector<8x8xf32>
    %cst_84 = arith.constant dense<0.000000e+00> : vector<8xf32>
    %140 = vector.multi_reduction <add>, %139, %cst_84 [1] : vector<8x8xf32> to vector<8xf32>
    %141 = vector.shape_cast %140 : vector<8xf32> to vector<8x1xf32>
    %142 = tpu.reciprocal %141 {approx = true} : vector<8x1xf32> -> vector<8x1xf32>
    %143 = vector.broadcast %142 : vector<8x1xf32> to vector<8x8xf32>
    %144 = arith.mulf %139, %143 : vector<8x8xf32>
    %cst_85 = arith.constant dense<0.000000e+00> : vector<8x16xf32>
    %145 = tpu.matmul %144, %131, %cst_85 {dimension_numbers = #tpu.dot_dimension_numbers<[1], [0], [0], [1], [0, 0, 1, 1], [], []>} : vector<8x8xf32>, vector<8x16xf32>, vector<8x16xf32> -> vector<8x16xf32>
    %146 = vector.extract_strided_slice %114 {offsets = [0, 16], sizes = [8, 16], strides = [1, 1]} : vector<8x32xf32> to vector<8x16xf32>
    %147 = vector.extract_strided_slice %121 {offsets = [0, 16], sizes = [8, 16], strides = [1, 1]} : vector<8x32xf32> to vector<8x16xf32>
    %148 = vector.extract_strided_slice %128 {offsets = [0, 16], sizes = [8, 16], strides = [1, 1]} : vector<8x32xf32> to vector<8x16xf32>
    %cst_86 = arith.constant dense<0.000000e+00> : vector<8x8xf32>
    %149 = tpu.matmul %146, %147, %cst_86 {dimension_numbers = #tpu.dot_dimension_numbers<[1], [1], [0], [0], [0, 0, 1, 0], [], []>} : vector<8x16xf32>, vector<8x16xf32>, vector<8x8xf32> -> vector<8x8xf32>
    %150 = vector.broadcast %17 : vector<1x8xf32> to vector<8x8xf32>
    %151 = arith.addf %149, %150 : vector<8x8xf32>
    %cst_87 = arith.constant dense<0xFF800000> : vector<8xf32>
    %152 = vector.multi_reduction <maximumf>, %151, %cst_87 [1] : vector<8x8xf32> to vector<8xf32>
    %153 = vector.shape_cast %152 : vector<8xf32> to vector<8x1xf32>
    %154 = vector.broadcast %153 : vector<8x1xf32> to vector<8x8xf32>
    %155 = arith.subf %151, %154 : vector<8x8xf32>
    %156 = math.exp %155 : vector<8x8xf32>
    %cst_88 = arith.constant dense<0.000000e+00> : vector<8xf32>
    %157 = vector.multi_reduction <add>, %156, %cst_88 [1] : vector<8x8xf32> to vector<8xf32>
    %158 = vector.shape_cast %157 : vector<8xf32> to vector<8x1xf32>
    %159 = tpu.reciprocal %158 {approx = true} : vector<8x1xf32> -> vector<8x1xf32>
    %160 = vector.broadcast %159 : vector<8x1xf32> to vector<8x8xf32>
    %161 = arith.mulf %156, %160 : vector<8x8xf32>
    %cst_89 = arith.constant dense<0.000000e+00> : vector<8x16xf32>
    %162 = tpu.matmul %161, %148, %cst_89 {dimension_numbers = #tpu.dot_dimension_numbers<[1], [0], [0], [1], [0, 0, 1, 1], [], []>} : vector<8x8xf32>, vector<8x16xf32>, vector<8x16xf32> -> vector<8x16xf32>
    %163 = tpu.concatenate %145, %162 in 1 : vector<8x16xf32>, vector<8x16xf32> -> vector<8x32xf32>
    %c1_90 = arith.constant 1 : index
    %c0_91 = arith.constant 0 : index
    %c0_92 = arith.constant 0 : index
    %164 = vector.load %arg11[%c1_90, %c0_91, %c0_92] : memref<4x32x32xf32, #tpu.memory_space<vmem>>, vector<1x32x32xf32>
    %165 = vector.shape_cast %164 : vector<1x32x32xf32> to vector<32x32xf32>
    %cst_93 = arith.constant dense<0.000000e+00> : vector<8x32xf32>
    %166 = tpu.matmul %163, %165, %cst_93 {dimension_numbers = #tpu.dot_dimension_numbers<[1], [0], [0], [1], [0, 0, 1, 1], [], []>} : vector<8x32xf32>, vector<32x32xf32>, vector<8x32xf32> -> vector<8x32xf32>
    %c1_94 = arith.constant 1 : index
    %c0_95 = arith.constant 0 : index
    %c0_96 = arith.constant 0 : index
    %167 = vector.load %arg12[%c1_94, %c0_95, %c0_96] : memref<4x1x32xf32, #tpu.memory_space<vmem>>, vector<1x1x32xf32>
    %168 = vector.shape_cast %167 : vector<1x1x32xf32> to vector<1x32xf32>
    %169 = vector.broadcast %168 : vector<1x32xf32> to vector<8x32xf32>
    %170 = arith.addf %166, %169 : vector<8x32xf32>
    %171 = arith.addf %170, %107 : vector<8x32xf32>
    %c1_97 = arith.constant 1 : index
    %c0_98 = arith.constant 0 : index
    %c0_99 = arith.constant 0 : index
    %172 = vector.load %arg13[%c1_97, %c0_98, %c0_99] : memref<4x1x32xf32, #tpu.memory_space<vmem>>, vector<1x1x32xf32>
    %173 = vector.shape_cast %172 : vector<1x1x32xf32> to vector<1x32xf32>
    %c1_100 = arith.constant 1 : index
    %c0_101 = arith.constant 0 : index
    %c0_102 = arith.constant 0 : index
    %174 = vector.load %arg14[%c1_100, %c0_101, %c0_102] : memref<4x1x32xf32, #tpu.memory_space<vmem>>, vector<1x1x32xf32>
    %175 = vector.shape_cast %174 : vector<1x1x32xf32> to vector<1x32xf32>
    %cst_103 = arith.constant dense<0.000000e+00> : vector<8xf32>
    %176 = vector.multi_reduction <add>, %171, %cst_103 [1] : vector<8x32xf32> to vector<8xf32>
    %177 = vector.shape_cast %176 : vector<8xf32> to vector<8x1xf32>
    %cst_104 = arith.constant 3.200000e+01 : f32
    %178 = vector.broadcast %cst_104 : f32 to vector<8x1xf32>
    %179 = arith.divf %177, %178 : vector<8x1xf32>
    %180 = vector.broadcast %179 : vector<8x1xf32> to vector<8x32xf32>
    %181 = arith.subf %171, %180 : vector<8x32xf32>
    %182 = arith.mulf %181, %181 : vector<8x32xf32>
    %cst_105 = arith.constant dense<0.000000e+00> : vector<8xf32>
    %183 = vector.multi_reduction <add>, %182, %cst_105 [1] : vector<8x32xf32> to vector<8xf32>
    %184 = vector.shape_cast %183 : vector<8xf32> to vector<8x1xf32>
    %cst_106 = arith.constant 3.200000e+01 : f32
    %185 = vector.broadcast %cst_106 : f32 to vector<8x1xf32>
    %186 = arith.divf %184, %185 : vector<8x1xf32>
    %187 = vector.broadcast %179 : vector<8x1xf32> to vector<8x32xf32>
    %188 = arith.subf %171, %187 : vector<8x32xf32>
    %cst_107 = arith.constant 9.99999997E-7 : f32
    %189 = vector.broadcast %cst_107 : f32 to vector<8x1xf32>
    %190 = arith.addf %186, %189 : vector<8x1xf32>
    %191 = math.rsqrt %190 : vector<8x1xf32>
    %192 = vector.broadcast %191 : vector<8x1xf32> to vector<8x32xf32>
    %193 = arith.mulf %188, %192 : vector<8x32xf32>
    %194 = vector.broadcast %173 : vector<1x32xf32> to vector<8x32xf32>
    %195 = arith.mulf %193, %194 : vector<8x32xf32>
    %196 = vector.broadcast %175 : vector<1x32xf32> to vector<8x32xf32>
    %197 = arith.addf %195, %196 : vector<8x32xf32>
    %c0_108 = arith.constant 0 : index
    %c0_109 = arith.constant 0 : index
    %c0_110 = arith.constant 0 : index
    %198 = vector.load %arg15[%c0_108, %c0_109, %c0_110] : memref<2x32x64xf32, #tpu.memory_space<vmem>>, vector<1x32x64xf32>
    %199 = vector.shape_cast %198 : vector<1x32x64xf32> to vector<32x64xf32>
    %cst_111 = arith.constant dense<0.000000e+00> : vector<8x64xf32>
    %200 = tpu.matmul %197, %199, %cst_111 {dimension_numbers = #tpu.dot_dimension_numbers<[1], [0], [0], [1], [0, 0, 1, 1], [], []>} : vector<8x32xf32>, vector<32x64xf32>, vector<8x64xf32> -> vector<8x64xf32>
    %c0_112 = arith.constant 0 : index
    %c0_113 = arith.constant 0 : index
    %c0_114 = arith.constant 0 : index
    %201 = vector.load %arg16[%c0_112, %c0_113, %c0_114] : memref<2x1x64xf32, #tpu.memory_space<vmem>>, vector<1x1x64xf32>
    %202 = vector.shape_cast %201 : vector<1x1x64xf32> to vector<1x64xf32>
    %203 = vector.broadcast %202 : vector<1x64xf32> to vector<8x64xf32>
    %204 = arith.addf %200, %203 : vector<8x64xf32>
    %cst_115 = arith.constant 0.000000e+00 : f32
    %205 = vector.broadcast %cst_115 : f32 to vector<8x64xf32>
    %206 = arith.maximumf %204, %205 : vector<8x64xf32>
    %c0_116 = arith.constant 0 : index
    %c0_117 = arith.constant 0 : index
    %c0_118 = arith.constant 0 : index
    %207 = vector.load %arg17[%c0_116, %c0_117, %c0_118] : memref<2x64x32xf32, #tpu.memory_space<vmem>>, vector<1x64x32xf32>
    %208 = vector.shape_cast %207 : vector<1x64x32xf32> to vector<64x32xf32>
    %cst_119 = arith.constant dense<0.000000e+00> : vector<8x32xf32>
    %209 = tpu.matmul %206, %208, %cst_119 {dimension_numbers = #tpu.dot_dimension_numbers<[1], [0], [0], [1], [0, 0, 1, 1], [], []>} : vector<8x64xf32>, vector<64x32xf32>, vector<8x32xf32> -> vector<8x32xf32>
    %c0_120 = arith.constant 0 : index
    %c0_121 = arith.constant 0 : index
    %c0_122 = arith.constant 0 : index
    %210 = vector.load %arg18[%c0_120, %c0_121, %c0_122] : memref<2x1x32xf32, #tpu.memory_space<vmem>>, vector<1x1x32xf32>
    %211 = vector.shape_cast %210 : vector<1x1x32xf32> to vector<1x32xf32>
    %212 = vector.broadcast %211 : vector<1x32xf32> to vector<8x32xf32>
    %213 = arith.addf %209, %212 : vector<8x32xf32>
    %214 = arith.addf %213, %197 : vector<8x32xf32>
    %c0_123 = arith.constant 0 : index
    %c0_124 = arith.constant 0 : index
    %c0_125 = arith.constant 0 : index
    %215 = vector.load %arg19[%c0_123, %c0_124, %c0_125] : memref<2x1x32xf32, #tpu.memory_space<vmem>>, vector<1x1x32xf32>
    %216 = vector.shape_cast %215 : vector<1x1x32xf32> to vector<1x32xf32>
    %c0_126 = arith.constant 0 : index
    %c0_127 = arith.constant 0 : index
    %c0_128 = arith.constant 0 : index
    %217 = vector.load %arg20[%c0_126, %c0_127, %c0_128] : memref<2x1x32xf32, #tpu.memory_space<vmem>>, vector<1x1x32xf32>
    %218 = vector.shape_cast %217 : vector<1x1x32xf32> to vector<1x32xf32>
    %cst_129 = arith.constant dense<0.000000e+00> : vector<8xf32>
    %219 = vector.multi_reduction <add>, %214, %cst_129 [1] : vector<8x32xf32> to vector<8xf32>
    %220 = vector.shape_cast %219 : vector<8xf32> to vector<8x1xf32>
    %cst_130 = arith.constant 3.200000e+01 : f32
    %221 = vector.broadcast %cst_130 : f32 to vector<8x1xf32>
    %222 = arith.divf %220, %221 : vector<8x1xf32>
    %223 = vector.broadcast %222 : vector<8x1xf32> to vector<8x32xf32>
    %224 = arith.subf %214, %223 : vector<8x32xf32>
    %225 = arith.mulf %224, %224 : vector<8x32xf32>
    %cst_131 = arith.constant dense<0.000000e+00> : vector<8xf32>
    %226 = vector.multi_reduction <add>, %225, %cst_131 [1] : vector<8x32xf32> to vector<8xf32>
    %227 = vector.shape_cast %226 : vector<8xf32> to vector<8x1xf32>
    %cst_132 = arith.constant 3.200000e+01 : f32
    %228 = vector.broadcast %cst_132 : f32 to vector<8x1xf32>
    %229 = arith.divf %227, %228 : vector<8x1xf32>
    %230 = vector.broadcast %222 : vector<8x1xf32> to vector<8x32xf32>
    %231 = arith.subf %214, %230 : vector<8x32xf32>
    %cst_133 = arith.constant 9.99999997E-7 : f32
    %232 = vector.broadcast %cst_133 : f32 to vector<8x1xf32>
    %233 = arith.addf %229, %232 : vector<8x1xf32>
    %234 = math.rsqrt %233 : vector<8x1xf32>
    %235 = vector.broadcast %234 : vector<8x1xf32> to vector<8x32xf32>
    %236 = arith.mulf %231, %235 : vector<8x32xf32>
    %237 = vector.broadcast %216 : vector<1x32xf32> to vector<8x32xf32>
    %238 = arith.mulf %236, %237 : vector<8x32xf32>
    %239 = vector.broadcast %218 : vector<1x32xf32> to vector<8x32xf32>
    %240 = arith.addf %238, %239 : vector<8x32xf32>
    %c2 = arith.constant 2 : index
    %c0_134 = arith.constant 0 : index
    %c0_135 = arith.constant 0 : index
    %241 = vector.load %arg5[%c2, %c0_134, %c0_135] : memref<4x32x32xf32, #tpu.memory_space<vmem>>, vector<1x32x32xf32>
    %242 = vector.shape_cast %241 : vector<1x32x32xf32> to vector<32x32xf32>
    %cst_136 = arith.constant dense<0.000000e+00> : vector<8x32xf32>
    %243 = tpu.matmul %240, %242, %cst_136 {dimension_numbers = #tpu.dot_dimension_numbers<[1], [0], [0], [1], [0, 0, 1, 1], [], []>} : vector<8x32xf32>, vector<32x32xf32>, vector<8x32xf32> -> vector<8x32xf32>
    %c2_137 = arith.constant 2 : index
    %c0_138 = arith.constant 0 : index
    %c0_139 = arith.constant 0 : index
    %244 = vector.load %arg6[%c2_137, %c0_138, %c0_139] : memref<4x1x32xf32, #tpu.memory_space<vmem>>, vector<1x1x32xf32>
    %245 = vector.shape_cast %244 : vector<1x1x32xf32> to vector<1x32xf32>
    %246 = vector.broadcast %245 : vector<1x32xf32> to vector<8x32xf32>
    %247 = arith.addf %243, %246 : vector<8x32xf32>
    %c2_140 = arith.constant 2 : index
    %c0_141 = arith.constant 0 : index
    %c0_142 = arith.constant 0 : index
    %248 = vector.load %arg7[%c2_140, %c0_141, %c0_142] : memref<4x32x32xf32, #tpu.memory_space<vmem>>, vector<1x32x32xf32>
    %249 = vector.shape_cast %248 : vector<1x32x32xf32> to vector<32x32xf32>
    %cst_143 = arith.constant dense<0.000000e+00> : vector<8x32xf32>
    %250 = tpu.matmul %240, %249, %cst_143 {dimension_numbers = #tpu.dot_dimension_numbers<[1], [0], [0], [1], [0, 0, 1, 1], [], []>} : vector<8x32xf32>, vector<32x32xf32>, vector<8x32xf32> -> vector<8x32xf32>
    %c2_144 = arith.constant 2 : index
    %c0_145 = arith.constant 0 : index
    %c0_146 = arith.constant 0 : index
    %251 = vector.load %arg8[%c2_144, %c0_145, %c0_146] : memref<4x1x32xf32, #tpu.memory_space<vmem>>, vector<1x1x32xf32>
    %252 = vector.shape_cast %251 : vector<1x1x32xf32> to vector<1x32xf32>
    %253 = vector.broadcast %252 : vector<1x32xf32> to vector<8x32xf32>
    %254 = arith.addf %250, %253 : vector<8x32xf32>
    %c2_147 = arith.constant 2 : index
    %c0_148 = arith.constant 0 : index
    %c0_149 = arith.constant 0 : index
    %255 = vector.load %arg9[%c2_147, %c0_148, %c0_149] : memref<4x32x32xf32, #tpu.memory_space<vmem>>, vector<1x32x32xf32>
    %256 = vector.shape_cast %255 : vector<1x32x32xf32> to vector<32x32xf32>
    %cst_150 = arith.constant dense<0.000000e+00> : vector<8x32xf32>
    %257 = tpu.matmul %240, %256, %cst_150 {dimension_numbers = #tpu.dot_dimension_numbers<[1], [0], [0], [1], [0, 0, 1, 1], [], []>} : vector<8x32xf32>, vector<32x32xf32>, vector<8x32xf32> -> vector<8x32xf32>
    %c2_151 = arith.constant 2 : index
    %c0_152 = arith.constant 0 : index
    %c0_153 = arith.constant 0 : index
    %258 = vector.load %arg10[%c2_151, %c0_152, %c0_153] : memref<4x1x32xf32, #tpu.memory_space<vmem>>, vector<1x1x32xf32>
    %259 = vector.shape_cast %258 : vector<1x1x32xf32> to vector<1x32xf32>
    %260 = vector.broadcast %259 : vector<1x32xf32> to vector<8x32xf32>
    %261 = arith.addf %257, %260 : vector<8x32xf32>
    %262 = vector.extract_strided_slice %247 {offsets = [0, 0], sizes = [8, 16], strides = [1, 1]} : vector<8x32xf32> to vector<8x16xf32>
    %263 = vector.extract_strided_slice %254 {offsets = [0, 0], sizes = [8, 16], strides = [1, 1]} : vector<8x32xf32> to vector<8x16xf32>
    %264 = vector.extract_strided_slice %261 {offsets = [0, 0], sizes = [8, 16], strides = [1, 1]} : vector<8x32xf32> to vector<8x16xf32>
    %cst_154 = arith.constant dense<0.000000e+00> : vector<8x8xf32>
    %265 = tpu.matmul %262, %263, %cst_154 {dimension_numbers = #tpu.dot_dimension_numbers<[1], [1], [0], [0], [0, 0, 1, 0], [], []>} : vector<8x16xf32>, vector<8x16xf32>, vector<8x8xf32> -> vector<8x8xf32>
    %266 = vector.broadcast %10 : vector<1x8xf32> to vector<8x8xf32>
    %267 = arith.addf %265, %266 : vector<8x8xf32>
    %cst_155 = arith.constant dense<0xFF800000> : vector<8xf32>
    %268 = vector.multi_reduction <maximumf>, %267, %cst_155 [1] : vector<8x8xf32> to vector<8xf32>
    %269 = vector.shape_cast %268 : vector<8xf32> to vector<8x1xf32>
    %270 = vector.broadcast %269 : vector<8x1xf32> to vector<8x8xf32>
    %271 = arith.subf %267, %270 : vector<8x8xf32>
    %272 = math.exp %271 : vector<8x8xf32>
    %cst_156 = arith.constant dense<0.000000e+00> : vector<8xf32>
    %273 = vector.multi_reduction <add>, %272, %cst_156 [1] : vector<8x8xf32> to vector<8xf32>
    %274 = vector.shape_cast %273 : vector<8xf32> to vector<8x1xf32>
    %275 = tpu.reciprocal %274 {approx = true} : vector<8x1xf32> -> vector<8x1xf32>
    %276 = vector.broadcast %275 : vector<8x1xf32> to vector<8x8xf32>
    %277 = arith.mulf %272, %276 : vector<8x8xf32>
    %cst_157 = arith.constant dense<0.000000e+00> : vector<8x16xf32>
    %278 = tpu.matmul %277, %264, %cst_157 {dimension_numbers = #tpu.dot_dimension_numbers<[1], [0], [0], [1], [0, 0, 1, 1], [], []>} : vector<8x8xf32>, vector<8x16xf32>, vector<8x16xf32> -> vector<8x16xf32>
    %279 = vector.extract_strided_slice %247 {offsets = [0, 16], sizes = [8, 16], strides = [1, 1]} : vector<8x32xf32> to vector<8x16xf32>
    %280 = vector.extract_strided_slice %254 {offsets = [0, 16], sizes = [8, 16], strides = [1, 1]} : vector<8x32xf32> to vector<8x16xf32>
    %281 = vector.extract_strided_slice %261 {offsets = [0, 16], sizes = [8, 16], strides = [1, 1]} : vector<8x32xf32> to vector<8x16xf32>
    %cst_158 = arith.constant dense<0.000000e+00> : vector<8x8xf32>
    %282 = tpu.matmul %279, %280, %cst_158 {dimension_numbers = #tpu.dot_dimension_numbers<[1], [1], [0], [0], [0, 0, 1, 0], [], []>} : vector<8x16xf32>, vector<8x16xf32>, vector<8x8xf32> -> vector<8x8xf32>
    %283 = vector.broadcast %10 : vector<1x8xf32> to vector<8x8xf32>
    %284 = arith.addf %282, %283 : vector<8x8xf32>
    %cst_159 = arith.constant dense<0xFF800000> : vector<8xf32>
    %285 = vector.multi_reduction <maximumf>, %284, %cst_159 [1] : vector<8x8xf32> to vector<8xf32>
    %286 = vector.shape_cast %285 : vector<8xf32> to vector<8x1xf32>
    %287 = vector.broadcast %286 : vector<8x1xf32> to vector<8x8xf32>
    %288 = arith.subf %284, %287 : vector<8x8xf32>
    %289 = math.exp %288 : vector<8x8xf32>
    %cst_160 = arith.constant dense<0.000000e+00> : vector<8xf32>
    %290 = vector.multi_reduction <add>, %289, %cst_160 [1] : vector<8x8xf32> to vector<8xf32>
    %291 = vector.shape_cast %290 : vector<8xf32> to vector<8x1xf32>
    %292 = tpu.reciprocal %291 {approx = true} : vector<8x1xf32> -> vector<8x1xf32>
    %293 = vector.broadcast %292 : vector<8x1xf32> to vector<8x8xf32>
    %294 = arith.mulf %289, %293 : vector<8x8xf32>
    %cst_161 = arith.constant dense<0.000000e+00> : vector<8x16xf32>
    %295 = tpu.matmul %294, %281, %cst_161 {dimension_numbers = #tpu.dot_dimension_numbers<[1], [0], [0], [1], [0, 0, 1, 1], [], []>} : vector<8x8xf32>, vector<8x16xf32>, vector<8x16xf32> -> vector<8x16xf32>
    %296 = tpu.concatenate %278, %295 in 1 : vector<8x16xf32>, vector<8x16xf32> -> vector<8x32xf32>
    %c2_162 = arith.constant 2 : index
    %c0_163 = arith.constant 0 : index
    %c0_164 = arith.constant 0 : index
    %297 = vector.load %arg11[%c2_162, %c0_163, %c0_164] : memref<4x32x32xf32, #tpu.memory_space<vmem>>, vector<1x32x32xf32>
    %298 = vector.shape_cast %297 : vector<1x32x32xf32> to vector<32x32xf32>
    %cst_165 = arith.constant dense<0.000000e+00> : vector<8x32xf32>
    %299 = tpu.matmul %296, %298, %cst_165 {dimension_numbers = #tpu.dot_dimension_numbers<[1], [0], [0], [1], [0, 0, 1, 1], [], []>} : vector<8x32xf32>, vector<32x32xf32>, vector<8x32xf32> -> vector<8x32xf32>
    %c2_166 = arith.constant 2 : index
    %c0_167 = arith.constant 0 : index
    %c0_168 = arith.constant 0 : index
    %300 = vector.load %arg12[%c2_166, %c0_167, %c0_168] : memref<4x1x32xf32, #tpu.memory_space<vmem>>, vector<1x1x32xf32>
    %301 = vector.shape_cast %300 : vector<1x1x32xf32> to vector<1x32xf32>
    %302 = vector.broadcast %301 : vector<1x32xf32> to vector<8x32xf32>
    %303 = arith.addf %299, %302 : vector<8x32xf32>
    %304 = arith.addf %303, %240 : vector<8x32xf32>
    %c2_169 = arith.constant 2 : index
    %c0_170 = arith.constant 0 : index
    %c0_171 = arith.constant 0 : index
    %305 = vector.load %arg13[%c2_169, %c0_170, %c0_171] : memref<4x1x32xf32, #tpu.memory_space<vmem>>, vector<1x1x32xf32>
    %306 = vector.shape_cast %305 : vector<1x1x32xf32> to vector<1x32xf32>
    %c2_172 = arith.constant 2 : index
    %c0_173 = arith.constant 0 : index
    %c0_174 = arith.constant 0 : index
    %307 = vector.load %arg14[%c2_172, %c0_173, %c0_174] : memref<4x1x32xf32, #tpu.memory_space<vmem>>, vector<1x1x32xf32>
    %308 = vector.shape_cast %307 : vector<1x1x32xf32> to vector<1x32xf32>
    %cst_175 = arith.constant dense<0.000000e+00> : vector<8xf32>
    %309 = vector.multi_reduction <add>, %304, %cst_175 [1] : vector<8x32xf32> to vector<8xf32>
    %310 = vector.shape_cast %309 : vector<8xf32> to vector<8x1xf32>
    %cst_176 = arith.constant 3.200000e+01 : f32
    %311 = vector.broadcast %cst_176 : f32 to vector<8x1xf32>
    %312 = arith.divf %310, %311 : vector<8x1xf32>
    %313 = vector.broadcast %312 : vector<8x1xf32> to vector<8x32xf32>
    %314 = arith.subf %304, %313 : vector<8x32xf32>
    %315 = arith.mulf %314, %314 : vector<8x32xf32>
    %cst_177 = arith.constant dense<0.000000e+00> : vector<8xf32>
    %316 = vector.multi_reduction <add>, %315, %cst_177 [1] : vector<8x32xf32> to vector<8xf32>
    %317 = vector.shape_cast %316 : vector<8xf32> to vector<8x1xf32>
    %cst_178 = arith.constant 3.200000e+01 : f32
    %318 = vector.broadcast %cst_178 : f32 to vector<8x1xf32>
    %319 = arith.divf %317, %318 : vector<8x1xf32>
    %320 = vector.broadcast %312 : vector<8x1xf32> to vector<8x32xf32>
    %321 = arith.subf %304, %320 : vector<8x32xf32>
    %cst_179 = arith.constant 9.99999997E-7 : f32
    %322 = vector.broadcast %cst_179 : f32 to vector<8x1xf32>
    %323 = arith.addf %319, %322 : vector<8x1xf32>
    %324 = math.rsqrt %323 : vector<8x1xf32>
    %325 = vector.broadcast %324 : vector<8x1xf32> to vector<8x32xf32>
    %326 = arith.mulf %321, %325 : vector<8x32xf32>
    %327 = vector.broadcast %306 : vector<1x32xf32> to vector<8x32xf32>
    %328 = arith.mulf %326, %327 : vector<8x32xf32>
    %329 = vector.broadcast %308 : vector<1x32xf32> to vector<8x32xf32>
    %330 = arith.addf %328, %329 : vector<8x32xf32>
    %c3 = arith.constant 3 : index
    %c0_180 = arith.constant 0 : index
    %c0_181 = arith.constant 0 : index
    %331 = vector.load %arg5[%c3, %c0_180, %c0_181] : memref<4x32x32xf32, #tpu.memory_space<vmem>>, vector<1x32x32xf32>
    %332 = vector.shape_cast %331 : vector<1x32x32xf32> to vector<32x32xf32>
    %cst_182 = arith.constant dense<0.000000e+00> : vector<8x32xf32>
    %333 = tpu.matmul %330, %332, %cst_182 {dimension_numbers = #tpu.dot_dimension_numbers<[1], [0], [0], [1], [0, 0, 1, 1], [], []>} : vector<8x32xf32>, vector<32x32xf32>, vector<8x32xf32> -> vector<8x32xf32>
    %c3_183 = arith.constant 3 : index
    %c0_184 = arith.constant 0 : index
    %c0_185 = arith.constant 0 : index
    %334 = vector.load %arg6[%c3_183, %c0_184, %c0_185] : memref<4x1x32xf32, #tpu.memory_space<vmem>>, vector<1x1x32xf32>
    %335 = vector.shape_cast %334 : vector<1x1x32xf32> to vector<1x32xf32>
    %336 = vector.broadcast %335 : vector<1x32xf32> to vector<8x32xf32>
    %337 = arith.addf %333, %336 : vector<8x32xf32>
    %c3_186 = arith.constant 3 : index
    %c0_187 = arith.constant 0 : index
    %c0_188 = arith.constant 0 : index
    %338 = vector.load %arg7[%c3_186, %c0_187, %c0_188] : memref<4x32x32xf32, #tpu.memory_space<vmem>>, vector<1x32x32xf32>
    %339 = vector.shape_cast %338 : vector<1x32x32xf32> to vector<32x32xf32>
    %cst_189 = arith.constant dense<0.000000e+00> : vector<8x32xf32>
    %340 = tpu.matmul %3, %339, %cst_189 {dimension_numbers = #tpu.dot_dimension_numbers<[1], [0], [0], [1], [0, 0, 1, 1], [], []>} : vector<8x32xf32>, vector<32x32xf32>, vector<8x32xf32> -> vector<8x32xf32>
    %c3_190 = arith.constant 3 : index
    %c0_191 = arith.constant 0 : index
    %c0_192 = arith.constant 0 : index
    %341 = vector.load %arg8[%c3_190, %c0_191, %c0_192] : memref<4x1x32xf32, #tpu.memory_space<vmem>>, vector<1x1x32xf32>
    %342 = vector.shape_cast %341 : vector<1x1x32xf32> to vector<1x32xf32>
    %343 = vector.broadcast %342 : vector<1x32xf32> to vector<8x32xf32>
    %344 = arith.addf %340, %343 : vector<8x32xf32>
    %c3_193 = arith.constant 3 : index
    %c0_194 = arith.constant 0 : index
    %c0_195 = arith.constant 0 : index
    %345 = vector.load %arg9[%c3_193, %c0_194, %c0_195] : memref<4x32x32xf32, #tpu.memory_space<vmem>>, vector<1x32x32xf32>
    %346 = vector.shape_cast %345 : vector<1x32x32xf32> to vector<32x32xf32>
    %cst_196 = arith.constant dense<0.000000e+00> : vector<8x32xf32>
    %347 = tpu.matmul %3, %346, %cst_196 {dimension_numbers = #tpu.dot_dimension_numbers<[1], [0], [0], [1], [0, 0, 1, 1], [], []>} : vector<8x32xf32>, vector<32x32xf32>, vector<8x32xf32> -> vector<8x32xf32>
    %c3_197 = arith.constant 3 : index
    %c0_198 = arith.constant 0 : index
    %c0_199 = arith.constant 0 : index
    %348 = vector.load %arg10[%c3_197, %c0_198, %c0_199] : memref<4x1x32xf32, #tpu.memory_space<vmem>>, vector<1x1x32xf32>
    %349 = vector.shape_cast %348 : vector<1x1x32xf32> to vector<1x32xf32>
    %350 = vector.broadcast %349 : vector<1x32xf32> to vector<8x32xf32>
    %351 = arith.addf %347, %350 : vector<8x32xf32>
    %352 = vector.extract_strided_slice %337 {offsets = [0, 0], sizes = [8, 16], strides = [1, 1]} : vector<8x32xf32> to vector<8x16xf32>
    %353 = vector.extract_strided_slice %344 {offsets = [0, 0], sizes = [8, 16], strides = [1, 1]} : vector<8x32xf32> to vector<8x16xf32>
    %354 = vector.extract_strided_slice %351 {offsets = [0, 0], sizes = [8, 16], strides = [1, 1]} : vector<8x32xf32> to vector<8x16xf32>
    %cst_200 = arith.constant dense<0.000000e+00> : vector<8x8xf32>
    %355 = tpu.matmul %352, %353, %cst_200 {dimension_numbers = #tpu.dot_dimension_numbers<[1], [1], [0], [0], [0, 0, 1, 0], [], []>} : vector<8x16xf32>, vector<8x16xf32>, vector<8x8xf32> -> vector<8x8xf32>
    %356 = vector.broadcast %17 : vector<1x8xf32> to vector<8x8xf32>
    %357 = arith.addf %355, %356 : vector<8x8xf32>
    %cst_201 = arith.constant dense<0xFF800000> : vector<8xf32>
    %358 = vector.multi_reduction <maximumf>, %357, %cst_201 [1] : vector<8x8xf32> to vector<8xf32>
    %359 = vector.shape_cast %358 : vector<8xf32> to vector<8x1xf32>
    %360 = vector.broadcast %359 : vector<8x1xf32> to vector<8x8xf32>
    %361 = arith.subf %357, %360 : vector<8x8xf32>
    %362 = math.exp %361 : vector<8x8xf32>
    %cst_202 = arith.constant dense<0.000000e+00> : vector<8xf32>
    %363 = vector.multi_reduction <add>, %362, %cst_202 [1] : vector<8x8xf32> to vector<8xf32>
    %364 = vector.shape_cast %363 : vector<8xf32> to vector<8x1xf32>
    %365 = tpu.reciprocal %364 {approx = true} : vector<8x1xf32> -> vector<8x1xf32>
    %366 = vector.broadcast %365 : vector<8x1xf32> to vector<8x8xf32>
    %367 = arith.mulf %362, %366 : vector<8x8xf32>
    %cst_203 = arith.constant dense<0.000000e+00> : vector<8x16xf32>
    %368 = tpu.matmul %367, %354, %cst_203 {dimension_numbers = #tpu.dot_dimension_numbers<[1], [0], [0], [1], [0, 0, 1, 1], [], []>} : vector<8x8xf32>, vector<8x16xf32>, vector<8x16xf32> -> vector<8x16xf32>
    %369 = vector.extract_strided_slice %337 {offsets = [0, 16], sizes = [8, 16], strides = [1, 1]} : vector<8x32xf32> to vector<8x16xf32>
    %370 = vector.extract_strided_slice %344 {offsets = [0, 16], sizes = [8, 16], strides = [1, 1]} : vector<8x32xf32> to vector<8x16xf32>
    %371 = vector.extract_strided_slice %351 {offsets = [0, 16], sizes = [8, 16], strides = [1, 1]} : vector<8x32xf32> to vector<8x16xf32>
    %cst_204 = arith.constant dense<0.000000e+00> : vector<8x8xf32>
    %372 = tpu.matmul %369, %370, %cst_204 {dimension_numbers = #tpu.dot_dimension_numbers<[1], [1], [0], [0], [0, 0, 1, 0], [], []>} : vector<8x16xf32>, vector<8x16xf32>, vector<8x8xf32> -> vector<8x8xf32>
    %373 = vector.broadcast %17 : vector<1x8xf32> to vector<8x8xf32>
    %374 = arith.addf %372, %373 : vector<8x8xf32>
    %cst_205 = arith.constant dense<0xFF800000> : vector<8xf32>
    %375 = vector.multi_reduction <maximumf>, %374, %cst_205 [1] : vector<8x8xf32> to vector<8xf32>
    %376 = vector.shape_cast %375 : vector<8xf32> to vector<8x1xf32>
    %377 = vector.broadcast %376 : vector<8x1xf32> to vector<8x8xf32>
    %378 = arith.subf %374, %377 : vector<8x8xf32>
    %379 = math.exp %378 : vector<8x8xf32>
    %cst_206 = arith.constant dense<0.000000e+00> : vector<8xf32>
    %380 = vector.multi_reduction <add>, %379, %cst_206 [1] : vector<8x8xf32> to vector<8xf32>
    %381 = vector.shape_cast %380 : vector<8xf32> to vector<8x1xf32>
    %382 = tpu.reciprocal %381 {approx = true} : vector<8x1xf32> -> vector<8x1xf32>
    %383 = vector.broadcast %382 : vector<8x1xf32> to vector<8x8xf32>
    %384 = arith.mulf %379, %383 : vector<8x8xf32>
    %cst_207 = arith.constant dense<0.000000e+00> : vector<8x16xf32>
    %385 = tpu.matmul %384, %371, %cst_207 {dimension_numbers = #tpu.dot_dimension_numbers<[1], [0], [0], [1], [0, 0, 1, 1], [], []>} : vector<8x8xf32>, vector<8x16xf32>, vector<8x16xf32> -> vector<8x16xf32>
    %386 = tpu.concatenate %368, %385 in 1 : vector<8x16xf32>, vector<8x16xf32> -> vector<8x32xf32>
    %c3_208 = arith.constant 3 : index
    %c0_209 = arith.constant 0 : index
    %c0_210 = arith.constant 0 : index
    %387 = vector.load %arg11[%c3_208, %c0_209, %c0_210] : memref<4x32x32xf32, #tpu.memory_space<vmem>>, vector<1x32x32xf32>
    %388 = vector.shape_cast %387 : vector<1x32x32xf32> to vector<32x32xf32>
    %cst_211 = arith.constant dense<0.000000e+00> : vector<8x32xf32>
    %389 = tpu.matmul %386, %388, %cst_211 {dimension_numbers = #tpu.dot_dimension_numbers<[1], [0], [0], [1], [0, 0, 1, 1], [], []>} : vector<8x32xf32>, vector<32x32xf32>, vector<8x32xf32> -> vector<8x32xf32>
    %c3_212 = arith.constant 3 : index
    %c0_213 = arith.constant 0 : index
    %c0_214 = arith.constant 0 : index
    %390 = vector.load %arg12[%c3_212, %c0_213, %c0_214] : memref<4x1x32xf32, #tpu.memory_space<vmem>>, vector<1x1x32xf32>
    %391 = vector.shape_cast %390 : vector<1x1x32xf32> to vector<1x32xf32>
    %392 = vector.broadcast %391 : vector<1x32xf32> to vector<8x32xf32>
    %393 = arith.addf %389, %392 : vector<8x32xf32>
    %394 = arith.addf %393, %330 : vector<8x32xf32>
    %c3_215 = arith.constant 3 : index
    %c0_216 = arith.constant 0 : index
    %c0_217 = arith.constant 0 : index
    %395 = vector.load %arg13[%c3_215, %c0_216, %c0_217] : memref<4x1x32xf32, #tpu.memory_space<vmem>>, vector<1x1x32xf32>
    %396 = vector.shape_cast %395 : vector<1x1x32xf32> to vector<1x32xf32>
    %c3_218 = arith.constant 3 : index
    %c0_219 = arith.constant 0 : index
    %c0_220 = arith.constant 0 : index
    %397 = vector.load %arg14[%c3_218, %c0_219, %c0_220] : memref<4x1x32xf32, #tpu.memory_space<vmem>>, vector<1x1x32xf32>
    %398 = vector.shape_cast %397 : vector<1x1x32xf32> to vector<1x32xf32>
    %cst_221 = arith.constant dense<0.000000e+00> : vector<8xf32>
    %399 = vector.multi_reduction <add>, %394, %cst_221 [1] : vector<8x32xf32> to vector<8xf32>
    %400 = vector.shape_cast %399 : vector<8xf32> to vector<8x1xf32>
    %cst_222 = arith.constant 3.200000e+01 : f32
    %401 = vector.broadcast %cst_222 : f32 to vector<8x1xf32>
    %402 = arith.divf %400, %401 : vector<8x1xf32>
    %403 = vector.broadcast %402 : vector<8x1xf32> to vector<8x32xf32>
    %404 = arith.subf %394, %403 : vector<8x32xf32>
    %405 = arith.mulf %404, %404 : vector<8x32xf32>
    %cst_223 = arith.constant dense<0.000000e+00> : vector<8xf32>
    %406 = vector.multi_reduction <add>, %405, %cst_223 [1] : vector<8x32xf32> to vector<8xf32>
    %407 = vector.shape_cast %406 : vector<8xf32> to vector<8x1xf32>
    %cst_224 = arith.constant 3.200000e+01 : f32
    %408 = vector.broadcast %cst_224 : f32 to vector<8x1xf32>
    %409 = arith.divf %407, %408 : vector<8x1xf32>
    %410 = vector.broadcast %402 : vector<8x1xf32> to vector<8x32xf32>
    %411 = arith.subf %394, %410 : vector<8x32xf32>
    %cst_225 = arith.constant 9.99999997E-7 : f32
    %412 = vector.broadcast %cst_225 : f32 to vector<8x1xf32>
    %413 = arith.addf %409, %412 : vector<8x1xf32>
    %414 = math.rsqrt %413 : vector<8x1xf32>
    %415 = vector.broadcast %414 : vector<8x1xf32> to vector<8x32xf32>
    %416 = arith.mulf %411, %415 : vector<8x32xf32>
    %417 = vector.broadcast %396 : vector<1x32xf32> to vector<8x32xf32>
    %418 = arith.mulf %416, %417 : vector<8x32xf32>
    %419 = vector.broadcast %398 : vector<1x32xf32> to vector<8x32xf32>
    %420 = arith.addf %418, %419 : vector<8x32xf32>
    %c1_226 = arith.constant 1 : index
    %c0_227 = arith.constant 0 : index
    %c0_228 = arith.constant 0 : index
    %421 = vector.load %arg15[%c1_226, %c0_227, %c0_228] : memref<2x32x64xf32, #tpu.memory_space<vmem>>, vector<1x32x64xf32>
    %422 = vector.shape_cast %421 : vector<1x32x64xf32> to vector<32x64xf32>
    %cst_229 = arith.constant dense<0.000000e+00> : vector<8x64xf32>
    %423 = tpu.matmul %420, %422, %cst_229 {dimension_numbers = #tpu.dot_dimension_numbers<[1], [0], [0], [1], [0, 0, 1, 1], [], []>} : vector<8x32xf32>, vector<32x64xf32>, vector<8x64xf32> -> vector<8x64xf32>
    %c1_230 = arith.constant 1 : index
    %c0_231 = arith.constant 0 : index
    %c0_232 = arith.constant 0 : index
    %424 = vector.load %arg16[%c1_230, %c0_231, %c0_232] : memref<2x1x64xf32, #tpu.memory_space<vmem>>, vector<1x1x64xf32>
    %425 = vector.shape_cast %424 : vector<1x1x64xf32> to vector<1x64xf32>
    %426 = vector.broadcast %425 : vector<1x64xf32> to vector<8x64xf32>
    %427 = arith.addf %423, %426 : vector<8x64xf32>
    %cst_233 = arith.constant 0.000000e+00 : f32
    %428 = vector.broadcast %cst_233 : f32 to vector<8x64xf32>
    %429 = arith.maximumf %427, %428 : vector<8x64xf32>
    %c1_234 = arith.constant 1 : index
    %c0_235 = arith.constant 0 : index
    %c0_236 = arith.constant 0 : index
    %430 = vector.load %arg17[%c1_234, %c0_235, %c0_236] : memref<2x64x32xf32, #tpu.memory_space<vmem>>, vector<1x64x32xf32>
    %431 = vector.shape_cast %430 : vector<1x64x32xf32> to vector<64x32xf32>
    %cst_237 = arith.constant dense<0.000000e+00> : vector<8x32xf32>
    %432 = tpu.matmul %429, %431, %cst_237 {dimension_numbers = #tpu.dot_dimension_numbers<[1], [0], [0], [1], [0, 0, 1, 1], [], []>} : vector<8x64xf32>, vector<64x32xf32>, vector<8x32xf32> -> vector<8x32xf32>
    %c1_238 = arith.constant 1 : index
    %c0_239 = arith.constant 0 : index
    %c0_240 = arith.constant 0 : index
    %433 = vector.load %arg18[%c1_238, %c0_239, %c0_240] : memref<2x1x32xf32, #tpu.memory_space<vmem>>, vector<1x1x32xf32>
    %434 = vector.shape_cast %433 : vector<1x1x32xf32> to vector<1x32xf32>
    %435 = vector.broadcast %434 : vector<1x32xf32> to vector<8x32xf32>
    %436 = arith.addf %432, %435 : vector<8x32xf32>
    %437 = arith.addf %436, %420 : vector<8x32xf32>
    %c1_241 = arith.constant 1 : index
    %c0_242 = arith.constant 0 : index
    %c0_243 = arith.constant 0 : index
    %438 = vector.load %arg19[%c1_241, %c0_242, %c0_243] : memref<2x1x32xf32, #tpu.memory_space<vmem>>, vector<1x1x32xf32>
    %439 = vector.shape_cast %438 : vector<1x1x32xf32> to vector<1x32xf32>
    %c1_244 = arith.constant 1 : index
    %c0_245 = arith.constant 0 : index
    %c0_246 = arith.constant 0 : index
    %440 = vector.load %arg20[%c1_244, %c0_245, %c0_246] : memref<2x1x32xf32, #tpu.memory_space<vmem>>, vector<1x1x32xf32>
    %441 = vector.shape_cast %440 : vector<1x1x32xf32> to vector<1x32xf32>
    %cst_247 = arith.constant dense<0.000000e+00> : vector<8xf32>
    %442 = vector.multi_reduction <add>, %437, %cst_247 [1] : vector<8x32xf32> to vector<8xf32>
    %443 = vector.shape_cast %442 : vector<8xf32> to vector<8x1xf32>
    %cst_248 = arith.constant 3.200000e+01 : f32
    %444 = vector.broadcast %cst_248 : f32 to vector<8x1xf32>
    %445 = arith.divf %443, %444 : vector<8x1xf32>
    %446 = vector.broadcast %445 : vector<8x1xf32> to vector<8x32xf32>
    %447 = arith.subf %437, %446 : vector<8x32xf32>
    %448 = arith.mulf %447, %447 : vector<8x32xf32>
    %cst_249 = arith.constant dense<0.000000e+00> : vector<8xf32>
    %449 = vector.multi_reduction <add>, %448, %cst_249 [1] : vector<8x32xf32> to vector<8xf32>
    %450 = vector.shape_cast %449 : vector<8xf32> to vector<8x1xf32>
    %cst_250 = arith.constant 3.200000e+01 : f32
    %451 = vector.broadcast %cst_250 : f32 to vector<8x1xf32>
    %452 = arith.divf %450, %451 : vector<8x1xf32>
    %453 = vector.broadcast %445 : vector<8x1xf32> to vector<8x32xf32>
    %454 = arith.subf %437, %453 : vector<8x32xf32>
    %cst_251 = arith.constant 9.99999997E-7 : f32
    %455 = vector.broadcast %cst_251 : f32 to vector<8x1xf32>
    %456 = arith.addf %452, %455 : vector<8x1xf32>
    %457 = math.rsqrt %456 : vector<8x1xf32>
    %458 = vector.broadcast %457 : vector<8x1xf32> to vector<8x32xf32>
    %459 = arith.mulf %454, %458 : vector<8x32xf32>
    %460 = vector.broadcast %439 : vector<1x32xf32> to vector<8x32xf32>
    %461 = arith.mulf %459, %460 : vector<8x32xf32>
    %462 = vector.broadcast %441 : vector<1x32xf32> to vector<8x32xf32>
    %463 = arith.addf %461, %462 : vector<8x32xf32>
    %c0_252 = arith.constant 0 : index
    %c0_253 = arith.constant 0 : index
    %c0_254 = arith.constant 0 : index
    %464 = vector.load %arg21[%c0_252, %c0_253, %c0_254] : memref<1x8x32xf32, #tpu.memory_space<vmem>>, vector<1x8x32xf32>
    %465 = vector.shape_cast %464 : vector<1x8x32xf32> to vector<8x32xf32>
    %466 = vector.shape_cast %463 : vector<8x32xf32> to vector<1x8x32xf32>
    tpu.vector_store %arg21[%c0_252, %c0_253, %c0_254], %466 {strides = array<i32>} : memref<1x8x32xf32, #tpu.memory_space<vmem>>, vector<1x8x32xf32>,
    return
  }
  func.func @transform_0(%arg0: i32) -> (i32, i32, i32) {
    %c0_i32 = arith.constant 0 : i32
    %c0_i32_0 = arith.constant 0 : i32
    %c0_i32_1 = arith.constant 0 : i32
    return %arg0, %c0_i32, %c0_i32_0 : i32, i32, i32
  }
  func.func @transform_1(%arg0: i32) -> (i32, i32, i32) {
    %c0_i32 = arith.constant 0 : i32
    %c0_i32_0 = arith.constant 0 : i32
    %c0_i32_1 = arith.constant 0 : i32
    return %arg0, %c0_i32, %c0_i32_0 : i32, i32, i32
  }
  func.func @transform_2(%arg0: i32) -> (i32, i32, i32) {
    %c0_i32 = arith.constant 0 : i32
    %c0_i32_0 = arith.constant 0 : i32
    %c0_i32_1 = arith.constant 0 : i32
    return %arg0, %c0_i32, %c0_i32_0 : i32, i32, i32
  }
  func.func @transform_3(%arg0: i32) -> (i32, i32, i32) {
    %c0_i32 = arith.constant 0 : i32
    %c0_i32_0 = arith.constant 0 : i32
    %c0_i32_1 = arith.constant 0 : i32
    return %arg0, %c0_i32, %c0_i32_0 : i32, i32, i32
  }
  func.func @transform_4(%arg0: i32) -> (i32, i32, i32) {
    %c0_i32 = arith.constant 0 : i32
    %c0_i32_0 = arith.constant 0 : i32
    %c0_i32_1 = arith.constant 0 : i32
    %c0_i32_2 = arith.constant 0 : i32
    return %c0_i32, %c0_i32_0, %c0_i32_1 : i32, i32, i32
  }
  func.func @transform_5(%arg0: i32) -> (i32, i32, i32) {
    %c0_i32 = arith.constant 0 : i32
    %c0_i32_0 = arith.constant 0 : i32
    %c0_i32_1 = arith.constant 0 : i32
    %c0_i32_2 = arith.constant 0 : i32
    return %c0_i32, %c0_i32_0, %c0_i32_1 : i32, i32, i32
  }
  func.func @transform_6(%arg0: i32) -> (i32, i32, i32) {
    %c0_i32 = arith.constant 0 : i32
    %c0_i32_0 = arith.constant 0 : i32
    %c0_i32_1 = arith.constant 0 : i32
    %c0_i32_2 = arith.constant 0 : i32
    return %c0_i32, %c0_i32_0, %c0_i32_1 : i32, i32, i32
  }
  func.func @transform_7(%arg0: i32) -> (i32, i32, i32) {
    %c0_i32 = arith.constant 0 : i32
    %c0_i32_0 = arith.constant 0 : i32
    %c0_i32_1 = arith.constant 0 : i32
    %c0_i32_2 = arith.constant 0 : i32
    return %c0_i32, %c0_i32_0, %c0_i32_1 : i32, i32, i32
  }
  func.func @transform_8(%arg0: i32) -> (i32, i32, i32) {
    %c0_i32 = arith.constant 0 : i32
    %c0_i32_0 = arith.constant 0 : i32
    %c0_i32_1 = arith.constant 0 : i32
    %c0_i32_2 = arith.constant 0 : i32
    return %c0_i32, %c0_i32_0, %c0_i32_1 : i32, i32, i32
  }
  func.func @transform_9(%arg0: i32) -> (i32, i32, i32) {
    %c0_i32 = arith.constant 0 : i32
    %c0_i32_0 = arith.constant 0 : i32
    %c0_i32_1 = arith.constant 0 : i32
    %c0_i32_2 = arith.constant 0 : i32
    return %c0_i32, %c0_i32_0, %c0_i32_1 : i32, i32, i32
  }
  func.func @transform_10(%arg0: i32) -> (i32, i32, i32) {
    %c0_i32 = arith.constant 0 : i32
    %c0_i32_0 = arith.constant 0 : i32
    %c0_i32_1 = arith.constant 0 : i32
    %c0_i32_2 = arith.constant 0 : i32
    return %c0_i32, %c0_i32_0, %c0_i32_1 : i32, i32, i32
  }
  func.func @transform_11(%arg0: i32) -> (i32, i32, i32) {
    %c0_i32 = arith.constant 0 : i32
    %c0_i32_0 = arith.constant 0 : i32
    %c0_i32_1 = arith.constant 0 : i32
    %c0_i32_2 = arith.constant 0 : i32
    return %c0_i32, %c0_i32_0, %c0_i32_1 : i32, i32, i32
  }
  func.func @transform_12(%arg0: i32) -> (i32, i32, i32) {
    %c0_i32 = arith.constant 0 : i32
    %c0_i32_0 = arith.constant 0 : i32
    %c0_i32_1 = arith.constant 0 : i32
    %c0_i32_2 = arith.constant 0 : i32
    return %c0_i32, %c0_i32_0, %c0_i32_1 : i32, i32, i32
  }
  func.func @transform_13(%arg0: i32) -> (i32, i32, i32) {
    %c0_i32 = arith.constant 0 : i32
    %c0_i32_0 = arith.constant 0 : i32
    %c0_i32_1 = arith.constant 0 : i32
    %c0_i32_2 = arith.constant 0 : i32
    return %c0_i32, %c0_i32_0, %c0_i32_1 : i32, i32, i32
  }
  func.func @transform_14(%arg0: i32) -> (i32, i32, i32) {
    %c0_i32 = arith.constant 0 : i32
    %c0_i32_0 = arith.constant 0 : i32
    %c0_i32_1 = arith.constant 0 : i32
    %c0_i32_2 = arith.constant 0 : i32
    return %c0_i32, %c0_i32_0, %c0_i32_1 : i32, i32, i32
  }
  func.func @transform_15(%arg0: i32) -> (i32, i32, i32) {
    %c0_i32 = arith.constant 0 : i32
    %c0_i32_0 = arith.constant 0 : i32
    %c0_i32_1 = arith.constant 0 : i32
    %c0_i32_2 = arith.constant 0 : i32
    return %c0_i32, %c0_i32_0, %c0_i32_1 : i32, i32, i32
  }
  func.func @transform_16(%arg0: i32) -> (i32, i32, i32) {
    %c0_i32 = arith.constant 0 : i32
    %c0_i32_0 = arith.constant 0 : i32
    %c0_i32_1 = arith.constant 0 : i32
    %c0_i32_2 = arith.constant 0 : i32
    return %c0_i32, %c0_i32_0, %c0_i32_1 : i32, i32, i32
  }
  func.func @transform_17(%arg0: i32) -> (i32, i32, i32) {
    %c0_i32 = arith.constant 0 : i32
    %c0_i32_0 = arith.constant 0 : i32
    %c0_i32_1 = arith.constant 0 : i32
    %c0_i32_2 = arith.constant 0 : i32
    return %c0_i32, %c0_i32_0, %c0_i32_1 : i32, i32, i32
  }
  func.func @transform_18(%arg0: i32) -> (i32, i32, i32) {
    %c0_i32 = arith.constant 0 : i32
    %c0_i32_0 = arith.constant 0 : i32
    %c0_i32_1 = arith.constant 0 : i32
    %c0_i32_2 = arith.constant 0 : i32
    return %c0_i32, %c0_i32_0, %c0_i32_1 : i32, i32, i32
  }
  func.func @transform_19(%arg0: i32) -> (i32, i32, i32) {
    %c0_i32 = arith.constant 0 : i32
    %c0_i32_0 = arith.constant 0 : i32
    %c0_i32_1 = arith.constant 0 : i32
    %c0_i32_2 = arith.constant 0 : i32
    return %c0_i32, %c0_i32_0, %c0_i32_1 : i32, i32, i32
  }
  func.func @transform_20(%arg0: i32) -> (i32, i32, i32) {
    %c0_i32 = arith.constant 0 : i32
    %c0_i32_0 = arith.constant 0 : i32
    %c0_i32_1 = arith.constant 0 : i32
    return %arg0, %c0_i32, %c0_i32_0 : i32, i32, i32
  }
}

</mosaic_0001>

<bundles_post_ra>
// kernel: tpu_custom_call.1
= control target key start
LH: loop header
LB: loop body
LE: loop exit
PB: predicated region body
PF: predicated region fallthrough
CT: control target
= control target key end

     0   :  { %s6247_s0 = inlined_call_operand.hbm [shape: f32[2,8,32], index: 0, kind: input, shape index: {}]   ;;  %s6248_s1 = inlined_call_operand.hbm [shape: f32[2,8,32], index: 1, kind: input, shape index: {}]   ;;  %s6249_s2 = inlined_call_operand.vmem [shape: s32[2,1,8], index: 2, kind: input, shape index: {}]   ;;  %s6250_s3 = inlined_call_operand.hbm [shape: s32[2,1,8], index: 3, kind: input, shape index: {}]   ;;  %s6251_s4 = inlined_call_operand.vmem [shape: f32[4,32,32], index: 4, kind: input, shape index: {}]   ;;  %s6252_s5 = inlined_call_operand.vmem [shape: f32[4,1,32], index: 5, kind: input, shape index: {}]   ;;  %s6253_s6 = inlined_call_operand.hbm [shape: f32[4,32,32], index: 6, kind: input, shape index: {}]   ;;  %s6254_s7 = inlined_call_operand.vmem [shape: f32[4,1,32], index: 7, kind: input, shape index: {}]   ;;  %s6255_s8 = inlined_call_operand.hbm [shape: f32[4,32,32], index: 8, kind: input, shape index: {}]   ;;  %s6256_s9 = inlined_call_operand.vmem [shape: f32[4,1,32], index: 9, kind: input, shape index: {}]   ;;  %s6257_s10 = inlined_call_operand.hbm [shape: f32[4,32,32], index: 10, kind: input, shape index: {}]   ;;  %s6258_s11 = inlined_call_operand.vmem [shape: f32[4,1,32], index: 11, kind: input, shape index: {}]   ;;  %s6259_s12 = inlined_call_operand.vmem [shape: f32[4,1,32], index: 12, kind: input, shape index: {}]   ;;  %s6260_s13 = inlined_call_operand.vmem [shape: f32[4,1,32], index: 13, kind: input, shape index: {}]   ;;  %s6261_s14 = inlined_call_operand.vmem [shape: f32[2,32,64], index: 14, kind: input, shape index: {}]   ;;  %s6262_s15 = inlined_call_operand.vmem [shape: f32[2,1,64], index: 15, kind: input, shape index: {}]   ;;  %s6263_s16 = inlined_call_operand.vmem [shape: f32[2,64,32], index: 16, kind: input, shape index: {}]   ;;  %s6264_s17 = inlined_call_operand.vmem [shape: f32[2,1,32], index: 17, kind: input, shape index: {}]   ;;  %s6265_s18 = inlined_call_operand.vmem [shape: f32[2,1,32], index: 18, kind: input, shape index: {}]   ;;  %s6266_s19 = inlined_call_operand.vmem [shape: f32[2,1,32], index: 19, kind: input, shape index: {}]   ;;  %s6267_s20 = inlined_call_operand.hbm [shape: f32[2,8,32], index: 20, kind: output, shape index: {}]  }
   0x1   :  { %6310 = sst [smem:[#allocation25_spill]] %s6247_s0 }
   0x2   :  { %6311 = sst [smem:[#allocation26_spill]] %s6248_s1 }
   0x3   :  { %6312 = sst [smem:[#allocation27_spill]] %s6249_s2 }
   0x4   :  { %6313 = sst [smem:[#allocation28_spill]] %s6250_s3 }
   0x5   :  { %6314 = sst [smem:[#allocation29_spill]] %s6251_s4 }
   0x6   :  { %6315 = sst [smem:[#allocation30_spill]] %s6253_s6 }
   0x7   :  { %6316 = sst [smem:[#allocation31_spill]] %s6260_s13 }
   0x8   :  { %6317 = sst [smem:[#allocation32_spill]] %s6261_s14 }
   0x9   :  { %6318 = sst [smem:[#allocation33_spill]] %s6262_s15 }
   0xa   :  { %6319 = sst [smem:[#allocation34_spill]] %s6263_s16 }
   0xb   :  { %6320 = sst [smem:[#allocation35_spill]] %s6264_s17 }
   0xc   :  { %6321 = sst [smem:[#allocation36_spill]] %s6265_s18 }
   0xd   :  { %6322 = sst [smem:[#allocation37_spill]] %s6266_s19 }
   0xe   :  { %6323 = sst [smem:[#allocation38_spill]] %s6267_s20 }
   0xf   :  { %25 = vsyncpa [#allocation3], 0 }
  0x10   :  { %27 = vsyncpa [#allocation3 + $0x1], 0 }
  0x11   :  { %28 = vsyncpa [#allocation6], 0 }
  0x12   :  { %30 = vsyncpa [#allocation6 + $0x1], 0 }
  0x13   :  { %31 = vsyncpa [#allocation9], 0 }
  0x14   :  { %32 = vsyncpa [#allocation12], 0 }
  0x15   :  { %33 = vsyncpa [#allocation4], 0 }
  0x16   :  { %35 = vsyncpa [#allocation4 + $0x1], 0  ;;  %s5411_s1 = smov 0   ;;  %s5413_s22 = smov 0  }
  0x17   :  { %s5415_s23 = smov 0   ;;  %s5417_s24 = smov 0  }
  0x18 LB: > { %6324 = sst [smem:[#allocation19_spill]] %s5278_s1  ;;  %s5432_s2 = sadd.s32 4294967295, %s5290_s24   ;;  %s5290_s24 = sphi %s5417_s24, %s6376_s24   ;;  %s5286_s23 = sphi %s5415_s23, %s6378_s23   ;;  %s5282_s22 = sphi %s5413_s22, %s6380_s22   ;;  %s5278_s1 = sphi %s5411_s1, %s6379_s1  }
  0x19   : > { %6325 = sst [smem:[#allocation20_spill]] %s5286_s23  ;;  %s4168_s25 = sadd.s32 4294967294, %s5290_s24  }
  0x1a   : > { %p61_p0 = scmp.ne.s32.totalorder %s5282_s22, %s5278_s1  ;;  %p6278_p1 = scmp.eq.s32.totalorder %s5432_s2, 0 }
  0x1b   : > { %p505_p3 = scmp.eq.s32.totalorder %s4168_s25, 1  ;;  %p4169_p5 = scmp.ge.s32.totalorder %s5290_s24, 1 }
  0x1c   : > { %p5441_p4 = por %p6278_p1, %p61_p0  ;;  %p512_p7 = scmp.lt.s32.totalorder %s5290_s24, 3 }
  0x1d   : > { %p5446_p6 = por %p505_p3, %p61_p0  ;;  %s5292_s28 = smov [#allocation8]  }
  0x1e   : > { %s6326_s3 = scalar_select %p5441_p4, 1, 0 }
  0x1f   : > { %s6327_s26 = scalar_select %p5446_p6, 1, 0 }
  0x20   : > { %p5451_p8 = pnand %p4169_p5, %p512_p7  ;;  %s530_s4 = sshll.u32 %s5292_s28, 4  ;;  %s5455_s4 = int_to_ptr.vmem [resolvable:$true] %s530_s4 }
  0x21   : > { %6328 = sst [smem:[#allocation21_spill]] %s6327_s26  ;;  %s5467_s30 = sadd.s32 1, %s5290_s24  }
  0x22   : > { %s6329_s27 = scalar_select %p5451_p8, 1, 0 }
  0x23   : > { %p4920_p9 = pneg %p5451_p8  ;;  %6331 = sst [smem:[#allocation22_spill]] %s5467_s30 }
  0x24   : > { %s48_s0 = sadd.s32 1, %s5286_s23  ;;  %s45_s21 = ssub.s32 %s5290_s24, %s5467_s30 }
  0x25   : > { %p5462_p11 = pnand %p4920_p9, %p6278_p1  ;;  %s6332_s6 = sld [smem:[#allocation30_spill]] }
  0x27   : > { %s6330_s29 = scalar_select %p5462_p11, 1, 0 }
  0x28   : > { %p5480_p13 = pneg %p5462_p11 }
  0x2a   : > { %s6333_s19 = scalar_select %p5480_p13, 1, 0 }
  0x2b   : > { %s5038_s28 = scalar_lea.hbm %s6332_s6, 2048 }
  0x2c   : > { %p5039_p12 = scmp.ne.s32.totalorder %s6332_s6, %s5038_s28  ;;  %p5045_p5 = scmp.lt.u32.totalorder %s5038_s28, %s6332_s6 }
  0x2e   : > { %p5041_p0 = pnand %p5480_p13, %p5039_p12 }
  0x30   : > { %p5042_p3 = pneg %p5041_p0 }
  0x32   : > { %p5047_p7 = pnand %p5045_p5, %p5042_p3 }
  0x34   : > { %5050 = shalt.err (!%p5047_p7)
}
  0x35   : > { %s5051_s20 = scalar_lea.vmem %s5455_s4, 2048  ;;  %p5059_p2 = scmp.lt.s32.totalorder %s5455_s4, %s5455_s4 }
  0x36   : > { %p5052_p9 = scmp.ne.s32.totalorder %s5455_s4, %s5051_s20  ;;  %p5060_p6 = scmp.lt.s32.totalorder %s5051_s20, %s5051_s20 }
  0x38   : > { %p5054_p10 = pnand %p5052_p9, %p5480_p13  ;;  %p5061_p12 = por %p5060_p6, %p5059_p2 }
  0x3a   : > { %p5055_p1 = pneg %p5054_p10 }
  0x3c   : > { %p5062_p0 = pnand %p5061_p12, %p5055_p1 }
  0x3e   : > { %5065 = shalt.err (!%p5062_p0)
}
  0x3f   : > { %s6282_s1 = smov 128   ;;  %s6284_s17 = smov 8  }
  0x40   : > { %4923 = dma.hbm_to_vmem [thread:$0]  (!%p5462_p11), %s6332_s6, 2048, %s5455_s4, [#allocation9], %s6282_s1, %s6282_s1, %s6284_s17  }
  0x41   : > { %p46_p1 = scmp.eq.s32.totalorder %s45_s21, 0  ;;  %p55_p2 = scmp.ne.s32.totalorder %s5286_s23, %s5282_s22 }
  0x42   : > { %p56_p6 = scmp.eq.s32.totalorder %s5290_s24, 0  ;;  %p4947_p10 = scmp.lt.s32.totalorder %s5290_s24, 2 }
  0x43   : > { %s5509_s25 = scalar_select %p46_p1, %s5286_s23, %s48_s0  }
  0x44   : > { %p57_p3 = por %p56_p6, %p55_p2  ;;  %p6335_p5 = scmp.eq.s32.totalorder %s5432_s2, 1 }
  0x45   : > { %6334 = sst [smem:[#allocation23_spill]] %s5509_s25  ;;  %s5518_s20 = sand.u32 1, %s5286_s23  }
  0x46   : > { %p5513_p7 = por %p6335_p5, %p55_p2  ;;  %s6290_s30 = sshll.u32 %s5290_s24, 7 }
  0x47   : > { %s6289_s15 = sshll.u32 %s5518_s20, 3  ;;  %p5522_p9 = pnand %p4947_p10, %p57_p3 }
  0x48   : > { %s6336_s28 = scalar_select %p5513_p7, 1, 0 }
  0x49   : > { %s6338_s4 = scalar_select %p5522_p9, 1, 0 }
  0x4a   : > { %6337 = sst [smem:[#allocation24_spill]] %s6336_s28  ;;  %s621_s21 = sand.u32 1, %s5290_s24  }
  0x4b   : > { %s6339_s26 = sld [smem:[#allocation26_spill]]  ;;  %s625_s17 = scalar_lea.vmem [#allocation5], %s6289_s15 }
  0x4c   : > { %s632_s6 = sshll.u32 %s625_s17, 4  ;;  %s5538_s25 = scalar_lea.sflag [#allocation6], %s621_s21  ;;  %s5536_s6 = int_to_ptr.vmem [resolvable:$true] %s632_s6 }
  0x4d   : > { %p5544_p0 = pneg %p5522_p9 }
  0x4f   : > { %s6340_s28 = scalar_select %p5544_p0, 1, 0 }
  0x51   : > { %s5532_s1 = scalar_lea.hbm %s6339_s26, %s6290_s30  ;;  %s5071_s15 = scalar_lea.hbm %s6339_s26, 256 }
  0x52   : > { %s5066_s23 = scalar_lea.hbm %s5532_s1, 128  ;;  %p5072_p6 = scmp.lt.u32.totalorder %s5532_s1, %s6339_s26 }
  0x53   : > { %p5067_p12 = scmp.ne.s32.totalorder %s5532_s1, %s5066_s23  ;;  %p5073_p10 = scmp.lt.u32.totalorder %s5071_s15, %s5066_s23 }
  0x54   : > { %p5075_p5 = scmp.lt.u32.totalorder %s5066_s23, %s5532_s1 }
  0x55   : > { %p5069_p1 = pnand %p5544_p0, %p5067_p12  ;;  %p5074_p3 = por %p5073_p10, %p5072_p6 }
  0x57   : > { %p5070_p2 = pneg %p5069_p1  ;;  %p5076_p7 = por %p5075_p5, %p5074_p3 }
  0x59   : > { %p5077_p4 = pnand %p5076_p7, %p5070_p2 }
  0x5b   : > { %5080 = shalt.err (!%p5077_p4)
}
  0x5c   : > { %s5081_s21 = scalar_lea.vmem %s5536_s6, 128  ;;  %s5295_s0 = smov [#allocation5]  }
  0x5d   : > { %p5082_p12 = scmp.ne.s32.totalorder %s5536_s6, %s5081_s21  ;;  %s5086_s18 = sshll.u32 %s5295_s0, 4  ;;  %s5087_s18 = int_to_ptr.vmem [resolvable:$false] %s5086_s18 }
  0x5e   : > { %s5088_s30 = scalar_lea.vmem %s5087_s18, 256  ;;  %p5089_p11 = scmp.lt.s32.totalorder %s5536_s6, %s5087_s18 }
  0x5f   : > { %p5084_p1 = pnand %p5082_p12, %p5544_p0  ;;  %p5090_p13 = scmp.lt.s32.totalorder %s5088_s30, %s5081_s21 }
  0x61   : > { %p5085_p8 = pneg %p5084_p1  ;;  %p5091_p6 = por %p5090_p13, %p5089_p11 }
  0x63   : > { %p5092_p10 = pnand %p5091_p6, %p5085_p8 }
  0x65   : > { %5095 = shalt.err (!%p5092_p10)
}
  0x66   : > { %4936 = dma.hbm_to_vmem [thread:$0]  (!%p5522_p9), %s5532_s1, 128, %s5536_s6, %s5538_s25  }
  0x67   : > { %s5296_s15 = smov [#allocation10]   ;;  %s5297_s17 = smov [#allocation11]  }
  0x68   : > { %s546_s23 = sshll.u32 %s5296_s15, 4  ;;  %s562_s26 = sshll.u32 %s5297_s17, 4  ;;  %s547_s23 = int_to_ptr.vmem [resolvable:$true] %s546_s23  ;;  %s563_s26 = int_to_ptr.vmem [resolvable:$true] %s562_s26 }
  0x69   : > { %s5096_s18 = scalar_lea.hbm %s6255_s8, 2048  ;;  %p6341_p8 = scmp.ne.s32.totalorder %s6333_s19, 0 }
  0x6a   : > { %p5097_p4 = scmp.ne.s32.totalorder %s6255_s8, %s5096_s18  ;;  %p5103_p7 = scmp.lt.u32.totalorder %s5096_s18, %s6255_s8 }
  0x6c   : > { %p5099_p11 = pnand %p5097_p4, %p6341_p8 }
  0x6e   : > { %p5100_p13 = pneg %p5099_p11 }
  0x70   : > { %p5105_p2 = pnand %p5103_p7, %p5100_p13 }
  0x72   : > { %5108 = shalt.err (!%p5105_p2)
}
  0x73   : > { %s5109_s6 = scalar_lea.vmem %s547_s23, 2048  ;;  %p5117_p1 = scmp.lt.s32.totalorder %s547_s23, %s547_s23 }
  0x74   : > { %p5110_p3 = scmp.ne.s32.totalorder %s547_s23, %s5109_s6  ;;  %p5118_p6 = scmp.lt.s32.totalorder %s5109_s6, %s5109_s6 }
  0x76   : > { %p5112_p5 = pnand %p5110_p3, %p6341_p8  ;;  %p5119_p10 = por %p5118_p6, %p5117_p1 }
  0x78   : > { %p5113_p12 = pneg %p5112_p5 }
  0x7a   : > { %p5120_p9 = pnand %p5119_p10, %p5113_p12 }
  0x7c   : > { %5123 = shalt.err (!%p5120_p9)
}
  0x7d   : > { %p6342_p4 = scmp.ne.s32.totalorder %s6330_s29, 0  ;;  %s6343_s16 = smov 8  }
  0x7e   : > { %s6344_s1 = smov 128   ;;  %s5124_s0 = scalar_lea.hbm %s6257_s10, 2048 }
  0x7f   : > { %4926 = dma.hbm_to_vmem [thread:$0]  (!%p6342_p4), %s6255_s8, 2048, %s547_s23, [#allocation9], %s6344_s1, %s6344_s1, %s6343_s16  }
  0x80   : > { %p5125_p11 = scmp.ne.s32.totalorder %s6257_s10, %s5124_s0  ;;  %p5131_p7 = scmp.lt.u32.totalorder %s5124_s0, %s6257_s10 }
  0x82   : > { %p5127_p9 = pnand %p5125_p11, %p6341_p8 }
  0x84   : > { %p5128_p13 = pneg %p5127_p9 }
  0x86   : > { %p5133_p2 = pnand %p5131_p7, %p5128_p13 }
  0x88   : > { %5136 = shalt.err (!%p5133_p2)
}
  0x89   : > { %s5137_s13 = scalar_lea.vmem %s563_s26, 2048  ;;  %p5145_p1 = scmp.lt.s32.totalorder %s563_s26, %s563_s26 }
  0x8a   : > { %p5138_p3 = scmp.ne.s32.totalorder %s563_s26, %s5137_s13  ;;  %p5146_p6 = scmp.lt.s32.totalorder %s5137_s13, %s5137_s13 }
  0x8c   : > { %p5140_p5 = pnand %p5138_p3, %p6341_p8  ;;  %p5147_p10 = por %p5146_p6, %p5145_p1 }
  0x8e   : > { %p5141_p12 = pneg %p5140_p5 }
  0x90   : > { %p5148_p0 = pnand %p5147_p10, %p5141_p12 }
  0x92   : > { %5151 = shalt.err (!%p5148_p0)
}
  0x93   : > { %4929 = dma.hbm_to_vmem [thread:$0]  (!%p6342_p4), %s6257_s10, 2048, %s563_s26, [#allocation12], %s6344_s1, %s6344_s1, %s6343_s16  }
  0x94   : > { %s6345_s19 = sshll.u32 %s5290_s24, 7  ;;  %s6346_s0 = sld [smem:[#allocation25_spill]] }
  0x95   : > { %s6347_s21 = sshll.u32 %s5518_s20, 3  ;;  %s4178_s6 = sshll.u32 %s5290_s24, 4 }
  0x96   : > { %s607_s29 = scalar_lea.vmem [#allocation2], %s6347_s21  ;;  %s604_s13 = scalar_lea.sflag [#allocation3], %s5518_s20 }
  0x97   : > { %s614_s30 = sshll.u32 %s607_s29, 4  ;;  %p6348_p8 = scmp.ne.s32.totalorder %s6340_s28, 0  ;;  %s5619_s30 = int_to_ptr.vmem [resolvable:$true] %s614_s30 }
  0x9a   : > { %s5615_s18 = scalar_lea.hbm %s6346_s0, %s6345_s19  ;;  %s5157_s1 = scalar_lea.hbm %s6346_s0, 256 }
  0x9b   : > { %s5152_s23 = scalar_lea.hbm %s5615_s18, 128  ;;  %p5158_p9 = scmp.lt.u32.totalorder %s5615_s18, %s6346_s0 }
  0x9c   : > { %p5153_p0 = scmp.ne.s32.totalorder %s5615_s18, %s5152_s23  ;;  %p5159_p13 = scmp.lt.u32.totalorder %s5157_s1, %s5152_s23 }
  0x9d   : > { %p5161_p2 = scmp.lt.u32.totalorder %s5152_s23, %s5615_s18 }
  0x9e   : > { %p5155_p4 = pnand %p5153_p0, %p6348_p8  ;;  %p5160_p7 = por %p5159_p13, %p5158_p9 }
  0xa0   : > { %p5156_p11 = pneg %p5155_p4  ;;  %p5162_p3 = por %p5161_p2, %p5160_p7 }
  0xa2   : > { %p5163_p5 = pnand %p5162_p3, %p5156_p11 }
  0xa4   : > { %5166 = shalt.err (!%p5163_p5)
}
  0xa5   : > { %s5167_s15 = scalar_lea.vmem %s5619_s30, 128  ;;  %s5298_s17 = smov [#allocation2]  }
  0xa6   : > { %p5168_p12 = scmp.ne.s32.totalorder %s5619_s30, %s5167_s15  ;;  %s5172_s21 = sshll.u32 %s5298_s17, 4  ;;  %s5173_s21 = int_to_ptr.vmem [resolvable:$false] %s5172_s21 }
  0xa7   : > { %s5174_s29 = scalar_lea.vmem %s5173_s21, 256  ;;  %p5175_p10 = scmp.lt.s32.totalorder %s5619_s30, %s5173_s21 }
  0xa8   : > { %p5170_p1 = pnand %p5168_p12, %p6348_p8  ;;  %p5176_p0 = scmp.lt.s32.totalorder %s5174_s29, %s5167_s15 }
  0xaa   : > { %p5171_p6 = pneg %p5170_p1  ;;  %p5177_p4 = por %p5176_p0, %p5175_p10 }
  0xac   : > { %p5178_p9 = pnand %p5177_p4, %p5171_p6 }
  0xae   : > { %5181 = shalt.err (!%p5178_p9)
}
  0xaf   : > { %p6349_p11 = scmp.ne.s32.totalorder %s6338_s4, 0  ;;  %s6350_s16 = sld [smem:[#allocation28_spill]] }
  0xb0   : > { %s648_s14 = scalar_lea.vmem [#allocation7], %s5518_s20 }
  0xb1   : > { %4933 = dma.hbm_to_vmem [thread:$0]  (!%p6349_p11), %s5615_s18, 128, %s5619_s30, %s604_s13  }
  0xb2   : > { %s655_s19 = sshll.u32 %s648_s14, 4  ;;  %s656_s19 = int_to_ptr.vmem [resolvable:$true] %s655_s19 }
  0xb5   : > { %s5649_s1 = scalar_lea.hbm %s6350_s16, %s4178_s6  ;;  %s5187_s30 = scalar_lea.hbm %s6350_s16, 32 }
  0xb6   : > { %s5182_s15 = scalar_lea.hbm %s5649_s1, 16  ;;  %p5188_p3 = scmp.lt.u32.totalorder %s5649_s1, %s6350_s16 }
  0xb7   : > { %p5183_p13 = scmp.ne.s32.totalorder %s5649_s1, %s5182_s15  ;;  %p5189_p5 = scmp.lt.u32.totalorder %s5187_s30, %s5182_s15 }
  0xb8   : > { %p5191_p1 = scmp.lt.u32.totalorder %s5182_s15, %s5649_s1 }
  0xb9   : > { %p5185_p7 = pnand %p5183_p13, %p6348_p8  ;;  %p5190_p12 = por %p5189_p5, %p5188_p3 }
  0xbb   : > { %p5186_p2 = pneg %p5185_p7  ;;  %p5192_p6 = por %p5191_p1, %p5190_p12 }
  0xbd   : > { %p5193_p10 = pnand %p5192_p6, %p5186_p2 }
  0xbf   : > { %5196 = shalt.err (!%p5193_p10)
}
  0xc0   : > { %s5197_s20 = scalar_lea.vmem %s656_s19, 16  ;;  %s5299_s6 = smov [#allocation7]  }
  0xc1   : > { %p5198_p0 = scmp.ne.s32.totalorder %s656_s19, %s5197_s20  ;;  %s5202_s29 = sshll.u32 %s5299_s6, 4  ;;  %s5203_s29 = int_to_ptr.vmem [resolvable:$false] %s5202_s29 }
  0xc2   : > { %s5204_s23 = scalar_lea.vmem %s5203_s29, 32  ;;  %p5205_p13 = scmp.lt.s32.totalorder %s656_s19, %s5203_s29 }
  0xc3   : > { %p5200_p4 = pnand %p5198_p0, %p6348_p8  ;;  %p5206_p7 = scmp.lt.s32.totalorder %s5204_s23, %s5197_s20 }
  0xc5   : > { %p5201_p9 = pneg %p5200_p4  ;;  %p5207_p11 = por %p5206_p7, %p5205_p13 }
  0xc7   : > { %p5208_p3 = pnand %p5207_p11, %p5201_p9 }
  0xc9   : > { %5211 = shalt.err (!%p5208_p3)
}
  0xca   : > { %p6351_p5 = scmp.ne.s32.totalorder %s6338_s4, 0  ;;  %p6352_p2 = scmp.ne.s32.totalorder %s6329_s27, 0 }
  0xcb   : > { %s5673_s28 = sand.u32 (!%p6352_p2), 1, %s5282_s22   ;;  %p6353_p8 = scmp.ne.s32.totalorder (!%p6352_p2), %s6326_s3, 0 }
  0xcc   : > { %4939 = dma.hbm_to_vmem [thread:$0]  (!%p6351_p5), %s5649_s1, 16, %s656_s19, %s5538_s25  }
  0xcd   : > { %664 = sbr.rel (%p6352_p2) target bundleno = 8622 (0x21ae), region = 100  ;;  %s5676_s26 = sshll.u32 (!%p6352_p2), %s5673_s28, 3 }
  0xce   : > { %s667_s14 = scalar_lea.sflag (!%p6352_p2), [#allocation3], %s5673_s28  ;;  %s670_s15 = scalar_lea.vmem (!%p6352_p2), [#allocation2], %s5676_s26 }
  0xd4   : > { %5257 = dma.done.wait (%p6353_p8), %s667_s14, 128  }
  0xd5   : > { %5259 = vsyncadd (%p6353_p8), %s667_s14, 4294967168  ;;  %s675_s27 = sand.u32 1, %s5432_s2   ;;  %s679_s4 = scalar_lea.vmem [#allocation5], %s5676_s26 }
  0xd6   : > { %s676_s25 = scalar_lea.sflag [#allocation6], %s675_s27 }
  0xd7   : > { %5261 = dma.done.wait (%p6353_p8), %s676_s25, 144  }
  0xd8   : > { %5263 = vsyncadd (%p6353_p8), %s676_s25, 4294967152  ;;  %s687_s1 = scalar_lea.vmem [#allocation7], %s5673_s28  ;;  %p6354_p11 = scmp.eq.s32.totalorder %s5432_s2, 0 }
  0xda   : > { %5265 = dma.done.wait (%p6354_p11), [#allocation9], 4096   ;;  %p6355_p12 = pmov %p6354_p11 }
  0xdb   : > { %p6356_p1 = pmov %p6354_p11 }
  0xdc   : > { %5267 = vsyncadd (%p6355_p12), [#allocation9], 4294963200 }
  0xdd   : > { %5269 = dma.done.wait (%p6356_p1), [#allocation12], 2048   ;;  %p6357_p6 = pmov %p6356_p1 }
  0xde   : > { %v5300_v0 = vmov 0.0|0.0   ;;  %vm5301_vm0 = vmmov 0   ;;  %v5302_v1 = vmov 0.0   ;;  %s6358_s17 = sld [smem:[#allocation29_spill]]  ;;  %v864_v8 = vld [vmem:[#allocation8] sm:$0xff]  ;;  %v865_v9 = vld [vmem:[#allocation8 + $0x8] sm:$0xff]  ;;  %v1027_v35 = vlaneseq }
  0xdf   : > { %5271 = vsyncadd (%p6357_p6), [#allocation12], 4294965248  ;;  %4768 = vmatprep.subr.bf16.mxu1 %v5300_v0  ;;  %4460 = vmatprep.mubr.msk.f32.mxu1 %vm5301_vm0, %v5302_v1  ;;  %v5720_v10 = vld [vmem:[%s670_s15] sm:$0xff]  ;;  %vm790_vm1 = vcmask 261120   ;;  %v4775_v11 = vpack.c.bf16 %v865_v9, %v864_v8  ;;  %v866_v12 = vld [vmem:[#allocation8 + $0x10] sm:$0xff]  ;;  %vm1032_vm2 = vcmask 130048  }
  0xe0   : > { %4780 = vmatprep.subr.bf16.mxu0 %v5300_v0  ;;  %4482 = vmatprep.mubr.msk.f32.mxu0 %vm5301_vm0, %v5302_v1  ;;  %v867_v13 = vld [vmem:[#allocation8 + $0x18] sm:$0xff]  ;;  %v945_v15 = vld [vmem:[#allocation10] sm:$0xff]  ;;  %v946_v16 = vld [vmem:[#allocation10 + $0x8] sm:$0xff]  ;;  %s5303_s27 = smov 112   ;;  %p768_p10 = scmp.lt.s32.totalorder %s5432_s2, 1  ;;  %v5766_v37 = vshrl.u32 %v1027_v35, 7 }
  0xe1   : > { %v4778_v14 = vpack.c.bf16 %v867_v13, %v866_v12  ;;  %v947_v17 = vld [vmem:[#allocation10 + $0x10] sm:$0xff]  ;;  %v4781_v18 = vpack.c.bf16 %v946_v16, %v945_v15  ;;  %v948_v19 = vld [vmem:[#allocation10 + $0x18] sm:$0xff]  ;;  %s6359_s13 = sld [smem:[#allocation27_spill]]  ;;  %vm1109_vm4 = vcmask 64512   ;;  %s6306_s20 = smov 16   ;;  %vm2290_vm6 = vcmask 523264  }
  0xe2   : > { %v4784_v20 = vpack.c.bf16 %v948_v19, %v947_v17  ;;  %v4188_v23 = vld [vmem:[%s6254_s7] ss:$0 sm:$0xff]  ;;  %s769_s19 = scalar_select %p768_p10, %s5432_s2, 1  ;;  %v1029_v38 = vsub.s32 0, %v5766_v37 }
  0xe3   : > { %4782 = vmatpush3.bf16.msra.mxu0 %v4781_v18  ;;  %v4186_v25 = vld [vmem:[%s6252_s5] ss:$0 sm:$0xff]  ;;  %s6360_s29 = sld [smem:[#allocation31_spill]]  ;;  %s6366_s6 = sld [smem:[#allocation36_spill]] }
  0xe4   : > { %v779_v2 = vld [vmem:[%s6358_s17] sm:$0xff]  ;;  %v780_v3 = vld [vmem:[%s6358_s17 + $0x8] sm:$0xff]  ;;  %v781_v4 = vld [vmem:[%s6358_s17 + $0x10] sm:$0xff]  ;;  %4783 = vmatprep.subr.bf16.mxu0 %v5300_v0  ;;  %s6367_s15 = sld [smem:[#allocation37_spill]]  ;;  %s6369_s14 = sld [smem:[#allocation24_spill]] }
  0xe5   : > { %v4769_v5 = vpack.c.bf16 %v780_v3, %v779_v2  ;;  %v782_v6 = vld [vmem:[%s6358_s17 + $0x18] sm:$0xff]  ;;  %v4190_v29 = vld [vmem:[%s6256_s9] ss:$0 sm:$0xff]  ;;  %s767_s30 = scalar_lea.vmem [#allocation13], %s5676_s26  ;;  %s4007_s25 = scalar_lea.sflag [#allocation4], %s5673_s28 }
  0xe6   : > { %v4772_v7 = vpack.c.bf16 %v782_v6, %v781_v4  ;;  %v1365_v4 = vld [vmem:[#allocation11] sm:$0xff]  ;;  %v1367_v6 = vld [vmem:[#allocation11 + $0x10] sm:$0xff]  ;;  %v1368_v8 = vld [vmem:[#allocation11 + $0x18] sm:$0xff] }
  0xe7   : > { %4770 = vmatpush3.bf16.msra.mxu1 %v4769_v5  ;;  %4785 = vmatpush3.bf16.msra.mxu0 %v4784_v20  ;;  %s770_s21 = scalar_lea.vmem %s6359_s13, %s769_s19  ;;  %v1366_v5 = vld [vmem:[#allocation11 + $0x8] sm:$0xff]  ;;  %v4790_v9 = vpack.c.bf16 %v1368_v8, %v1367_v6  ;;  %v4198_v17 = vld [vmem:[%s6258_s11] ss:$0 sm:$0xff]  ;;  %s6361_s13 = sld [smem:[#allocation32_spill]] }
  0xe8   : > { %4771 = vmatprep.subr.bf16.mxu1 %v5300_v0  ;;  %4495 = vmatprep.subr.mxu0 %v5302_v1  ;;  %v773_v36 = vld [vmem:[%s770_s21] sm:$0x1]  ;;  %s6362_s19 = sld [smem:[#allocation34_spill]]  ;;  %s4020_s21 = sshll.u32 %s767_s30, 4  ;;  %s6204_s21 = int_to_ptr.vmem [resolvable:$true] %s4020_s21 }
  0xe9   : > { %vm774_vm3 = vcmp.eq.s32.totalorder %v773_v36, 0  ;;  %v5811_v36 = vld [vmem:[%s679_s4] sm:$0xff]  ;;  %v776_v6 = vld [vmem:[%s687_s1] sm:$0x1]  ;;  %s6363_s1 = sld [smem:[#allocation33_spill]]  ;;  %s6365_s4 = sld [smem:[#allocation35_spill]] }
  0xea   : > { %4483 = vmatmul.mubr.msk.f32.vlgmr.msra.gmra.mrb[0].mxu0 %vm790_vm1, %v5720_v10  ;;  %v775_v39 = vsel %vm774_vm3, -1e+09, %v5302_v1  ;;  %vm777_vm5 = vcmp.eq.s32.totalorder %v776_v6, 0  ;;  %p6371_p4 = scmp.ne.s32.totalorder %s6369_s14, 0 }
  0xeb   : > { %4773 = vmatpush3.bf16.msra.mxu1 %v4772_v7  ;;  %4497 = vmatprep.mubr.msk.f32.mxu0 %vm5301_vm0, %v5302_v1  ;;  %v5772_v40 = vrot.slane %v775_v39, %v1029_v38  ;;  %v4787_v7 = vpack.c.bf16 %v1366_v5, %v1365_v4  ;;  %v4204_v39 = vld [vmem:[%s6358_s17 + $0x30] sm:$0xff] }
  0xec   : > { %4774 = vmatprep.subr.bf16.mxu1 %v5300_v0 }
  0xee   : > { %4461 = vmatmul.mubr.msk.f32.vlgmr.msra.gmra.mrb[0].mxu1 %vm790_vm1, %v5720_v10 }
  0xef   : > { %4776 = vmatpush3.bf16.msra.mxu1 %v4775_v11  ;;  %4471 = vmatprep.mubr.msk.f32.mxu1 %vm5301_vm0, %v5302_v1  ;;  %s6364_s3 = smov %s6363_s1 }
  0xf0   : > { %4777 = vmatprep.subr.bf16.mxu1 %v5300_v0 }
  0xf3   : > { %4779 = vmatpush3.bf16.msra.mxu1 %v4778_v14 }
  0xf4   : > { %4485 = vmatprep.subr.mxu1 %v5302_v1 }
  0xf6   : > { %4472 = vmatmul.mubr.msk.f32.vlgmr.msra.gmra.mrb[2].mxu1 %vm790_vm1, %v5720_v10 }
  0xf7   : > { %4487 = vmatprep.mubr.msk.f32.mxu1 %vm5301_vm0, %v5302_v1 }
 0x1bd   : > { %v1022_v30 = vpop.f32.mrb[0].mxu0 }
 0x1be   : > { %v1023_v31 = vadd.f32 %v4190_v29, %v1022_v30  ;;  %v4484_v32 = vpop.f32.mrb[1].mxu0  ;;  %v1568_v29 = vld [vmem:[#allocation8 + $0x28] sm:$0xff] }
 0x1bf   : > { %v1570_v32 = vld [vmem:[#allocation8 + $0x38] sm:$0xff] }
 0x1c1   : > { %v860_v21 = vpop.f32.mrb[0].mxu1 }
 0x1c2   : > { %v4462_v22 = vpop.f32.mrb[1].mxu1  ;;  %v861_v28 = vadd.f32 %v4186_v25, %v860_v21 }
 0x1c9   : > { %v941_v24 = vpop.f32.mrb[2].mxu1 }
 0x1ca   : > { %v942_v26 = vadd.f32 %v4188_v23, %v941_v24  ;;  %v4473_v27 = vpop.f32.mrb[3].mxu1 }
 0x1cc   : > { %1196 = vrot.lane.b32.xlu0 %v942_v26, %s5303_s27  ;;  %4486 = vmatpush3.xpose.msk.msra.mxu1 %vm1032_vm2, %v942_v26 }
 0x1cd   : > { %4490 = vmatprep.subr.mxu1 %v5302_v1 }
 0x1cf   : > { %4488 = vmatmul.mubr.msk.f32.vlgmr.msra.gmra.mrb[4].mxu1 %vm1032_vm2, %v861_v28 }
 0x1d0   : > { %1194 = vrot.lane.b32.xlu0 %v861_v28, %s5303_s27  ;;  %4492 = vmatprep.mubr.msk.f32.mxu1 %vm5301_vm0, %v5302_v1  ;;  %v1567_v28 = vld [vmem:[#allocation8 + $0x20] sm:$0xff] }
 0x1d1   : > { %4491 = vmatpush3.msra.mxu1 %v1023_v31  ;;  %v4799_v30 = vpack.c.bf16 %v1568_v29, %v1567_v28 }
 0x1d2   : > { %4500 = vmatprep.subr.mxu1 %v5302_v1 }
 0x23e   : > { %v1197_v33 = vpop.permute.xlu0 %1196 }
 0x23f   : > { %4496 = vmatpush3.xpose.msk.msra.mxu0 %vm1032_vm2, %v1197_v33  ;;  %v4202_v33 = vld [vmem:[%s6358_s17 + $0x20] sm:$0xff] }
 0x240   : > { %4786 = vmatprep.subr.bf16.mxu0 %v5300_v0 }
 0x242   : > { %v1195_v34 = vpop.permute.xlu0 %1194 }
 0x243   : > { %4498 = vmatmul.mubr.msk.f32.vlgmr.msra.gmra.mrb[2].mxu0 %vm1032_vm2, %v1195_v34  ;;  %v4203_v34 = vld [vmem:[%s6358_s17 + $0x28] sm:$0xff] }
 0x244   : > { %4513 = vmatprep.mubr.msk.f32.mxu0 %vm5301_vm0, %v5302_v1  ;;  %4788 = vmatpush3.bf16.msra.mxu0 %v4787_v7  ;;  %v4793_v35 = vpack.c.bf16 %v4203_v34, %v4202_v33  ;;  %v778_v7 = vsel %vm777_vm5, -1e+09, %v5302_v1 }
 0x245   : > { %4789 = vmatprep.subr.bf16.mxu0 %v5300_v0  ;;  %v5866_v8 = vrot.slane %v778_v7, %v1029_v38  ;;  %v2275_v7 = vld [vmem:[%s6362_s19] sm:$0xff] }
 0x248   : > { %4791 = vmatpush3.bf16.msra.mxu0 %v4790_v9 }
 0x249   : > { %4798 = vmatprep.subr.bf16.mxu0 %v5300_v0 }
 0x2a2   : > { %v1105_v41 = vpop.f32.mrb[4].mxu1 }
 0x2a3   : > { %v1106_v42 = vadd.f32 %v1105_v41, %v5772_v40  ;;  %v4489_v43 = vpop.f32.mrb[5].mxu1  ;;  %v4205_v41 = vld [vmem:[%s6358_s17 + $0x38] sm:$0xff] }
 0x2a5   : > { %v1110_v44 = vsel %vm1109_vm4, %v1106_v42, -inf }
 0x2a6   : > { %1111 = vmax.xlane.f32.xlu1 %v1110_v44 }
 0x316   : > { %v1268_v45 = vpop.f32.mrb[2].mxu0 }
 0x317   : > { %v1269_v46 = vadd.f32 %v1268_v45, %v5772_v40  ;;  %v4499_v47 = vpop.f32.mrb[3].mxu0 }
 0x318   : > { %v4200_v47 = vld [vmem:[%s6259_s12] ss:$0 sm:$0xff] }
 0x319   : > { %v1272_v48 = vsel %vm1109_vm4, %v1269_v46, -inf }
 0x31a   : > { %1273 = vmax.xlane.f32.xlu1 %v1272_v48 }
 0x333   : > { %v1112_v49 = vpop.xlane.xlu1 %1111 }
 0x334   : > { %v1113_v50 = vsub.f32 %v1106_v42, %v1112_v49  ;;  %v4796_v42 = vpack.c.bf16 %v4205_v41, %v4204_v39  ;;  %v4201_v49 = vld [vmem:[%s6360_s29] ss:$0 sm:$0xff]  ;;  %v2073_v39 = vld [vmem:[#allocation11 + $0x20] sm:$0xff]  ;;  %v2074_v41 = vld [vmem:[#allocation11 + $0x28] sm:$0xff] }
 0x336   : > { %v1114_v51 = vmul.f32 1.442695, %v1113_v50 }
 0x338   : > { %4994 = vpow2.f32 %v1114_v51 }
 0x342   : > { %v4995_v52 = vpop.eup %4994 }
 0x343   : > { %v1116_v53 = vsel %vm1109_vm4, %v4995_v52, 0.0 }
 0x344   : > { %1117 = vadd.xlane.f32.xlu0 %v1116_v53 }
 0x3a7   : > { %v1274_v54 = vpop.xlane.xlu1 %1273 }
 0x3a8   : > { %v1275_v55 = vsub.f32 %v1269_v46, %v1274_v54 }
 0x3aa   : > { %v1276_v56 = vmul.f32 1.442695, %v1275_v55 }
 0x3ac   : > { %4996 = vpow2.f32 %v1276_v56  ;;  %v4207_v56 = vld [vmem:[%s6252_s5 + $0x1] ss:$0 sm:$0xff] }
 0x3b6   : > { %v4997_v57 = vpop.eup %4996 }
 0x3b7   : > { %v1278_v58 = vsel %vm1109_vm4, %v4997_v57, 0.0 }
 0x3b8   : > { %1279 = vadd.xlane.f32.xlu1 %v1278_v58 }
 0x3c9   : > { %1284 = vrot.lane.b32.xlu1 %v1023_v31, %s5303_s27  ;;  %v1569_v31 = vld [vmem:[#allocation8 + $0x30] sm:$0xff] }
 0x3d1   : > { %v1118_v59 = vpop.xlane.xlu0 %1117 }
 0x3d2   : > { %4998 = vrcp.f32 %v1118_v59 }
 0x3dc   : > { %v4999_v60 = vpop.eup %4998 }
 0x3dd   : > { %v1120_v61 = vmul.f32 %v4999_v60, %v4995_v52  ;;  %v4210_v52 = vld [vmem:[%s6254_s7 + $0x1] ss:$0 sm:$0xff] }
 0x3df   : > { %4493 = vmatmul.mubr.msk.f32.vlgmr.msra.gmra.mrb[6].mxu1 %vm1109_vm4, %v1120_v61  ;;  %v1653_v61 = vld [vmem:[#allocation10 + $0x20] sm:$0xff] }
 0x3e0   : > { %4502 = vmatprep.mubr.msk.f32.mxu1 %vm5301_vm0, %v5302_v1 }
 0x445   : > { %v1280_v62 = vpop.xlane.xlu1 %1279 }
 0x446   : > { %5000 = vrcp.f32 %v1280_v62  ;;  %v1654_v62 = vld [vmem:[#allocation10 + $0x28] sm:$0xff] }
 0x449   : > { %v1285_v63 = vpop.permute.xlu1 %1284 }
 0x44a   : > { %4501 = vmatpush3.msra.mxu1 %v1285_v63  ;;  %v1655_v63 = vld [vmem:[#allocation10 + $0x30] sm:$0xff] }
 0x44b   : > { %4792 = vmatprep.subr.bf16.mxu1 %v5300_v0 }
 0x450   : > { %v5001_v2 = vpop.eup %5000 }
 0x451   : > { %v1282_v3 = vmul.f32 %v5001_v2, %v4997_v57  ;;  %v4805_v2 = vpack.c.bf16 %v1654_v62, %v1653_v61 }
 0x453   : > { %4503 = vmatmul.mubr.msk.f32.vlgmr.msra.gmra.mrb[8].mxu1 %vm1109_vm4, %v1282_v3  ;;  %v1656_v3 = vld [vmem:[#allocation10 + $0x38] sm:$0xff] }
 0x454   : > { %4524 = vmatprep.mubr.msk.f32.mxu1 %vm5301_vm0, %v5302_v1  ;;  %4794 = vmatpush3.bf16.msra.mxu1 %v4793_v35  ;;  %v4808_v4 = vpack.c.bf16 %v1656_v3, %v1655_v63  ;;  %v2191_v3 = vld [vmem:[%s6361_s13 + $0x8] sm:$0xff] }
 0x455   : > { %4795 = vmatprep.subr.bf16.mxu1 %v5300_v0 }
 0x458   : > { %4797 = vmatpush3.bf16.msra.mxu1 %v4796_v42  ;;  %v2075_v42 = vld [vmem:[#allocation11 + $0x30] sm:$0xff] }
 0x459   : > { %4804 = vmatprep.subr.bf16.mxu1 %v5300_v0 }
 0x4b2   : > { %v1190_v11 = vpop.f32.mrb[6].mxu1 }
 0x4b3   : > { %v4494_v12 = vpop.f32.mrb[7].mxu1 }
 0x526   : > { %v1356_v13 = vpop.f32.mrb[8].mxu1 }
 0x527   : > { %1361 = vrot.lane.b32.xlu1 %v1356_v13, %s6306_s20  ;;  %v4504_v14 = vpop.f32.mrb[9].mxu1 }
 0x599   : > { %v1362_v15 = vpop.permute.xlu1 %1361 }
 0x59a   : > { %v1364_v16 = vsel %vm1032_vm2, %v1190_v11, %v1362_v15 }
 0x59b   : > { %4514 = vmatmul.mubr.msk.f32.vlgmr.msra.gmra.mrb[4].mxu0 %vm790_vm1, %v1364_v16 }
 0x59c   : > { %4535 = vmatprep.mubr.msk.f32.mxu0 %vm5301_vm0, %v5302_v1  ;;  %4800 = vmatpush3.bf16.msra.mxu0 %v4799_v30 }
 0x59d   : > { %4801 = vmatprep.subr.bf16.mxu0 %v5300_v0 }
 0x66e   : > { %v1445_v18 = vpop.f32.mrb[4].mxu0 }
 0x66f   : > { %v1446_v19 = vadd.f32 %v4198_v17, %v1445_v18  ;;  %v4515_v20 = vpop.f32.mrb[5].mxu0 }
 0x671   : > { %v1449_v21 = vadd.f32 %v1446_v19, %v5720_v10  ;;  %v4802_v10 = vpack.c.bf16 %v1570_v32, %v1569_v31 }
 0x673   : > { %v1452_v22 = vsel %vm790_vm1, %v1449_v21, 0.0  ;;  %4803 = vmatpush3.bf16.msra.mxu0 %v4802_v10 }
 0x674   : > { %1453 = vadd.xlane.f32.xlu1 %v1452_v22  ;;  %4549 = vmatprep.subr.mxu0 %v5302_v1  ;;  %v4213_v22 = vld [vmem:[%s6256_s9 + $0x1] ss:$0 sm:$0xff] }
 0x676   : > { %4536 = vmatmul.mubr.msk.f32.vlgmr.msra.gmra.mrb[6].mxu0 %vm790_vm1, %v5811_v36 }
 0x677   : > { %4551 = vmatprep.mubr.msk.f32.mxu0 %vm5301_vm0, %v5302_v1 }
 0x701   : > { %v1454_v23 = vpop.xlane.xlu1 %1453 }
 0x702   : > { %v1456_v24 = vmul.f32 0.03125, %v1454_v23 }
 0x704   : > { %v1457_v25 = vsub.f32 %v1449_v21, %v1456_v24 }
 0x706   : > { %v1458_v26 = vmul.f32 %v1457_v25, %v1457_v25 }
 0x708   : > { %v1459_v27 = vsel %vm790_vm1, %v1458_v26, 0.0 }
 0x709   : > { %1460 = vadd.xlane.f32.xlu0 %v1459_v27 }
 0x749   : > { %v1648_v53 = vpop.f32.mrb[6].mxu0 }
 0x74a   : > { %v1649_v54 = vadd.f32 %v4210_v52, %v1648_v53  ;;  %v4537_v55 = vpop.f32.mrb[7].mxu0  ;;  %v4222_v53 = vld [vmem:[%s6258_s11 + $0x1] ss:$0 sm:$0xff] }
 0x74c   : > { %1903 = vrot.lane.b32.xlu0 %v1649_v54, %s5303_s27  ;;  %4550 = vmatpush3.xpose.msk.msra.mxu0 %vm1032_vm2, %v1649_v54 }
 0x74d   : > { %4559 = vmatprep.subr.mxu0 %v5302_v1 }
 0x796   : > { %v1461_v43 = vpop.xlane.xlu0 %1460 }
 0x797   : > { %v1462_v44 = vmul.f32 0.03125, %v1461_v43  ;;  %v4811_v43 = vpack.c.bf16 %v2074_v41, %v2073_v39 }
 0x799   : > { %v1463_v45 = vadd.f32 1e-06, %v1462_v44  ;;  %v2076_v44 = vld [vmem:[#allocation11 + $0x38] sm:$0xff] }
 0x79b   : > { %5002 = vrsqrt.f32 %v1463_v45  ;;  %v4814_v45 = vpack.c.bf16 %v2076_v44, %v2075_v42 }
 0x7a5   : > { %v5003_v46 = vpop.eup %5002 }
 0x7a6   : > { %v1465_v48 = vmul.f32 %v5003_v46, %v1457_v25 }
 0x7a8   : > { %v1472_v50 = vmul.f32 %v4200_v47, %v1465_v48 }
 0x7aa   : > { %v5831_v51 = vadd.f32 %v4201_v49, %v1472_v50 }
 0x7ac   : > { %4525 = vmatmul.mubr.msk.f32.vlgmr.msra.gmra.mrb[10].mxu1 %vm790_vm1, %v5831_v51 }
 0x7ad   : > { %4546 = vmatprep.mubr.msk.f32.mxu1 %vm5301_vm0, %v5302_v1  ;;  %4806 = vmatpush3.bf16.msra.mxu1 %v4805_v2  ;;  %v2190_v2 = vld [vmem:[%s6361_s13] sm:$0xff] }
 0x7ae   : > { %4807 = vmatprep.subr.bf16.mxu1 %v5300_v0 }
 0x7b1   : > { %4809 = vmatpush3.bf16.msra.mxu1 %v4808_v4  ;;  %v4817_v4 = vpack.c.bf16 %v2191_v3, %v2190_v2  ;;  %v4232_v2 = vld [vmem:[%s6366_s6] ss:$0 sm:$0xff] }
 0x7b2   : > { %4554 = vmatprep.subr.mxu1 %v5302_v1 }
 0x7b4   : > { %4547 = vmatmul.mubr.msk.f32.vlgmr.msra.gmra.mrb[12].mxu1 %vm790_vm1, %v5811_v36 }
 0x7b5   : > { %4556 = vmatprep.mubr.msk.f32.mxu1 %vm5301_vm0, %v5302_v1 }
 0x7be   : > { %v1904_v60 = vpop.permute.xlu0 %1903 }
 0x87f   : > { %v1562_v57 = vpop.f32.mrb[10].mxu1 }
 0x880   : > { %v1563_v58 = vadd.f32 %v4207_v56, %v1562_v57  ;;  %v4526_v59 = vpop.f32.mrb[11].mxu1 }
 0x882   : > { %1901 = vrot.lane.b32.xlu0 %v1563_v58, %s5303_s27  ;;  %4552 = vmatmul.mubr.msk.f32.vlgmr.msra.gmra.mrb[8].mxu0 %vm1032_vm2, %v1563_v58 }
 0x883   : > { %4560 = vmatpush3.xpose.msk.msra.mxu0 %vm1032_vm2, %v1904_v60  ;;  %4561 = vmatprep.mubr.msk.f32.mxu0 %vm5301_vm0, %v5302_v1 }
 0x884   : > { %4810 = vmatprep.subr.bf16.mxu0 %v5300_v0 }
 0x887   : > { %v1731_v21 = vpop.f32.mrb[12].mxu1 }
 0x888   : > { %v4548_v23 = vpop.f32.mrb[13].mxu1  ;;  %v1732_v24 = vadd.f32 %v4213_v22, %v1731_v21  ;;  %v4227_v22 = vld [vmem:[%s6360_s29 + $0x1] ss:$0 sm:$0xff] }
 0x88a   : > { %4555 = vmatpush3.msra.mxu1 %v1732_v24 }
 0x88b   : > { %4564 = vmatprep.subr.mxu1 %v5302_v1 }
 0x8f4   : > { %v1902_v5 = vpop.permute.xlu0 %1901 }
 0x8f5   : > { %4562 = vmatmul.mubr.msk.f32.vlgmr.msra.gmra.mrb[10].mxu0 %vm1032_vm2, %v1902_v5  ;;  %v2193_v5 = vld [vmem:[%s6361_s13 + $0x18] sm:$0xff] }
 0x8f6   : > { %4577 = vmatprep.mubr.msk.f32.mxu0 %vm5301_vm0, %v5302_v1  ;;  %4812 = vmatpush3.bf16.msra.mxu0 %v4811_v43 }
 0x8f7   : > { %4813 = vmatprep.subr.bf16.mxu0 %v5300_v0 }
 0x8fa   : > { %4815 = vmatpush3.bf16.msra.mxu0 %v4814_v45 }
 0x8fb   : > { %4822 = vmatprep.subr.bf16.mxu0 %v5300_v0 }
 0x955   : > { %v1813_v9 = vpop.f32.mrb[8].mxu0 }
 0x956   : > { %v1814_v11 = vadd.f32 %v1813_v9, %v5866_v8  ;;  %v4553_v12 = vpop.f32.mrb[9].mxu0  ;;  %v2276_v9 = vld [vmem:[%s6362_s19 + $0x8] sm:$0xff] }
 0x957   : > { %v4823_v12 = vpack.c.bf16 %v2276_v9, %v2275_v7 }
 0x958   : > { %v1817_v13 = vsel %vm1109_vm4, %v1814_v11, -inf }
 0x959   : > { %1818 = vmax.xlane.f32.xlu0 %v1817_v13  ;;  %v2278_v13 = vld [vmem:[%s6362_s19 + $0x18] sm:$0xff] }
 0x9c8   : > { %v1975_v14 = vpop.f32.mrb[10].mxu0 }
 0x9c9   : > { %v1976_v15 = vadd.f32 %v1975_v14, %v5866_v8  ;;  %v4563_v16 = vpop.f32.mrb[11].mxu0 }
 0x9ca   : > { %v2280_v16 = vld [vmem:[%s6362_s19 + $0x28] sm:$0xff] }
 0x9cb   : > { %v1979_v17 = vsel %vm1109_vm4, %v1976_v15, -inf }
 0x9cc   : > { %1980 = vmax.xlane.f32.xlu1 %v1979_v17 }
 0x9e6   : > { %v1819_v18 = vpop.xlane.xlu0 %1818 }
 0x9e7   : > { %v1820_v19 = vsub.f32 %v1814_v11, %v1819_v18  ;;  %v2277_v11 = vld [vmem:[%s6362_s19 + $0x10] sm:$0xff] }
 0x9e8   : > { %v4826_v14 = vpack.c.bf16 %v2278_v13, %v2277_v11  ;;  %v2483_v11 = vld [vmem:[#allocation8 + $0x50] sm:$0xff] }
 0x9e9   : > { %v1821_v20 = vmul.f32 1.442695, %v1820_v19 }
 0x9eb   : > { %5004 = vpow2.f32 %v1821_v20 }
 0x9f5   : > { %v5005_v37 = vpop.eup %5004 }
 0x9f6   : > { %v1823_v38 = vsel %vm1109_vm4, %v5005_v37, 0.0 }
 0x9f7   : > { %1824 = vadd.xlane.f32.xlu1 %v1823_v38  ;;  %v4226_v38 = vld [vmem:[%s6259_s12 + $0x1] ss:$0 sm:$0xff] }
 0xa59   : > { %v1981_v25 = vpop.xlane.xlu1 %1980 }
 0xa5a   : > { %v1982_v26 = vsub.f32 %v1976_v15, %v1981_v25  ;;  %v2279_v15 = vld [vmem:[%s6362_s19 + $0x20] sm:$0xff]  ;;  %v2281_v25 = vld [vmem:[%s6362_s19 + $0x30] sm:$0xff] }
 0xa5b   : > { %v4829_v17 = vpack.c.bf16 %v2280_v16, %v2279_v15 }
 0xa5c   : > { %v1983_v27 = vmul.f32 1.442695, %v1982_v26  ;;  %v2282_v26 = vld [vmem:[%s6362_s19 + $0x38] sm:$0xff] }
 0xa5e   : > { %5006 = vpow2.f32 %v1983_v27  ;;  %v4832_v27 = vpack.c.bf16 %v2282_v26, %v2281_v25 }
 0xa68   : > { %v5007_v28 = vpop.eup %5006 }
 0xa69   : > { %v1985_v29 = vsel %vm1109_vm4, %v5007_v28, 0.0 }
 0xa6a   : > { %1986 = vadd.xlane.f32.xlu1 %v1985_v29 }
 0xa7b   : > { %1991 = vrot.lane.b32.xlu1 %v1732_v24, %s5303_s27 }
 0xa84   : > { %v1825_v30 = vpop.xlane.xlu1 %1824 }
 0xa85   : > { %5008 = vrcp.f32 %v1825_v30 }
 0xa8f   : > { %v5009_v31 = vpop.eup %5008 }
 0xa90   : > { %v1827_v32 = vmul.f32 %v5009_v31, %v5005_v37 }
 0xa92   : > { %4557 = vmatmul.mubr.msk.f32.vlgmr.msra.gmra.mrb[14].mxu1 %vm1109_vm4, %v1827_v32 }
 0xa93   : > { %4566 = vmatprep.mubr.msk.f32.mxu1 %vm5301_vm0, %v5302_v1 }
 0xaf7   : > { %v1987_v10 = vpop.xlane.xlu1 %1986 }
 0xaf8   : > { %5010 = vrcp.f32 %v1987_v10  ;;  %v4230_v10 = vld [vmem:[%s6365_s4] ss:$0 sm:$0xff] }
 0xafb   : > { %v1992_v33 = vpop.permute.xlu1 %1991 }
 0xafc   : > { %4565 = vmatpush3.msra.mxu1 %v1992_v33 }
 0xafd   : > { %4816 = vmatprep.subr.bf16.mxu1 %v5300_v0 }
 0xb02   : > { %v5011_v34 = vpop.eup %5010 }
 0xb03   : > { %v1989_v35 = vmul.f32 %v5011_v34, %v5007_v28  ;;  %v4228_v28 = vld [vmem:[%s6363_s1] ss:$0 sm:$0xff]  ;;  %s5212_s1 = scalar_lea.vmem %s6204_s21, 128 }
 0xb04   : > { %p5213_p0 = scmp.ne.s32.totalorder %s6204_s21, %s5212_s1 }
 0xb05   : > { %4567 = vmatmul.mubr.msk.f32.vlgmr.msra.gmra.mrb[16].mxu1 %vm1109_vm4, %v1989_v35 }
 0xb06   : > { %4588 = vmatprep.mubr.msk.f32.mxu1 %vm5301_vm0, %v5302_v1  ;;  %4818 = vmatpush3.bf16.msra.mxu1 %v4817_v4  ;;  %v2481_v4 = vld [vmem:[#allocation8 + $0x40] sm:$0xff]  ;;  %p5214_p9 = pnand %p5213_p0, %p6371_p4 }
 0xb07   : > { %4819 = vmatprep.subr.bf16.mxu1 %v5300_v0 }
 0xb08   : > { %p5215_p13 = pneg %p5214_p9 }
 0xb65   : > { %v1897_v46 = vpop.f32.mrb[14].mxu1 }
 0xb66   : > { %v4558_v47 = vpop.f32.mrb[15].mxu1 }
 0xb67   : > { %v4234_v47 = vld [vmem:[%s6358_s17 + $0x40] sm:$0xff] }
 0xbd8   : > { %v2063_v48 = vpop.f32.mrb[16].mxu1 }
 0xbd9   : > { %2068 = vrot.lane.b32.xlu1 %v2063_v48, %s6306_s20  ;;  %v4568_v49 = vpop.f32.mrb[17].mxu1  ;;  %v4235_v48 = vld [vmem:[%s6358_s17 + $0x48] sm:$0xff] }
 0xbda   : > { %v4835_v49 = vpack.c.bf16 %v4235_v48, %v4234_v47 }
 0xc4b   : > { %v2069_v50 = vpop.permute.xlu1 %2068 }
 0xc4c   : > { %v2071_v52 = vsel %vm1032_vm2, %v1897_v46, %v2069_v50  ;;  %v2564_v50 = vld [vmem:[#allocation10 + $0x40] sm:$0xff] }
 0xc4d   : > { %4578 = vmatmul.mubr.msk.f32.vlgmr.msra.gmra.mrb[12].mxu0 %vm790_vm1, %v2071_v52  ;;  %v2565_v52 = vld [vmem:[#allocation10 + $0x48] sm:$0xff] }
 0xc4e   : > { %4607 = vmatprep.mubr.msk.f32.mxu0 %vm5301_vm0, %v5302_v1  ;;  %4824 = vmatpush3.bf16.msra.mxu0 %v4823_v12  ;;  %v2484_v12 = vld [vmem:[#allocation8 + $0x58] sm:$0xff] }
 0xc4f   : > { %4825 = vmatprep.subr.bf16.mxu0 %v5300_v0  ;;  %v4844_v13 = vpack.c.bf16 %v2484_v12, %v2483_v11 }
 0xc52   : > { %4827 = vmatpush3.bf16.msra.mxu0 %v4826_v14 }
 0xc53   : > { %4828 = vmatprep.subr.bf16.mxu0 %v5300_v0 }
 0xc56   : > { %4830 = vmatpush3.bf16.msra.mxu0 %v4829_v17 }
 0xc57   : > { %4831 = vmatprep.subr.bf16.mxu0 %v5300_v0 }
 0xc5a   : > { %4833 = vmatpush3.bf16.msra.mxu0 %v4832_v27 }
 0xc5b   : > { %4846 = vmatprep.subr.bf16.mxu0 %v5300_v0 }
 0xd20   : > { %v2154_v54 = vpop.f32.mrb[12].mxu0 }
 0xd21   : > { %v2155_v55 = vadd.f32 %v4222_v53, %v2154_v54  ;;  %v4579_v56 = vpop.f32.mrb[13].mxu0  ;;  %v4847_v53 = vpack.c.bf16 %v2565_v52, %v2564_v50  ;;  %v4236_v54 = vld [vmem:[%s6358_s17 + $0x50] sm:$0xff] }
 0xd23   : > { %v2158_v57 = vadd.f32 %v2155_v55, %v5831_v51  ;;  %v2192_v51 = vld [vmem:[%s6361_s13 + $0x10] sm:$0xff]  ;;  %v4237_v55 = vld [vmem:[%s6358_s17 + $0x58] sm:$0xff] }
 0xd24   : > { %v4820_v6 = vpack.c.bf16 %v2193_v5, %v2192_v51  ;;  %v4838_v56 = vpack.c.bf16 %v4237_v55, %v4236_v54  ;;  %v2482_v51 = vld [vmem:[#allocation8 + $0x48] sm:$0xff]  ;;  %v4233_v5 = vld [vmem:[%s6367_s15] ss:$0 sm:$0xff]  ;;  %v2978_v54 = vld [vmem:[#allocation11 + $0x40] sm:$0xff] }
 0xd25   : > { %v2163_v58 = vsel %vm790_vm1, %v2158_v57, 0.0  ;;  %v4841_v7 = vpack.c.bf16 %v2482_v51, %v2481_v4  ;;  %v2979_v55 = vld [vmem:[#allocation11 + $0x48] sm:$0xff]  ;;  %v4254_v4 = vld [vmem:[%s6258_s11 + $0x2] ss:$0 sm:$0xff] }
 0xd26   : > { %2164 = vadd.xlane.f32.xlu0 %v2163_v58  ;;  %4821 = vmatpush3.bf16.msra.mxu1 %v4820_v6  ;;  %v2567_v58 = vld [vmem:[#allocation10 + $0x58] sm:$0xff] }
 0xd27   : > { %4834 = vmatprep.subr.bf16.mxu1 %v5300_v0 }
 0xdb3   : > { %v2165_v59 = vpop.xlane.xlu0 %2164 }
 0xdb4   : > { %v2166_v60 = vmul.f32 0.03125, %v2165_v59 }
 0xdb6   : > { %v2167_v61 = vsub.f32 %v2158_v57, %v2166_v60  ;;  %v2566_v57 = vld [vmem:[#allocation10 + $0x50] sm:$0xff] }
 0xdb7   : > { %v4850_v59 = vpack.c.bf16 %v2567_v58, %v2566_v57  ;;  %v4853_v57 = vpack.c.bf16 %v2979_v55, %v2978_v54  ;;  %v2981_v58 = vld [vmem:[#allocation11 + $0x58] sm:$0xff] }
 0xdb8   : > { %v2168_v62 = vmul.f32 %v2167_v61, %v2167_v61 }
 0xdba   : > { %v2169_v63 = vsel %vm790_vm1, %v2168_v62, 0.0 }
 0xdbb   : > { %2170 = vadd.xlane.f32.xlu1 %v2169_v63 }
 0xe48   : > { %v2171_v18 = vpop.xlane.xlu1 %2170 }
 0xe49   : > { %v2172_v19 = vmul.f32 0.03125, %v2171_v18  ;;  %v4242_v18 = vld [vmem:[%s6254_s7 + $0x2] ss:$0 sm:$0xff] }
 0xe4b   : > { %v2173_v20 = vadd.f32 1e-06, %v2172_v19 }
 0xe4d   : > { %5012 = vrsqrt.f32 %v2173_v20  ;;  %v4239_v20 = vld [vmem:[%s6252_s5 + $0x2] ss:$0 sm:$0xff] }
 0xe57   : > { %v5013_v37 = vpop.eup %5012 }
 0xe58   : > { %v2175_v21 = vmul.f32 %v5013_v37, %v2167_v61 }
 0xe5a   : > { %v2182_v23 = vmul.f32 %v4226_v38, %v2175_v21  ;;  %v4245_v21 = vld [vmem:[%s6256_s9 + $0x2] ss:$0 sm:$0xff] }
 0xe5c   : > { %v2189_v24 = vadd.f32 %v4227_v22, %v2182_v23 }
 0xe5e   : > { %4589 = vmatmul.mubr.msk.f32.vlgmr.msra.gmra.mrb[18].mxu1 %vm790_vm1, %v2189_v24 }
 0xe5f   : > { %4618 = vmatprep.mubr.msk.f32.mxu1 %vm5301_vm0, %v5302_v1  ;;  %4836 = vmatpush3.bf16.msra.mxu1 %v4835_v49 }
 0xe60   : > { %4837 = vmatprep.subr.bf16.mxu1 %v5300_v0 }
 0xe63   : > { %4839 = vmatpush3.bf16.msra.mxu1 %v4838_v56  ;;  %v2980_v56 = vld [vmem:[#allocation11 + $0x50] sm:$0xff] }
 0xe64   : > { %4840 = vmatprep.subr.bf16.mxu1 %v5300_v0 }
 0xf31   : > { %v2270_v29 = vpop.f32.mrb[18].mxu1 }
 0xf32   : > { %v2271_v30 = vadd.f32 %v4228_v28, %v2270_v29  ;;  %v4590_v31 = vpop.f32.mrb[19].mxu1 }
 0xf34   : > { %v2274_v32 = vmax.f32 %v2271_v30, 0.0 }
 0xf36   : > { %4608 = vmatmul.mubr.msk.f32.vlgmr.msra.gmra.mrb[14].mxu0 %vm2290_vm6, %v2274_v32 }
 0xf37   : > { %4640 = vmatprep.mubr.msk.f32.mxu0 %vm5301_vm0, %v5302_v1  ;;  %4848 = vmatpush3.bf16.msra.mxu0 %v4847_v53 }
 0xf38   : > { %4849 = vmatprep.subr.bf16.mxu0 %v5300_v0 }
 0xf3b   : > { %4851 = vmatpush3.bf16.msra.mxu0 %v4850_v59  ;;  %v4856_v59 = vpack.c.bf16 %v2981_v58, %v2980_v56 }
 0xf3c   : > { %4653 = vmatprep.subr.mxu0 %v5302_v1 }
0x1009   : > { %v2360_v33 = vpop.f32.mrb[14].mxu0 }
0x100a   : > { %v2361_v34 = vadd.f32 %v4230_v10, %v2360_v33  ;;  %v4609_v35 = vpop.f32.mrb[15].mxu0 }
0x100c   : > { %v2364_v39 = vadd.f32 %v2361_v34, %v2189_v24 }
0x100e   : > { %v2367_v41 = vsel %vm790_vm1, %v2364_v39, 0.0 }
0x100f   : > { %2368 = vadd.xlane.f32.xlu0 %v2367_v41 }
0x109c   : > { %v2369_v42 = vpop.xlane.xlu0 %2368 }
0x109d   : > { %v2370_v43 = vmul.f32 0.03125, %v2369_v42 }
0x109f   : > { %v2371_v44 = vsub.f32 %v2364_v39, %v2370_v43 }
0x10a1   : > { %v2372_v45 = vmul.f32 %v2371_v44, %v2371_v44 }
0x10a3   : > { %v2373_v46 = vsel %vm790_vm1, %v2372_v45, 0.0 }
0x10a4   : > { %2374 = vadd.xlane.f32.xlu0 %v2373_v46 }
0x1131   : > { %v2375_v60 = vpop.xlane.xlu0 %2374 }
0x1132   : > { %v2376_v61 = vmul.f32 0.03125, %v2375_v60 }
0x1134   : > { %v2377_v62 = vadd.f32 1e-06, %v2376_v61 }
0x1136   : > { %5014 = vrsqrt.f32 %v2377_v62 }
0x1140   : > { %v5015_v63 = vpop.eup %5014 }
0x1141   : > { %v2379_v3 = vmul.f32 %v5015_v63, %v2371_v44 }
0x1143   : > { %v2386_v6 = vmul.f32 %v4232_v2, %v2379_v3 }
0x1145   : > { %v5983_v9 = vadd.f32 %v4233_v5, %v2386_v6 }
0x1147   : > { %4619 = vmatmul.mubr.msk.f32.vlgmr.msra.gmra.mrb[20].mxu1 %vm790_vm1, %v5983_v9  ;;  %4641 = vmatmul.mubr.msk.f32.vlgmr.msra.gmra.mrb[16].mxu0 %vm790_vm1, %v5983_v9 }
0x1148   : > { %4842 = vmatpush3.bf16.msra.mxu1 %v4841_v7  ;;  %4629 = vmatprep.mubr.msk.f32.mxu1 %vm5301_vm0, %v5302_v1 }
0x1149   : > { %4843 = vmatprep.subr.bf16.mxu1 %v5300_v0  ;;  %4655 = vmatprep.mubr.msk.f32.mxu0 %vm5301_vm0, %v5302_v1 }
0x114c   : > { %4845 = vmatpush3.bf16.msra.mxu1 %v4844_v13 }
0x114d   : > { %4643 = vmatprep.subr.mxu1 %v5302_v1 }
0x114f   : > { %4630 = vmatmul.mubr.msk.f32.vlgmr.msra.gmra.mrb[22].mxu1 %vm790_vm1, %v5983_v9 }
0x1150   : > { %4645 = vmatprep.mubr.msk.f32.mxu1 %vm5301_vm0, %v5302_v1 }
0x121a   : > { %v2476_v14 = vpop.f32.mrb[20].mxu1  ;;  %v2642_v15 = vpop.f32.mrb[16].mxu0 }
0x121b   : > { %v4620_v16 = vpop.f32.mrb[21].mxu1  ;;  %v4642_v17 = vpop.f32.mrb[17].mxu0  ;;  %v2477_v22 = vadd.f32 %v4239_v20, %v2476_v14  ;;  %v2643_v23 = vadd.f32 %v4245_v21, %v2642_v15  ;;  %v3184_v20 = vld [vmem:[#allocation8 + $0x70] sm:$0xff]  ;;  %v4261_v21 = vld [vmem:[%s6358_s17 + $0x68] sm:$0xff] }
0x121c   : > { %v3182_v17 = vld [vmem:[#allocation8 + $0x60] sm:$0xff] }
0x1222   : > { %v2559_v19 = vpop.f32.mrb[22].mxu1 }
0x1223   : > { %v2560_v37 = vadd.f32 %v4242_v18, %v2559_v19  ;;  %v4631_v38 = vpop.f32.mrb[23].mxu1  ;;  %v3183_v18 = vld [vmem:[#allocation8 + $0x68] sm:$0xff] }
0x1224   : > { %v4865_v19 = vpack.c.bf16 %v3183_v18, %v3182_v17 }
0x1225   : > { %2808 = vrot.lane.b32.xlu0 %v2560_v37, %s5303_s27  ;;  %4644 = vmatpush3.xpose.msk.msra.mxu1 %vm1032_vm2, %v2560_v37  ;;  %v3185_v37 = vld [vmem:[#allocation8 + $0x78] sm:$0xff] }
0x1226   : > { %4648 = vmatprep.subr.mxu1 %v5302_v1  ;;  %v4868_v38 = vpack.c.bf16 %v3185_v37, %v3184_v20  ;;  %v3679_v37 = vld [vmem:[#allocation11 + $0x60] sm:$0xff] }
0x1228   : > { %4646 = vmatmul.mubr.msk.f32.vlgmr.msra.gmra.mrb[24].mxu1 %vm1032_vm2, %v2477_v22 }
0x1229   : > { %2806 = vrot.lane.b32.xlu0 %v2477_v22, %s5303_s27  ;;  %4649 = vmatpush3.msra.mxu1 %v2643_v23 }
0x122a   : > { %4650 = vmatprep.mubr.msk.f32.mxu1 %vm5301_vm0, %v5302_v1  ;;  %4658 = vmatprep.subr.mxu1 %v5302_v1 }
0x1297   : > { %v2809_v24 = vpop.permute.xlu0 %2808 }
0x1298   : > { %4654 = vmatpush3.xpose.msk.msra.mxu0 %vm1032_vm2, %v2809_v24  ;;  %v4263_v24 = vld [vmem:[%s6358_s17 + $0x78] sm:$0xff] }
0x1299   : > { %4852 = vmatprep.subr.bf16.mxu0 %v5300_v0 }
0x129b   : > { %v2807_v25 = vpop.permute.xlu0 %2806 }
0x129c   : > { %4656 = vmatmul.mubr.msk.f32.vlgmr.msra.gmra.mrb[18].mxu0 %vm1032_vm2, %v2807_v25 }
0x129d   : > { %4671 = vmatprep.mubr.msk.f32.mxu0 %vm5301_vm0, %v5302_v1  ;;  %4854 = vmatpush3.bf16.msra.mxu0 %v4853_v57 }
0x129e   : > { %4855 = vmatprep.subr.bf16.mxu0 %v5300_v0 }
0x12a1   : > { %4857 = vmatpush3.bf16.msra.mxu0 %v4856_v59 }
0x12a2   : > { %4864 = vmatprep.subr.bf16.mxu0 %v5300_v0 }
0x12fb   : > { %v2718_v26 = vpop.f32.mrb[24].mxu1 }
0x12fc   : > { %v2719_v27 = vadd.f32 %v2718_v26, %v5772_v40  ;;  %v4647_v28 = vpop.f32.mrb[25].mxu1 }
0x12fe   : > { %v2722_v29 = vsel %vm1109_vm4, %v2719_v27, -inf }
0x12ff   : > { %2723 = vmax.xlane.f32.xlu0 %v2722_v29 }
0x136f   : > { %v2880_v30 = vpop.f32.mrb[18].mxu0 }
0x1370   : > { %v2881_v31 = vadd.f32 %v2880_v30, %v5772_v40  ;;  %v4657_v32 = vpop.f32.mrb[19].mxu0  ;;  %v4258_v30 = vld [vmem:[%s6259_s12 + $0x2] ss:$0 sm:$0xff] }
0x1371   : > { %v4259_v32 = vld [vmem:[%s6360_s29 + $0x2] ss:$0 sm:$0xff] }
0x1372   : > { %v2884_v10 = vsel %vm1109_vm4, %v2881_v31, -inf }
0x1373   : > { %2885 = vmax.xlane.f32.xlu1 %v2884_v10 }
0x138c   : > { %v2724_v33 = vpop.xlane.xlu0 %2723 }
0x138d   : > { %v2725_v34 = vsub.f32 %v2719_v27, %v2724_v33 }
0x138f   : > { %v2726_v35 = vmul.f32 1.442695, %v2725_v34  ;;  %v4268_v34 = vld [vmem:[%s6254_s7 + $0x3] ss:$0 sm:$0xff] }
0x1391   : > { %5016 = vpow2.f32 %v2726_v35 }
0x139b   : > { %v5017_v39 = vpop.eup %5016 }
0x139c   : > { %v2728_v41 = vsel %vm1109_vm4, %v5017_v39, 0.0 }
0x139d   : > { %2729 = vadd.xlane.f32.xlu1 %v2728_v41 }
0x1400   : > { %v2886_v42 = vpop.xlane.xlu1 %2885 }
0x1401   : > { %v2887_v43 = vsub.f32 %v2881_v31, %v2886_v42  ;;  %v4265_v42 = vld [vmem:[%s6252_s5 + $0x3] ss:$0 sm:$0xff] }
0x1403   : > { %v2888_v44 = vmul.f32 1.442695, %v2887_v43 }
0x1405   : > { %5018 = vpow2.f32 %v2888_v44 }
0x140f   : > { %v5019_v45 = vpop.eup %5018 }
0x1410   : > { %v2890_v46 = vsel %vm1109_vm4, %v5019_v45, 0.0 }
0x1411   : > { %2891 = vadd.xlane.f32.xlu1 %v2890_v46 }
0x1422   : > { %2896 = vrot.lane.b32.xlu1 %v2643_v23, %s5303_s27  ;;  %v4262_v23 = vld [vmem:[%s6358_s17 + $0x70] sm:$0xff] }
0x1423   : > { %v4862_v25 = vpack.c.bf16 %v4263_v24, %v4262_v23 }
0x142a   : > { %v2730_v40 = vpop.xlane.xlu1 %2729 }
0x142b   : > { %5020 = vrcp.f32 %v2730_v40  ;;  %v3265_v40 = vld [vmem:[#allocation10 + $0x60] sm:$0xff] }
0x1435   : > { %v5021_v47 = vpop.eup %5020 }
0x1436   : > { %v2732_v48 = vmul.f32 %v5021_v47, %v5017_v39  ;;  %v3266_v47 = vld [vmem:[#allocation10 + $0x68] sm:$0xff] }
0x1438   : > { %4651 = vmatmul.mubr.msk.f32.vlgmr.msra.gmra.mrb[26].mxu1 %vm1109_vm4, %v2732_v48  ;;  %v3267_v48 = vld [vmem:[#allocation10 + $0x70] sm:$0xff] }
0x1439   : > { %4660 = vmatprep.mubr.msk.f32.mxu1 %vm5301_vm0, %v5302_v1 }
0x149e   : > { %v2892_v49 = vpop.xlane.xlu1 %2891 }
0x149f   : > { %5022 = vrcp.f32 %v2892_v49  ;;  %v4871_v49 = vpack.c.bf16 %v3266_v47, %v3265_v40  ;;  %v4289_v40 = vld [vmem:[%s6361_s13 + $0x38] sm:$0xff] }
0x14a2   : > { %v2897_v50 = vpop.permute.xlu1 %2896 }
0x14a3   : > { %4659 = vmatpush3.msra.mxu1 %v2897_v50  ;;  %v3268_v50 = vld [vmem:[#allocation10 + $0x78] sm:$0xff] }
0x14a4   : > { %4858 = vmatprep.subr.bf16.mxu1 %v5300_v0 }
0x14a9   : > { %v5023_v52 = vpop.eup %5022 }
0x14aa   : > { %v2894_v53 = vmul.f32 %v5023_v52, %v5019_v45  ;;  %v4874_v52 = vpack.c.bf16 %v3268_v50, %v3267_v48  ;;  %v4293_v48 = vld [vmem:[%s6362_s19 + $0x40] sm:$0xff]  ;;  %v4295_v50 = vld [vmem:[%s6362_s19 + $0x50] sm:$0xff] }
0x14ac   : > { %4661 = vmatmul.mubr.msk.f32.vlgmr.msra.gmra.mrb[28].mxu1 %vm1109_vm4, %v2894_v53 }
0x14ad   : > { %4682 = vmatprep.mubr.msk.f32.mxu1 %vm5301_vm0, %v5302_v1 }
0x150b   : > { %v2802_v60 = vpop.f32.mrb[26].mxu1 }
0x150c   : > { %v4652_v61 = vpop.f32.mrb[27].mxu1 }
0x157f   : > { %v2968_v62 = vpop.f32.mrb[28].mxu1 }
0x1580   : > { %2973 = vrot.lane.b32.xlu1 %v2968_v62, %s6306_s20  ;;  %v4662_v63 = vpop.f32.mrb[29].mxu1  ;;  %s4309_s20 = sshll.u32 %s5432_s2, 7  ;;  %s5305_s2 = smov [#allocation13]  }
0x1581   : > { %s5216_s26 = sshll.u32 %s5305_s2, 4  ;;  %s5217_s26 = int_to_ptr.vmem [resolvable:$false] %s5216_s26 }
0x1582   : > { %s5218_s18 = scalar_lea.vmem %s5217_s26, 256  ;;  %p5219_p7 = scmp.lt.s32.totalorder %s6204_s21, %s5217_s26 }
0x1583   : > { %p5220_p3 = scmp.lt.s32.totalorder %s5218_s18, %s5212_s1 }
0x1585   : > { %p5221_p5 = por %p5220_p3, %p5219_p7 }
0x1587   : > { %p5222_p2 = pnand %p5221_p5, %p5215_p13 }
0x15f2   : > { %v2974_v2 = vpop.permute.xlu1 %2973 }
0x15f3   : > { %v2976_v3 = vsel %vm1032_vm2, %v2802_v60, %v2974_v2 }
0x15f4   : > { %4672 = vmatmul.mubr.msk.f32.vlgmr.msra.gmra.mrb[20].mxu0 %vm790_vm1, %v2976_v3 }
0x15f5   : > { %4693 = vmatprep.mubr.msk.f32.mxu0 %vm5301_vm0, %v5302_v1  ;;  %4866 = vmatpush3.bf16.msra.mxu0 %v4865_v19 }
0x15f6   : > { %4867 = vmatprep.subr.bf16.mxu0 %v5300_v0 }
0x15f9   : > { %4869 = vmatpush3.bf16.msra.mxu0 %v4868_v38  ;;  %v3680_v38 = vld [vmem:[#allocation11 + $0x68] sm:$0xff] }
0x15fa   : > { %4707 = vmatprep.subr.mxu0 %v5302_v1 }
0x15fc   : > { %4694 = vmatmul.mubr.msk.f32.vlgmr.msra.gmra.mrb[22].mxu0 %vm790_vm1, %v5811_v36 }
0x15fd   : > { %4709 = vmatprep.mubr.msk.f32.mxu0 %vm5301_vm0, %v5302_v1 }
0x16c7   : > { %v3059_v51 = vpop.f32.mrb[20].mxu0 }
0x16c8   : > { %v3060_v5 = vadd.f32 %v4254_v4, %v3059_v51  ;;  %v4673_v6 = vpop.f32.mrb[21].mxu0  ;;  %v4271_v51 = vld [vmem:[%s6256_s9 + $0x3] ss:$0 sm:$0xff] }
0x16ca   : > { %v3063_v7 = vadd.f32 %v3060_v5, %v5983_v9  ;;  %v4260_v9 = vld [vmem:[%s6358_s17 + $0x60] sm:$0xff] }
0x16cb   : > { %v4859_v22 = vpack.c.bf16 %v4261_v21, %v4260_v9  ;;  %v3681_v9 = vld [vmem:[#allocation11 + $0x70] sm:$0xff]  ;;  %v4877_v21 = vpack.c.bf16 %v3680_v38, %v3679_v37 }
0x16cc   : > { %v3068_v11 = vsel %vm790_vm1, %v3063_v7, 0.0 }
0x16cd   : > { %3069 = vadd.xlane.f32.xlu0 %v3068_v11  ;;  %4860 = vmatpush3.bf16.msra.mxu1 %v4859_v22  ;;  %v3682_v22 = vld [vmem:[#allocation11 + $0x78] sm:$0xff] }
0x16ce   : > { %4861 = vmatprep.subr.bf16.mxu1 %v5300_v0  ;;  %v4880_v23 = vpack.c.bf16 %v3682_v22, %v3681_v9 }
0x16cf   : > { %v3260_v35 = vpop.f32.mrb[22].mxu0 }
0x16d0   : > { %v3261_v39 = vadd.f32 %v4268_v34, %v3260_v35  ;;  %v4695_v41 = vpop.f32.mrb[23].mxu0 }
0x16d1   : > { %4863 = vmatpush3.bf16.msra.mxu1 %v4862_v25 }
0x16d2   : > { %4870 = vmatprep.subr.bf16.mxu1 %v5300_v0  ;;  %4708 = vmatpush3.xpose.msk.msra.mxu0 %vm1032_vm2, %v3261_v39 }
0x16d3   : > { %4717 = vmatprep.subr.mxu0 %v5302_v1 }
0x16e3   : > { %3509 = vrot.lane.b32.xlu0 %v3261_v39, %s5303_s27 }
0x175a   : > { %v3070_v12 = vpop.xlane.xlu0 %3069 }
0x175b   : > { %v3071_v13 = vmul.f32 0.03125, %v3070_v12 }
0x175d   : > { %v3072_v14 = vsub.f32 %v3063_v7, %v3071_v13 }
0x175e   : > { %v3510_v46 = vpop.permute.xlu0 %3509 }
0x175f   : > { %v3073_v15 = vmul.f32 %v3072_v14, %v3072_v14 }
0x1761   : > { %v3074_v16 = vsel %vm790_vm1, %v3073_v15, 0.0 }
0x1762   : > { %3075 = vadd.xlane.f32.xlu1 %v3074_v16 }
0x17ef   : > { %v3076_v26 = vpop.xlane.xlu1 %3075 }
0x17f0   : > { %v3077_v27 = vmul.f32 0.03125, %v3076_v26 }
0x17f2   : > { %v3078_v28 = vadd.f32 1e-06, %v3077_v27 }
0x17f4   : > { %5024 = vrsqrt.f32 %v3078_v28 }
0x17fe   : > { %v5025_v29 = vpop.eup %5024 }
0x17ff   : > { %v3080_v31 = vmul.f32 %v5025_v29, %v3072_v14 }
0x1801   : > { %v3087_v10 = vmul.f32 %v4258_v30, %v3080_v31  ;;  %v4280_v30 = vld [vmem:[%s6258_s11 + $0x3] ss:$0 sm:$0xff] }
0x1803   : > { %v6074_v33 = vadd.f32 %v4259_v32, %v3087_v10 }
0x1805   : > { %4683 = vmatmul.mubr.msk.f32.vlgmr.msra.gmra.mrb[30].mxu1 %vm790_vm1, %v6074_v33 }
0x1806   : > { %4704 = vmatprep.mubr.msk.f32.mxu1 %vm5301_vm0, %v5302_v1  ;;  %4872 = vmatpush3.bf16.msra.mxu1 %v4871_v49  ;;  %v4294_v49 = vld [vmem:[%s6362_s19 + $0x48] sm:$0xff] }
0x1807   : > { %4873 = vmatprep.subr.bf16.mxu1 %v5300_v0 }
0x180a   : > { %4875 = vmatpush3.bf16.msra.mxu1 %v4874_v52  ;;  %v4889_v52 = vpack.c.bf16 %v4294_v49, %v4293_v48 }
0x180b   : > { %4712 = vmatprep.subr.mxu1 %v5302_v1 }
0x180d   : > { %4705 = vmatmul.mubr.msk.f32.vlgmr.msra.gmra.mrb[32].mxu1 %vm790_vm1, %v5811_v36 }
0x180e   : > { %4714 = vmatprep.mubr.msk.f32.mxu1 %vm5301_vm0, %v5302_v1 }
0x18d8   : > { %v3177_v43 = vpop.f32.mrb[30].mxu1 }
0x18d9   : > { %v3178_v44 = vadd.f32 %v4265_v42, %v3177_v43  ;;  %v4684_v45 = vpop.f32.mrb[31].mxu1 }
0x18da   : > { %v4287_v45 = vld [vmem:[%s6361_s13 + $0x28] sm:$0xff] }
0x18db   : > { %3507 = vrot.lane.b32.xlu0 %v3178_v44, %s5303_s27  ;;  %4710 = vmatmul.mubr.msk.f32.vlgmr.msra.gmra.mrb[24].mxu0 %vm1032_vm2, %v3178_v44 }
0x18dc   : > { %4718 = vmatpush3.xpose.msk.msra.mxu0 %vm1032_vm2, %v3510_v46  ;;  %4719 = vmatprep.mubr.msk.f32.mxu0 %vm5301_vm0, %v5302_v1 }
0x18dd   : > { %4876 = vmatprep.subr.bf16.mxu0 %v5300_v0 }
0x18e0   : > { %v3343_v4 = vpop.f32.mrb[32].mxu1 }
0x18e1   : > { %v4706_v5 = vpop.f32.mrb[33].mxu1  ;;  %v3344_v6 = vadd.f32 %v4271_v51, %v3343_v4  ;;  %v4300_v4 = vld [vmem:[%s6362_s19 + $0x78] sm:$0xff] }
0x18e2   : > { %v4291_v5 = vld [vmem:[%s6364_s3 + $0x1] ss:$0 sm:$0xff]  ;;  %s6370_s3 = sld [smem:[#allocation38_spill]] }
0x18e3   : > { %4713 = vmatpush3.msra.mxu1 %v3344_v6 }
0x18e4   : > { %4722 = vmatprep.subr.mxu1 %v5302_v1 }
0x194d   : > { %v3508_v53 = vpop.permute.xlu0 %3507 }
0x194e   : > { %4720 = vmatmul.mubr.msk.f32.vlgmr.msra.gmra.mrb[26].mxu0 %vm1032_vm2, %v3508_v53  ;;  %v4296_v53 = vld [vmem:[%s6362_s19 + $0x58] sm:$0xff] }
0x194f   : > { %4735 = vmatprep.mubr.msk.f32.mxu0 %vm5301_vm0, %v5302_v1  ;;  %4878 = vmatpush3.bf16.msra.mxu0 %v4877_v21 }
0x1950   : > { %4879 = vmatprep.subr.bf16.mxu0 %v5300_v0 }
0x1953   : > { %4881 = vmatpush3.bf16.msra.mxu0 %v4880_v23 }
0x1954   : > { %4888 = vmatprep.subr.bf16.mxu0 %v5300_v0 }
0x19ae   : > { %v3419_v54 = vpop.f32.mrb[24].mxu0 }
0x19af   : > { %v3420_v55 = vadd.f32 %v3419_v54, %v5866_v8  ;;  %v4711_v56 = vpop.f32.mrb[25].mxu0  ;;  %v4892_v54 = vpack.c.bf16 %v4296_v53, %v4295_v50 }
0x19b0   : > { %v4298_v56 = vld [vmem:[%s6362_s19 + $0x68] sm:$0xff] }
0x19b1   : > { %v3423_v57 = vsel %vm1109_vm4, %v3420_v55, -inf }
0x19b2   : > { %3424 = vmax.xlane.f32.xlu0 %v3423_v57 }
0x1a21   : > { %v3581_v58 = vpop.f32.mrb[26].mxu0 }
0x1a22   : > { %v3582_v59 = vadd.f32 %v3581_v58, %v5866_v8  ;;  %v4721_v36 = vpop.f32.mrb[27].mxu0 }
0x1a24   : > { %v3585_v60 = vsel %vm1109_vm4, %v3582_v59, -inf }
0x1a25   : > { %3586 = vmax.xlane.f32.xlu1 %v3585_v60 }
0x1a3f   : > { %v3425_v61 = vpop.xlane.xlu0 %3424 }
0x1a40   : > { %v3426_v62 = vsub.f32 %v3420_v55, %v3425_v61  ;;  %v4297_v55 = vld [vmem:[%s6362_s19 + $0x60] sm:$0xff] }
0x1a41   : > { %v4895_v57 = vpack.c.bf16 %v4298_v56, %v4297_v55  ;;  %v4284_v61 = vld [vmem:[%s6259_s12 + $0x3] ss:$0 sm:$0xff] }
0x1a42   : > { %v3427_v63 = vmul.f32 1.442695, %v3426_v62 }
0x1a44   : > { %5026 = vpow2.f32 %v3427_v63  ;;  %v4285_v63 = vld [vmem:[%s6360_s29 + $0x3] ss:$0 sm:$0xff] }
0x1a4e   : > { %v5027_v2 = vpop.eup %5026 }
0x1a4f   : > { %v3429_v3 = vsel %vm1109_vm4, %v5027_v2, 0.0 }
0x1a50   : > { %3430 = vadd.xlane.f32.xlu1 %v3429_v3 }
0x1ab2   : > { %v3587_v8 = vpop.xlane.xlu1 %3586 }
0x1ab3   : > { %v3588_v7 = vsub.f32 %v3582_v59, %v3587_v8 }
0x1ab5   : > { %v3589_v11 = vmul.f32 1.442695, %v3588_v7 }
0x1ab7   : > { %5028 = vpow2.f32 %v3589_v11 }
0x1ac1   : > { %v5029_v12 = vpop.eup %5028 }
0x1ac2   : > { %v3591_v13 = vsel %vm1109_vm4, %v5029_v12, 0.0 }
0x1ac3   : > { %3592 = vadd.xlane.f32.xlu1 %v3591_v13 }
0x1ad4   : > { %3597 = vrot.lane.b32.xlu1 %v3344_v6, %s5303_s27  ;;  %s6368_s27 = smov 16  }
0x1add   : > { %v3431_v14 = vpop.xlane.xlu1 %3430 }
0x1ade   : > { %5030 = vrcp.f32 %v3431_v14 }
0x1ae8   : > { %v5031_v15 = vpop.eup %5030 }
0x1ae9   : > { %v3433_v16 = vmul.f32 %v5031_v15, %v5027_v2 }
0x1aeb   : > { %4715 = vmatmul.mubr.msk.f32.vlgmr.msra.gmra.mrb[34].mxu1 %vm1109_vm4, %v3433_v16 }
0x1aec   : > { %4724 = vmatprep.mubr.msk.f32.mxu1 %vm5301_vm0, %v5302_v1 }
0x1b50   : > { %v3593_v17 = vpop.xlane.xlu1 %3592 }
0x1b51   : > { %5032 = vrcp.f32 %v3593_v17 }
0x1b54   : > { %v3598_v18 = vpop.permute.xlu1 %3597 }
0x1b55   : > { %4723 = vmatpush3.msra.mxu1 %v3598_v18 }
0x1b56   : > { %4882 = vmatprep.subr.bf16.mxu1 %v5300_v0 }
0x1b5b   : > { %v5033_v19 = vpop.eup %5032 }
0x1b5c   : > { %v3595_v20 = vmul.f32 %v5033_v19, %v5029_v12  ;;  %v4302_v12 = vld [vmem:[%s6365_s4 + $0x1] ss:$0 sm:$0xff]  ;;  %s6202_s4 = scalar_lea.hbm %s6370_s3, %s4309_s20 }
0x1b5e   : > { %4725 = vmatmul.mubr.msk.f32.vlgmr.msra.gmra.mrb[36].mxu1 %vm1109_vm4, %v3595_v20 }
0x1b5f   : > { %4746 = vmatprep.mubr.msk.f32.mxu1 %vm5301_vm0, %v5302_v1 }
0x1bbe   : > { %v3503_v24 = vpop.f32.mrb[34].mxu1 }
0x1bbf   : > { %v4716_v25 = vpop.f32.mrb[35].mxu1 }
0x1c31   : > { %v3669_v26 = vpop.f32.mrb[36].mxu1 }
0x1c32   : > { %3674 = vrot.lane.b32.xlu0 %v3669_v26, %s6368_s27  ;;  %v4726_v27 = vpop.f32.mrb[37].mxu1  ;;  %v4307_v26 = vld [vmem:[%s6367_s15 + $0x1] ss:$0 sm:$0xff] }
0x1ca4   : > { %v3675_v28 = vpop.permute.xlu0 %3674 }
0x1ca5   : > { %v3677_v29 = vsel %vm1032_vm2, %v3503_v24, %v3675_v28  ;;  %v4306_v24 = vld [vmem:[%s6366_s6 + $0x1] ss:$0 sm:$0xff] }
0x1ca6   : > { %4736 = vmatmul.mubr.msk.f32.vlgmr.msra.gmra.mrb[28].mxu0 %vm790_vm1, %v3677_v29 }
0x1ca7   : > { %4765 = vmatprep.mubr.msk.f32.mxu0 %vm5301_vm0, %v5302_v1  ;;  %v4286_v1 = vld [vmem:[%s6361_s13 + $0x20] sm:$0xff]  ;;  %4890 = vmatpush3.bf16.msra.mxu0 %v4889_v52 }
0x1ca8   : > { %v4883_v46 = vpack.c.bf16 %v4287_v45, %v4286_v1  ;;  %4891 = vmatprep.subr.bf16.mxu0 %v5300_v0 }
0x1caa   : > { %4884 = vmatpush3.bf16.msra.mxu1 %v4883_v46 }
0x1cab   : > { %4885 = vmatprep.subr.bf16.mxu1 %v5300_v0  ;;  %4893 = vmatpush3.bf16.msra.mxu0 %v4892_v54 }
0x1cac   : > { %4894 = vmatprep.subr.bf16.mxu0 %v5300_v0 }
0x1caf   : > { %4896 = vmatpush3.bf16.msra.mxu0 %v4895_v57 }
0x1cb0   : > { %4897 = vmatprep.subr.bf16.mxu0 %v5300_v0  ;;  %v4299_v0 = vld [vmem:[%s6362_s19 + $0x70] sm:$0xff] }
0x1cb1   : > { %v4898_v51 = vpack.c.bf16 %v4300_v4, %v4299_v0 }
0x1cb3   : > { %4899 = vmatpush3.bf16.msra.mxu0 %v4898_v51 }
0x1d79   : > { %v3760_v31 = vpop.f32.mrb[28].mxu0 }
0x1d7a   : > { %v3761_v32 = vadd.f32 %v4280_v30, %v3760_v31  ;;  %v4737_v10 = vpop.f32.mrb[29].mxu0 }
0x1d7c   : > { %v3764_v34 = vadd.f32 %v3761_v32, %v6074_v33  ;;  %v4288_v33 = vld [vmem:[%s6361_s13 + $0x30] sm:$0xff] }
0x1d7d   : > { %v4886_v47 = vpack.c.bf16 %v4289_v40, %v4288_v33 }
0x1d7e   : > { %v3769_v35 = vsel %vm790_vm1, %v3764_v34, 0.0 }
0x1d7f   : > { %3770 = vadd.xlane.f32.xlu1 %v3769_v35  ;;  %4887 = vmatpush3.bf16.msra.mxu1 %v4886_v47 }
0x1e0c   : > { %v3771_v39 = vpop.xlane.xlu1 %3770 }
0x1e0d   : > { %v3772_v41 = vmul.f32 0.03125, %v3771_v39 }
0x1e0f   : > { %v3773_v42 = vsub.f32 %v3764_v34, %v3772_v41 }
0x1e11   : > { %v3774_v43 = vmul.f32 %v3773_v42, %v3773_v42 }
0x1e13   : > { %v3775_v44 = vsel %vm790_vm1, %v3774_v43, 0.0 }
0x1e14   : > { %3776 = vadd.xlane.f32.xlu0 %v3775_v44 }
0x1ea1   : > { %v3777_v58 = vpop.xlane.xlu0 %3776 }
0x1ea2   : > { %v3778_v59 = vmul.f32 0.03125, %v3777_v58 }
0x1ea4   : > { %v3779_v36 = vadd.f32 1e-06, %v3778_v59 }
0x1ea6   : > { %5034 = vrsqrt.f32 %v3779_v36 }
0x1eb0   : > { %v5035_v60 = vpop.eup %5034 }
0x1eb1   : > { %v3781_v62 = vmul.f32 %v5035_v60, %v3773_v42 }
0x1eb3   : > { %v3788_v2 = vmul.f32 %v4284_v61, %v3781_v62 }
0x1eb5   : > { %v3795_v3 = vadd.f32 %v4285_v63, %v3788_v2 }
0x1eb7   : > { %4747 = vmatmul.mubr.msk.f32.vlgmr.msra.gmra.mrb[38].mxu1 %vm790_vm1, %v3795_v3 }
0x1f8a   : > { %v3878_v6 = vpop.f32.mrb[38].mxu1 }
0x1f8b   : > { %v3879_v8 = vadd.f32 %v4291_v5, %v3878_v6  ;;  %v4748_v7 = vpop.f32.mrb[39].mxu1 }
0x1f8d   : > { %v3882_v11 = vmax.f32 %v3879_v8, 0.0 }
0x1f8f   : > { %4766 = vmatmul.mubr.msk.f32.vlgmr.msra.gmra.mrb[30].mxu0 %vm2290_vm6, %v3882_v11 }
0x2062   : > { %v3969_v13 = vpop.f32.mrb[30].mxu0 }
0x2063   : > { %v3970_v14 = vadd.f32 %v4302_v12, %v3969_v13  ;;  %v4767_v15 = vpop.f32.mrb[31].mxu0 }
0x2065   : > { %v3973_v16 = vadd.f32 %v3970_v14, %v3795_v3 }
0x2067   : > { %v3978_v17 = vsel %vm790_vm1, %v3973_v16, 0.0 }
0x2068   : > { %3979 = vadd.xlane.f32.xlu1 %v3978_v17 }
0x20f5   : > { %v3980_v18 = vpop.xlane.xlu1 %3979 }
0x20f6   : > { %v3981_v19 = vmul.f32 0.03125, %v3980_v18 }
0x20f8   : > { %v3982_v20 = vsub.f32 %v3973_v16, %v3981_v19 }
0x20fa   : > { %v3983_v37 = vmul.f32 %v3982_v20, %v3982_v20 }
0x20fc   : > { %v3984_v38 = vsel %vm790_vm1, %v3983_v37, 0.0 }
0x20fd   : > { %3985 = vadd.xlane.f32.xlu1 %v3984_v38 }
0x218a   : > { %v3986_v9 = vpop.xlane.xlu1 %3985 }
0x218b   : > { %v3987_v21 = vmul.f32 0.03125, %v3986_v9 }
0x218d   : > { %v3988_v22 = vadd.f32 1e-06, %v3987_v21 }
0x218f   : > { %5036 = vrsqrt.f32 %v3988_v22 }
0x2199   : > { %v5037_v23 = vpop.eup %5036 }
0x219a   : > { %v3990_v25 = vmul.f32 %v5037_v23, %v3982_v20 }
0x219c   : > { %v3997_v27 = vmul.f32 %v4306_v24, %v3990_v25 }
0x219e   : > { %v4004_v28 = vadd.f32 %v4307_v26, %v3997_v27 }
0x21a0   : > { %4005 = vst.msk [vmem:[%s767_s30] sm:$0xff] %vm790_vm1, %v4004_v28 }
0x21a1   : > { %5225 = shalt.err (!%p5222_p2)
}
0x21a2   : > { %s5226_s28 = scalar_lea.hbm %s6202_s4, 128  ;;  %s5230_s30 = scalar_lea.hbm %s6370_s3, 256 }
0x21a3   : > { %p5227_p8 = scmp.ne.s32.totalorder %s6202_s4, %s5226_s28  ;;  %p5231_p1 = scmp.lt.u32.totalorder %s6202_s4, %s6370_s3 }
0x21a4   : > { %p5232_p6 = scmp.lt.u32.totalorder %s5230_s30, %s5226_s28  ;;  %p5234_p0 = scmp.lt.u32.totalorder %s5226_s28, %s6202_s4 }
0x21a5   : > { %p5228_p11 = pnand %p5227_p8, %p6371_p4 }
0x21a6   : > { %p5233_p10 = por %p5232_p6, %p5231_p1 }
0x21a7   : > { %p5229_p12 = pneg %p5228_p11 }
0x21a8   : > { %p5235_p9 = por %p5234_p0, %p5233_p10 }
0x21aa   : > { %p5236_p13 = pnand %p5235_p9, %p5229_p12 }
0x21ac   : > { %5239 = shalt.err (!%p5236_p13)
}
0x21ad   : > { %4918 = dma.vmem_to_hbm [thread:$0]  (%p6371_p4), %s6204_s21, 128, %s6202_s4, %s4007_s25  }
0x21ae PF: > { %s6372_s1 = sld [smem:[#allocation19_spill]]  ;;  %s6373_s2 = sld [smem:[#allocation21_spill]] }
0x21af   : > { %p6375_p3 = scmp.ge.s32.totalorder %s5290_s24, 2 }
0x21b4   : > { %s4032_s26 = sand.u32 1, %s6372_s1   ;;  %p6374_p7 = scmp.ne.s32.totalorder %s6373_s2, 0 }
0x21b5   : > { %s4033_s18 = scalar_lea.sflag [#allocation4], %s4032_s26 }
0x21b6   : > { %p4941_p5 = pnand %p6375_p3, %p6374_p7 }
0x21b8   : > { %5273 = dma.done.wait (!%p4941_p5), %s4033_s18, 128  }
0x21b9   : > { %5275 = vsyncadd (!%p4941_p5), %s4033_s18, 4294967168  ;;  %s6376_s24 = sld [smem:[#allocation22_spill]]  ;;  %s6377_s28 = sld [smem:[#allocation20_spill]] }
0x21ba   : > { %s6378_s23 = sld [smem:[#allocation23_spill]]  ;;  %s6379_s1 = smov %s5282_s22 }
0x21bf   : > { %p38_p2 = scmp.ge.s32.totalorder %s6376_s24, 4   ;;  %s6380_s22 = smov %s6377_s28 }
0x21c1   :  { %40 = sbr.rel (!%p38_p2) target bundleno = 24 (0x18), region = 220 }
0x21c8   :  { %4038 = vsyncpa [#allocation3], 1 }
0x21c9   :  { %4040 = vsyncpa [#allocation3 + $0x1], 1 }
0x21ca   :  { %4041 = vsyncpa [#allocation6], 1 }
0x21cb   :  { %4043 = vsyncpa [#allocation6 + $0x1], 1 }
0x21cc   :  { %4044 = vsyncpa [#allocation9], 1 }
0x21cd   :  { %4045 = vsyncpa [#allocation12], 1 }
0x21ce   :  { %4046 = vsyncpa [#allocation4], 1 }
0x21cf   :  { %4048 = vsyncpa [#allocation4 + $0x1], 1 }

</bundles_post_ra>
